<compile_context>
chip_gen: v5e
topology: v5e:2x2
jax: 0.10.0
libtpu: 0.0.40
codegen_flags: <defaults>
</compile_context>

<pallas_src>
import functools

import jax
import jax.numpy as jnp
import numpy as np
from jax.experimental import pallas as pl
from jax.experimental.pallas import tpu as pltpu

DIM = 200        # true embedding dim (module hardcodes dim = 200)
D_PAD = 256      # zero-padded to a lane/MXU-aligned width
HD = 32          # LSTM hidden size (module hardcodes hd_size = 32)


# ----------------------------------------------------------------------------
# Host-side parameter packing for the fused bidirectional recurrence.
# ----------------------------------------------------------------------------
def _pack_bilstm(wih_f, whh_f, b_f, wih_b, whh_b, b_b, hidden=HD):
    """Pack both LSTM directions into fused, gate-major parameters.

    Fused 8H gate-axis layout (H = hidden):
        [ i_f i_b | f_f f_b | g_f g_b | o_f o_b ]   (each block H lanes wide)
    so each gate occupies one contiguous 2H slab (fwd lanes then bwd lanes).
    """
    H = hidden

    def interleave(w_f, w_b):
        blocks = []
        for k in range(4):                      # PyTorch gate order (i, f, g, o)
            blocks.append(w_f[:, k * H:(k + 1) * H])
            blocks.append(w_b[:, k * H:(k + 1) * H])
        return jnp.concatenate(blocks, axis=1)

    wih_cat = interleave(wih_f, wih_b)                       # (D_PAD, 8H)
    b_cat = interleave(b_f, b_b).astype(jnp.float32)         # (1, 8H)

    # Block-diagonal recurrent weight: rows 0:H drive forward gate columns,
    # rows H:2H drive backward gate columns.
    wblk = jnp.zeros((2 * H, 8 * H), jnp.float32)
    for k in range(4):
        wblk = wblk.at[:H, k * 2 * H:k * 2 * H + H].set(whh_f[:, k * H:(k + 1) * H])
        wblk = wblk.at[H:, k * 2 * H + H:(k + 1) * 2 * H].set(whh_b[:, k * H:(k + 1) * H])
    return wih_cat, wblk, b_cat


# ----------------------------------------------------------------------------
# In-kernel fused biLSTM + mean pooling for one batch tile.
# ----------------------------------------------------------------------------
def _bilstm_mean(x_tile, wih, wblk, bias, gx_ref, seq_len, hidden):
    """Returns (TB, 2*hidden) f32 = [mean_t h_fwd | mean_t h_bwd]."""
    TB = x_tile.shape[0]
    Dp = x_tile.shape[-1]
    H = hidden
    H2 = 2 * H                 # fused hidden width (fwd | bwd)
    G = 8 * H                  # fused gate width

    # --- input projection: one big MXU matmul over all timesteps (bf16 x bf16,
    # f32 accumulate). Reshape path only when layout-preserving.
    if seq_len % 8 == 0:
        x2d = x_tile.reshape(TB * seq_len, Dp)
        gx = jnp.dot(x2d, wih, preferred_element_type=jnp.float32) + bias
        gx = gx.reshape(TB, seq_len, G)
    else:
        gx = jnp.einsum('btd,dg->btg', x_tile, wih,
                        preferred_element_type=jnp.float32) + bias

    lane = jax.lax.broadcasted_iota(jnp.int32, (TB, G), 1)
    is_fwd = (lane % H2) < H                     # forward-direction gate lanes
    is_g = (lane >= 2 * H2) & (lane < 3 * H2)    # cell-candidate (tanh) lanes

    # Fuse fwd(t=s) and bwd(t=S-1-s) input projections into one (TB, 8H) row per
    # step, stored time-major so the serial loop indexes the leading scratch axis.
    for s in range(seq_len):
        gx_ref[s] = jnp.where(is_fwd, gx[:, s, :], gx[:, seq_len - 1 - s, :])

    def step(s, carry):
        h, c, acc = carry
        g_raw = gx_ref[s] + jnp.dot(h, wblk, preferred_element_type=jnp.float32)
        # One full-width tanh: sigmoid(x) == 0.5*tanh(0.5*x) + 0.5 on i/f/o lanes.
        pre = jnp.where(is_g, g_raw, 0.5 * g_raw)
        t = jnp.tanh(pre)
        act = jnp.where(is_g, t, 0.5 * t + 0.5)
        i_g = act[:, 0 * H2:1 * H2]
        f_g = act[:, 1 * H2:2 * H2]
        g_g = act[:, 2 * H2:3 * H2]
        o_g = act[:, 3 * H2:4 * H2]
        c = f_g * c + i_g * g_g
        h = o_g * jnp.tanh(c)
        return h, c, acc + h

    zeros = jnp.zeros((TB, H2), jnp.float32)
    carry = (zeros, zeros, zeros)
    if seq_len <= 16:                           # tiny S: static unroll
        for s in range(seq_len):
            carry = step(s, carry)
    else:                                       # long S: keep vreg pressure flat
        carry = jax.lax.fori_loop(0, seq_len, step, carry)
    _, _, acc = carry
    return acc * (1.0 / seq_len)


# ----------------------------------------------------------------------------
# Fused kernel: job biLSTM + geek biLSTM + MLP head.
# ----------------------------------------------------------------------------
def _bpjfnn_kernel(job_x_ref, geek_x_ref,
                   j_wih_ref, j_wblk_ref, j_b_ref,
                   g_wih_ref, g_wblk_ref, g_b_ref,
                   w1_ref, b1_ref, w2_ref, b2_ref,
                   out_ref, gx_j_ref, gx_g_ref,
                   *, s_job, s_geek, hidden):
    job_pool = _bilstm_mean(job_x_ref[...], j_wih_ref[...], j_wblk_ref[...],
                            j_b_ref[...], gx_j_ref, s_job, hidden)
    geek_pool = _bilstm_mean(geek_x_ref[...], g_wih_ref[...], g_wblk_ref[...],
                             g_b_ref[...], gx_g_ref, s_geek, hidden)

    # MLP head: concat([job, geek, job - geek]) -> Linear -> ReLU -> Linear -> Sigmoid.
    # TODO(synk): training-mode dropout (p=0.7) not implemented; inference identity.
    x = jnp.concatenate([job_pool, geek_pool, job_pool - geek_pool], axis=1)
    h = jnp.dot(x, w1_ref[...], preferred_element_type=jnp.float32) + b1_ref[...]
    h = jnp.maximum(h, 0.0)
    y = jnp.dot(h, w2_ref[...], preferred_element_type=jnp.float32) + b2_ref[...]
    out_ref[...] = jax.nn.sigmoid(y)                           # (TB, 1)


def bpjfnn_forward(params, job_sent, geek_sent, *, tile_b=8):
    # Embedding lookup (gather) kept in plain JAX glue; tables are bf16, D padded.
    job_x = jnp.take(params['emb_job'], job_sent, axis=0)       # (B, Sj, 256) bf16
    geek_x = jnp.take(params['emb_user'], geek_sent, axis=0)    # (B, Sg, 256) bf16

    B = job_x.shape[0]
    TB = tile_b
    B_pad = ((B + TB - 1) // TB) * TB
    if B_pad != B:
        pad = ((0, B_pad - B), (0, 0), (0, 0))
        job_x = jnp.pad(job_x, pad)
        geek_x = jnp.pad(geek_x, pad)

    S_j, S_g = job_x.shape[1], geek_x.shape[1]
    Dp = job_x.shape[2]
    H = HD
    G = 8 * H

    kernel = functools.partial(_bpjfnn_kernel, s_job=S_j, s_geek=S_g, hidden=H)

    tile_map = lambda i: (i, 0, 0)
    const2 = lambda i: (0, 0)

    out = pl.pallas_call(
        kernel,
        out_shape=jax.ShapeDtypeStruct((B_pad, 1), jnp.float32),
        grid=(B_pad // TB,),
        in_specs=[
            pl.BlockSpec((TB, S_j, Dp), tile_map),
            pl.BlockSpec((TB, S_g, Dp), tile_map),
            pl.BlockSpec((Dp, G), const2),
            pl.BlockSpec((2 * H, G), const2),
            pl.BlockSpec((1, G), const2),
            pl.BlockSpec((Dp, G), const2),
            pl.BlockSpec((2 * H, G), const2),
            pl.BlockSpec((1, G), const2),
            pl.BlockSpec((6 * H, 6 * H), const2),
            pl.BlockSpec((1, 6 * H), const2),
            pl.BlockSpec((6 * H, 1), const2),
            pl.BlockSpec((1, 1), const2),
        ],
        out_specs=pl.BlockSpec((TB, 1), lambda i: (i, 0)),
        scratch_shapes=[pltpu.VMEM((S_j, TB, G), jnp.float32),
                        pltpu.VMEM((S_g, TB, G), jnp.float32)],
        compiler_params=pltpu.CompilerParams(
            dimension_semantics=("parallel",)),
    )(job_x, geek_x,
      params['job_wih'], params['job_wblk'], params['job_b'],
      params['geek_wih'], params['geek_wblk'], params['geek_b'],
      params['mlp_w1'], params['mlp_b1'], params['mlp_w2'], params['mlp_b2'])

    return out[:B, 0]                                           # squeeze(1) -> (B,)


# ----------------------------------------------------------------------------
# Deterministic parameter construction.
# ----------------------------------------------------------------------------
def init_params(key, vocab_job, vocab_user):
    ks = jax.random.split(key, 16)
    s = 0.1

    def rnd(k, shape):
        return jax.random.normal(k, shape, jnp.float32) * s

    emb_job = jnp.zeros((vocab_job, D_PAD), jnp.float32).at[:, :DIM].set(
        rnd(ks[0], (vocab_job, DIM)))
    emb_user = jnp.zeros((vocab_user, D_PAD), jnp.float32).at[:, :DIM].set(
        rnd(ks[1], (vocab_user, DIM)))

    params = {
        'emb_job': emb_job.astype(jnp.bfloat16),
        'emb_user': emb_user.astype(jnp.bfloat16),
    }
    raw = {}
    ki = 2
    for name in ('job', 'geek'):
        per_dir = {}
        for d in ('f', 'b'):
            wih = jnp.zeros((D_PAD, 4 * HD), jnp.float32).at[:DIM].set(
                rnd(ks[ki], (DIM, 4 * HD))); ki += 1
            whh = rnd(ks[ki], (HD, 4 * HD)); ki += 1
            bias = rnd(ks[ki], (1, 4 * HD)); ki += 1
            per_dir[d] = (wih.astype(jnp.bfloat16), whh, bias)
        (wf, hf, bf) = per_dir['f']
        (wb, hb, bb) = per_dir['b']
        wih_cat, wblk, b_cat = _pack_bilstm(wf, hf, bf, wb, hb, bb, HD)
        params[f'{name}_wih'] = wih_cat        # bf16 (256, 256)
        params[f'{name}_wblk'] = wblk          # f32  (64, 256)
        params[f'{name}_b'] = b_cat            # f32  (1, 256)
        raw[name] = per_dir
    params['mlp_w1'] = rnd(ks[ki], (6 * HD, 6 * HD)); ki += 1
    params['mlp_b1'] = jnp.zeros((1, 6 * HD), jnp.float32)
    params['mlp_w2'] = rnd(ks[ki], (6 * HD, 1)); ki += 1
    params['mlp_b2'] = jnp.zeros((1, 1), jnp.float32)
    params['_raw'] = raw                       # unpacked copies for the reference
    return params


# ----------------------------------------------------------------------------
# Pure-JAX reference (same math, standard per-direction LSTM) for correctness.
# ----------------------------------------------------------------------------
def _ref_lstm_dir(x, wih, whh, b, reverse):
    B, S, _ = x.shape
    H = whh.shape[0]
    hp = jax.lax.Precision.HIGHEST
    h = jnp.zeros((B, H), jnp.float32)
    c = jnp.zeros((B, H), jnp.float32)
    acc = jnp.zeros((B, H), jnp.float32)
    steps = range(S - 1, -1, -1) if reverse else range(S)
    for t in steps:
        g = (jnp.dot(x[:, t, :], wih, precision=hp)
             + jnp.dot(h, whh, precision=hp) + b[0])
        i = jax.nn.sigmoid(g[:, :H]); f = jax.nn.sigmoid(g[:, H:2 * H])
        gg = jnp.tanh(g[:, 2 * H:3 * H]); o = jax.nn.sigmoid(g[:, 3 * H:])
        c = f * c + i * gg
        h = o * jnp.tanh(c)
        acc = acc + h
    return acc / S


def bpjfnn_reference(p, job_sent, geek_sent):
    hp = jax.lax.Precision.HIGHEST
    jv = jnp.take(p['emb_job'], job_sent, axis=0).astype(jnp.float32)
    gv = jnp.take(p['emb_user'], geek_sent, axis=0).astype(jnp.float32)

    def pool(x, per_dir):
        (wf, hf, bf) = per_dir['f']
        (wb, hb, bb) = per_dir['b']
        mf = _ref_lstm_dir(x, wf.astype(jnp.float32), hf, bf, False)
        mb = _ref_lstm_dir(x, wb.astype(jnp.float32), hb, bb, True)
        return jnp.concatenate([mf, mb], axis=1)

    jp_ = pool(jv, p['_raw']['job'])
    gp_ = pool(gv, p['_raw']['geek'])
    x = jnp.concatenate([jp_, gp_, jp_ - gp_], axis=1)
    h = jnp.maximum(jnp.dot(x, p['mlp_w1'], precision=hp) + p['mlp_b1'], 0.0)
    return jax.nn.sigmoid(jnp.dot(h, p['mlp_w2'], precision=hp) + p['mlp_b2'])[:, 0]


if __name__ == "__main__":
    key = jax.random.PRNGKey(0)
    B = 2
    SEQ_JOB, SEQ_GEEK = 8, 8
    VOCAB_JOB, VOCAB_USER = 64, 64

    kp, kj, kg = jax.random.split(key, 3)
    params = init_params(kp, VOCAB_JOB, VOCAB_USER)
    job_sent = jax.random.randint(kj, (B, SEQ_JOB), 0, VOCAB_JOB, dtype=jnp.int32)
    geek_sent = jax.random.randint(kg, (B, SEQ_GEEK), 0, VOCAB_USER, dtype=jnp.int32)

    out = jax.block_until_ready(bpjfnn_forward(params, job_sent, geek_sent))
    ref = jax.block_until_ready(bpjfnn_reference(params, job_sent, geek_sent))

    assert out.shape == (B,)
    np.testing.assert_allclose(np.asarray(out, np.float32),
                               np.asarray(ref, np.float32),
                               atol=2e-3, rtol=2e-3)
    print("KERNEL_OK")
</pallas_src>

<mosaic_0001>
module attributes {stable_mosaic.version = 11 : i64} {
  func.func @_bpjfnn_kernel(%arg0: i32, %arg1: memref<8x8x256xbf16, #tpu.memory_space<vmem>>, %arg2: memref<8x8x256xbf16, #tpu.memory_space<vmem>>, %arg3: memref<256x256xbf16, #tpu.memory_space<vmem>>, %arg4: memref<64x256xf32, #tpu.memory_space<vmem>>, %arg5: memref<1x256xf32, #tpu.memory_space<vmem>>, %arg6: memref<256x256xbf16, #tpu.memory_space<vmem>>, %arg7: memref<64x256xf32, #tpu.memory_space<vmem>>, %arg8: memref<1x256xf32, #tpu.memory_space<vmem>>, %arg9: memref<192x192xf32, #tpu.memory_space<vmem>>, %arg10: memref<1x192xf32, #tpu.memory_space<vmem>>, %arg11: memref<192x1xf32, #tpu.memory_space<vmem>>, %arg12: memref<1x1xf32, #tpu.memory_space<vmem>>, %arg13: memref<8x1xf32, #tpu.memory_space<vmem>>, %arg14: memref<8x8x256xf32, #tpu.memory_space<vmem>>, %arg15: memref<8x8x256xf32, #tpu.memory_space<vmem>>) attributes {dimension_semantics = [#tpu.dimension_semantics<parallel>], iteration_bounds = array<i64: 1>, scalar_prefetch = 0 : i64, scratch_operands = 2 : i64, tpu.core_type = #tpu.core_type<tc>, window_params = [{transform_indices = @transform_0, window_bounds = array<i64: 8, 8, 256>}, {transform_indices = @transform_1, window_bounds = array<i64: 8, 8, 256>}, {pipeline_mode = #tpu.pipeline_mode<synchronous>, transform_indices = @transform_2, window_bounds = array<i64: 256, 256>}, {pipeline_mode = #tpu.pipeline_mode<synchronous>, transform_indices = @transform_3, window_bounds = array<i64: 64, 256>}, {pipeline_mode = #tpu.pipeline_mode<synchronous>, transform_indices = @transform_4, window_bounds = array<i64: 1, 256>}, {pipeline_mode = #tpu.pipeline_mode<synchronous>, transform_indices = @transform_5, window_bounds = array<i64: 256, 256>}, {pipeline_mode = #tpu.pipeline_mode<synchronous>, transform_indices = @transform_6, window_bounds = array<i64: 64, 256>}, {pipeline_mode = #tpu.pipeline_mode<synchronous>, transform_indices = @transform_7, window_bounds = array<i64: 1, 256>}, {pipeline_mode = #tpu.pipeline_mode<synchronous>, transform_indices = @transform_8, window_bounds = array<i64: 192, 192>}, {pipeline_mode = #tpu.pipeline_mode<synchronous>, transform_indices = @transform_9, window_bounds = array<i64: 1, 192>}, {pipeline_mode = #tpu.pipeline_mode<synchronous>, transform_indices = @transform_10, window_bounds = array<i64: 192, 1>}, {pipeline_mode = #tpu.pipeline_mode<synchronous>, transform_indices = @transform_11, window_bounds = array<i64: 1, 1>}, {transform_indices = @transform_12, window_bounds = array<i64: 8, 1>}]} {
    %c0 = arith.constant 0 : index
    %c0_0 = arith.constant 0 : index
    %c0_1 = arith.constant 0 : index
    %0 = vector.load %arg1[%c0, %c0_0, %c0_1] : memref<8x8x256xbf16, #tpu.memory_space<vmem>>, vector<8x8x256xbf16>
    %c0_2 = arith.constant 0 : index
    %c0_3 = arith.constant 0 : index
    %1 = vector.load %arg3[%c0_2, %c0_3] : memref<256x256xbf16, #tpu.memory_space<vmem>>, vector<256x256xbf16>
    %c0_4 = arith.constant 0 : index
    %c0_5 = arith.constant 0 : index
    %2 = vector.load %arg4[%c0_4, %c0_5] : memref<64x256xf32, #tpu.memory_space<vmem>>, vector<64x256xf32>
    %c0_6 = arith.constant 0 : index
    %c0_7 = arith.constant 0 : index
    %3 = vector.load %arg5[%c0_6, %c0_7] : memref<1x256xf32, #tpu.memory_space<vmem>>, vector<1x256xf32>
    %4 = vector.shape_cast %0 : vector<8x8x256xbf16> to vector<64x256xbf16>
    %cst = arith.constant dense<0.000000e+00> : vector<64x256xf32>
    %5 = tpu.matmul %4, %1, %cst {dimension_numbers = #tpu.dot_dimension_numbers<[1], [0], [0], [1], [0, 0, 1, 1], [], []>} : vector<64x256xbf16>, vector<256x256xbf16>, vector<64x256xf32> -> vector<64x256xf32>
    %6 = vector.broadcast %3 : vector<1x256xf32> to vector<64x256xf32>
    %7 = arith.addf %5, %6 : vector<64x256xf32>
    %8 = vector.shape_cast %7 : vector<64x256xf32> to vector<8x8x256xf32>
    %9 = tpu.iota {dimensions = array<i32: 1>} : vector<8x256xi32>
    %c64_i32 = arith.constant 64 : i32
    %c0_i32 = arith.constant 0 : i32
    %10 = arith.cmpi eq, %c64_i32, %c0_i32 : i32
    %c1_i32 = arith.constant 1 : i32
    %11 = arith.select %10, %c1_i32, %c64_i32 : i32
    %12 = vector.broadcast %11 : i32 to vector<8x256xi32>
    %13 = arith.remsi %9, %12 : vector<8x256xi32>
    %c0_i32_8 = arith.constant 0 : i32
    %14 = vector.broadcast %c0_i32_8 : i32 to vector<8x256xi32>
    %15 = arith.cmpi ne, %13, %14 : vector<8x256xi32>
    %c0_i32_9 = arith.constant 0 : i32
    %16 = vector.broadcast %c0_i32_9 : i32 to vector<8x256xi32>
    %17 = arith.cmpi slt, %13, %16 : vector<8x256xi32>
    %c0_i32_10 = arith.constant 0 : i32
    %18 = arith.cmpi slt, %11, %c0_i32_10 : i32
    %19 = vector.broadcast %18 : i1 to vector<8x256xi1>
    %20 = vector.broadcast %19 : vector<8x256xi1> to vector<8x256xi1>
    %21 = arith.xori %17, %20 : vector<8x256xi1>
    %22 = arith.andi %21, %15 : vector<8x256xi1>
    %23 = vector.broadcast %11 : i32 to vector<8x256xi32>
    %24 = arith.addi %13, %23 : vector<8x256xi32>
    %25 = arith.select %22, %24, %13 : vector<8x256xi1>, vector<8x256xi32>
    %c32_i32 = arith.constant 32 : i32
    %26 = vector.broadcast %c32_i32 : i32 to vector<8x256xi32>
    %27 = arith.cmpi slt, %25, %26 : vector<8x256xi32>
    %c128_i32 = arith.constant 128 : i32
    %28 = vector.broadcast %c128_i32 : i32 to vector<8x256xi32>
    %29 = arith.cmpi sge, %9, %28 : vector<8x256xi32>
    %c192_i32 = arith.constant 192 : i32
    %30 = vector.broadcast %c192_i32 : i32 to vector<8x256xi32>
    %31 = arith.cmpi slt, %9, %30 : vector<8x256xi32>
    %32 = arith.andi %29, %31 : vector<8x256xi1>
    %33 = vector.extract_strided_slice %8 {offsets = [0, 0, 0], sizes = [8, 1, 256], strides = [1, 1, 1]} : vector<8x8x256xf32> to vector<8x1x256xf32>
    %34 = vector.shape_cast %33 : vector<8x1x256xf32> to vector<8x256xf32>
    %35 = vector.extract_strided_slice %8 {offsets = [0, 7, 0], sizes = [8, 1, 256], strides = [1, 1, 1]} : vector<8x8x256xf32> to vector<8x1x256xf32>
    %36 = vector.shape_cast %35 : vector<8x1x256xf32> to vector<8x256xf32>
    %37 = arith.select %27, %34, %36 : vector<8x256xi1>, vector<8x256xf32>
    %c0_11 = arith.constant 0 : index
    %c0_12 = arith.constant 0 : index
    %c0_13 = arith.constant 0 : index
    %38 = vector.load %arg14[%c0_11, %c0_12, %c0_13] : memref<8x8x256xf32, #tpu.memory_space<vmem>>, vector<1x8x256xf32>
    %39 = vector.shape_cast %38 : vector<1x8x256xf32> to vector<8x256xf32>
    %40 = vector.shape_cast %37 : vector<8x256xf32> to vector<1x8x256xf32>
    tpu.vector_store %arg14[%c0_11, %c0_12, %c0_13], %40 {strides = array<i32>} : memref<8x8x256xf32, #tpu.memory_space<vmem>>, vector<1x8x256xf32>,
    %41 = vector.extract_strided_slice %8 {offsets = [0, 1, 0], sizes = [8, 1, 256], strides = [1, 1, 1]} : vector<8x8x256xf32> to vector<8x1x256xf32>
    %42 = vector.shape_cast %41 : vector<8x1x256xf32> to vector<8x256xf32>
    %43 = vector.extract_strided_slice %8 {offsets = [0, 6, 0], sizes = [8, 1, 256], strides = [1, 1, 1]} : vector<8x8x256xf32> to vector<8x1x256xf32>
    %44 = vector.shape_cast %43 : vector<8x1x256xf32> to vector<8x256xf32>
    %45 = arith.select %27, %42, %44 : vector<8x256xi1>, vector<8x256xf32>
    %c1 = arith.constant 1 : index
    %c0_14 = arith.constant 0 : index
    %c0_15 = arith.constant 0 : index
    %46 = vector.load %arg14[%c1, %c0_14, %c0_15] : memref<8x8x256xf32, #tpu.memory_space<vmem>>, vector<1x8x256xf32>
    %47 = vector.shape_cast %46 : vector<1x8x256xf32> to vector<8x256xf32>
    %48 = vector.shape_cast %45 : vector<8x256xf32> to vector<1x8x256xf32>
    tpu.vector_store %arg14[%c1, %c0_14, %c0_15], %48 {strides = array<i32>} : memref<8x8x256xf32, #tpu.memory_space<vmem>>, vector<1x8x256xf32>,
    %49 = vector.extract_strided_slice %8 {offsets = [0, 2, 0], sizes = [8, 1, 256], strides = [1, 1, 1]} : vector<8x8x256xf32> to vector<8x1x256xf32>
    %50 = vector.shape_cast %49 : vector<8x1x256xf32> to vector<8x256xf32>
    %51 = vector.extract_strided_slice %8 {offsets = [0, 5, 0], sizes = [8, 1, 256], strides = [1, 1, 1]} : vector<8x8x256xf32> to vector<8x1x256xf32>
    %52 = vector.shape_cast %51 : vector<8x1x256xf32> to vector<8x256xf32>
    %53 = arith.select %27, %50, %52 : vector<8x256xi1>, vector<8x256xf32>
    %c2 = arith.constant 2 : index
    %c0_16 = arith.constant 0 : index
    %c0_17 = arith.constant 0 : index
    %54 = vector.load %arg14[%c2, %c0_16, %c0_17] : memref<8x8x256xf32, #tpu.memory_space<vmem>>, vector<1x8x256xf32>
    %55 = vector.shape_cast %54 : vector<1x8x256xf32> to vector<8x256xf32>
    %56 = vector.shape_cast %53 : vector<8x256xf32> to vector<1x8x256xf32>
    tpu.vector_store %arg14[%c2, %c0_16, %c0_17], %56 {strides = array<i32>} : memref<8x8x256xf32, #tpu.memory_space<vmem>>, vector<1x8x256xf32>,
    %57 = vector.extract_strided_slice %8 {offsets = [0, 3, 0], sizes = [8, 1, 256], strides = [1, 1, 1]} : vector<8x8x256xf32> to vector<8x1x256xf32>
    %58 = vector.shape_cast %57 : vector<8x1x256xf32> to vector<8x256xf32>
    %59 = vector.extract_strided_slice %8 {offsets = [0, 4, 0], sizes = [8, 1, 256], strides = [1, 1, 1]} : vector<8x8x256xf32> to vector<8x1x256xf32>
    %60 = vector.shape_cast %59 : vector<8x1x256xf32> to vector<8x256xf32>
    %61 = arith.select %27, %58, %60 : vector<8x256xi1>, vector<8x256xf32>
    %c3 = arith.constant 3 : index
    %c0_18 = arith.constant 0 : index
    %c0_19 = arith.constant 0 : index
    %62 = vector.load %arg14[%c3, %c0_18, %c0_19] : memref<8x8x256xf32, #tpu.memory_space<vmem>>, vector<1x8x256xf32>
    %63 = vector.shape_cast %62 : vector<1x8x256xf32> to vector<8x256xf32>
    %64 = vector.shape_cast %61 : vector<8x256xf32> to vector<1x8x256xf32>
    tpu.vector_store %arg14[%c3, %c0_18, %c0_19], %64 {strides = array<i32>} : memref<8x8x256xf32, #tpu.memory_space<vmem>>, vector<1x8x256xf32>,
    %65 = vector.extract_strided_slice %8 {offsets = [0, 4, 0], sizes = [8, 1, 256], strides = [1, 1, 1]} : vector<8x8x256xf32> to vector<8x1x256xf32>
    %66 = vector.shape_cast %65 : vector<8x1x256xf32> to vector<8x256xf32>
    %67 = vector.extract_strided_slice %8 {offsets = [0, 3, 0], sizes = [8, 1, 256], strides = [1, 1, 1]} : vector<8x8x256xf32> to vector<8x1x256xf32>
    %68 = vector.shape_cast %67 : vector<8x1x256xf32> to vector<8x256xf32>
    %69 = arith.select %27, %66, %68 : vector<8x256xi1>, vector<8x256xf32>
    %c4 = arith.constant 4 : index
    %c0_20 = arith.constant 0 : index
    %c0_21 = arith.constant 0 : index
    %70 = vector.load %arg14[%c4, %c0_20, %c0_21] : memref<8x8x256xf32, #tpu.memory_space<vmem>>, vector<1x8x256xf32>
    %71 = vector.shape_cast %70 : vector<1x8x256xf32> to vector<8x256xf32>
    %72 = vector.shape_cast %69 : vector<8x256xf32> to vector<1x8x256xf32>
    tpu.vector_store %arg14[%c4, %c0_20, %c0_21], %72 {strides = array<i32>} : memref<8x8x256xf32, #tpu.memory_space<vmem>>, vector<1x8x256xf32>,
    %73 = vector.extract_strided_slice %8 {offsets = [0, 5, 0], sizes = [8, 1, 256], strides = [1, 1, 1]} : vector<8x8x256xf32> to vector<8x1x256xf32>
    %74 = vector.shape_cast %73 : vector<8x1x256xf32> to vector<8x256xf32>
    %75 = vector.extract_strided_slice %8 {offsets = [0, 2, 0], sizes = [8, 1, 256], strides = [1, 1, 1]} : vector<8x8x256xf32> to vector<8x1x256xf32>
    %76 = vector.shape_cast %75 : vector<8x1x256xf32> to vector<8x256xf32>
    %77 = arith.select %27, %74, %76 : vector<8x256xi1>, vector<8x256xf32>
    %c5 = arith.constant 5 : index
    %c0_22 = arith.constant 0 : index
    %c0_23 = arith.constant 0 : index
    %78 = vector.load %arg14[%c5, %c0_22, %c0_23] : memref<8x8x256xf32, #tpu.memory_space<vmem>>, vector<1x8x256xf32>
    %79 = vector.shape_cast %78 : vector<1x8x256xf32> to vector<8x256xf32>
    %80 = vector.shape_cast %77 : vector<8x256xf32> to vector<1x8x256xf32>
    tpu.vector_store %arg14[%c5, %c0_22, %c0_23], %80 {strides = array<i32>} : memref<8x8x256xf32, #tpu.memory_space<vmem>>, vector<1x8x256xf32>,
    %81 = vector.extract_strided_slice %8 {offsets = [0, 6, 0], sizes = [8, 1, 256], strides = [1, 1, 1]} : vector<8x8x256xf32> to vector<8x1x256xf32>
    %82 = vector.shape_cast %81 : vector<8x1x256xf32> to vector<8x256xf32>
    %83 = vector.extract_strided_slice %8 {offsets = [0, 1, 0], sizes = [8, 1, 256], strides = [1, 1, 1]} : vector<8x8x256xf32> to vector<8x1x256xf32>
    %84 = vector.shape_cast %83 : vector<8x1x256xf32> to vector<8x256xf32>
    %85 = arith.select %27, %82, %84 : vector<8x256xi1>, vector<8x256xf32>
    %c6 = arith.constant 6 : index
    %c0_24 = arith.constant 0 : index
    %c0_25 = arith.constant 0 : index
    %86 = vector.load %arg14[%c6, %c0_24, %c0_25] : memref<8x8x256xf32, #tpu.memory_space<vmem>>, vector<1x8x256xf32>
    %87 = vector.shape_cast %86 : vector<1x8x256xf32> to vector<8x256xf32>
    %88 = vector.shape_cast %85 : vector<8x256xf32> to vector<1x8x256xf32>
    tpu.vector_store %arg14[%c6, %c0_24, %c0_25], %88 {strides = array<i32>} : memref<8x8x256xf32, #tpu.memory_space<vmem>>, vector<1x8x256xf32>,
    %89 = vector.extract_strided_slice %8 {offsets = [0, 7, 0], sizes = [8, 1, 256], strides = [1, 1, 1]} : vector<8x8x256xf32> to vector<8x1x256xf32>
    %90 = vector.shape_cast %89 : vector<8x1x256xf32> to vector<8x256xf32>
    %91 = vector.extract_strided_slice %8 {offsets = [0, 0, 0], sizes = [8, 1, 256], strides = [1, 1, 1]} : vector<8x8x256xf32> to vector<8x1x256xf32>
    %92 = vector.shape_cast %91 : vector<8x1x256xf32> to vector<8x256xf32>
    %93 = arith.select %27, %90, %92 : vector<8x256xi1>, vector<8x256xf32>
    %c7 = arith.constant 7 : index
    %c0_26 = arith.constant 0 : index
    %c0_27 = arith.constant 0 : index
    %94 = vector.load %arg14[%c7, %c0_26, %c0_27] : memref<8x8x256xf32, #tpu.memory_space<vmem>>, vector<1x8x256xf32>
    %95 = vector.shape_cast %94 : vector<1x8x256xf32> to vector<8x256xf32>
    %96 = vector.shape_cast %93 : vector<8x256xf32> to vector<1x8x256xf32>
    tpu.vector_store %arg14[%c7, %c0_26, %c0_27], %96 {strides = array<i32>} : memref<8x8x256xf32, #tpu.memory_space<vmem>>, vector<1x8x256xf32>,
    %cst_28 = arith.constant 0.000000e+00 : f32
    %97 = vector.broadcast %cst_28 : f32 to vector<8x64xf32>
    %c0_29 = arith.constant 0 : index
    %c0_30 = arith.constant 0 : index
    %c0_31 = arith.constant 0 : index
    %98 = vector.load %arg14[%c0_29, %c0_30, %c0_31] : memref<8x8x256xf32, #tpu.memory_space<vmem>>, vector<1x8x256xf32>
    %99 = vector.shape_cast %98 : vector<1x8x256xf32> to vector<8x256xf32>
    %cst_32 = arith.constant dense<0.000000e+00> : vector<8x256xf32>
    %100 = tpu.matmul %97, %2, %cst_32 {dimension_numbers = #tpu.dot_dimension_numbers<[1], [0], [0], [1], [0, 0, 1, 1], [], []>} : vector<8x64xf32>, vector<64x256xf32>, vector<8x256xf32> -> vector<8x256xf32>
    %101 = arith.addf %99, %100 : vector<8x256xf32>
    %cst_33 = arith.constant 5.000000e-01 : f32
    %102 = vector.broadcast %cst_33 : f32 to vector<8x256xf32>
    %103 = arith.mulf %102, %101 : vector<8x256xf32>
    %104 = arith.select %32, %101, %103 : vector<8x256xi1>, vector<8x256xf32>
    %105 = math.tanh %104 : vector<8x256xf32>
    %cst_34 = arith.constant 5.000000e-01 : f32
    %106 = vector.broadcast %cst_34 : f32 to vector<8x256xf32>
    %107 = arith.mulf %106, %105 : vector<8x256xf32>
    %cst_35 = arith.constant 5.000000e-01 : f32
    %108 = vector.broadcast %cst_35 : f32 to vector<8x256xf32>
    %109 = arith.addf %107, %108 : vector<8x256xf32>
    %110 = arith.select %32, %105, %109 : vector<8x256xi1>, vector<8x256xf32>
    %111 = vector.extract_strided_slice %110 {offsets = [0, 0], sizes = [8, 64], strides = [1, 1]} : vector<8x256xf32> to vector<8x64xf32>
    %112 = vector.extract_strided_slice %110 {offsets = [0, 64], sizes = [8, 64], strides = [1, 1]} : vector<8x256xf32> to vector<8x64xf32>
    %113 = vector.extract_strided_slice %110 {offsets = [0, 128], sizes = [8, 64], strides = [1, 1]} : vector<8x256xf32> to vector<8x64xf32>
    %114 = vector.extract_strided_slice %110 {offsets = [0, 192], sizes = [8, 64], strides = [1, 1]} : vector<8x256xf32> to vector<8x64xf32>
    %115 = arith.mulf %112, %97 : vector<8x64xf32>
    %116 = arith.mulf %111, %113 : vector<8x64xf32>
    %117 = arith.addf %115, %116 : vector<8x64xf32>
    %118 = math.tanh %117 : vector<8x64xf32>
    %119 = arith.mulf %114, %118 : vector<8x64xf32>
    %120 = arith.addf %97, %119 : vector<8x64xf32>
    %c1_36 = arith.constant 1 : index
    %c0_37 = arith.constant 0 : index
    %c0_38 = arith.constant 0 : index
    %121 = vector.load %arg14[%c1_36, %c0_37, %c0_38] : memref<8x8x256xf32, #tpu.memory_space<vmem>>, vector<1x8x256xf32>
    %122 = vector.shape_cast %121 : vector<1x8x256xf32> to vector<8x256xf32>
    %cst_39 = arith.constant dense<0.000000e+00> : vector<8x256xf32>
    %123 = tpu.matmul %119, %2, %cst_39 {dimension_numbers = #tpu.dot_dimension_numbers<[1], [0], [0], [1], [0, 0, 1, 1], [], []>} : vector<8x64xf32>, vector<64x256xf32>, vector<8x256xf32> -> vector<8x256xf32>
    %124 = arith.addf %122, %123 : vector<8x256xf32>
    %cst_40 = arith.constant 5.000000e-01 : f32
    %125 = vector.broadcast %cst_40 : f32 to vector<8x256xf32>
    %126 = arith.mulf %125, %124 : vector<8x256xf32>
    %127 = arith.select %32, %124, %126 : vector<8x256xi1>, vector<8x256xf32>
    %128 = math.tanh %127 : vector<8x256xf32>
    %cst_41 = arith.constant 5.000000e-01 : f32
    %129 = vector.broadcast %cst_41 : f32 to vector<8x256xf32>
    %130 = arith.mulf %129, %128 : vector<8x256xf32>
    %cst_42 = arith.constant 5.000000e-01 : f32
    %131 = vector.broadcast %cst_42 : f32 to vector<8x256xf32>
    %132 = arith.addf %130, %131 : vector<8x256xf32>
    %133 = arith.select %32, %128, %132 : vector<8x256xi1>, vector<8x256xf32>
    %134 = vector.extract_strided_slice %133 {offsets = [0, 0], sizes = [8, 64], strides = [1, 1]} : vector<8x256xf32> to vector<8x64xf32>
    %135 = vector.extract_strided_slice %133 {offsets = [0, 64], sizes = [8, 64], strides = [1, 1]} : vector<8x256xf32> to vector<8x64xf32>
    %136 = vector.extract_strided_slice %133 {offsets = [0, 128], sizes = [8, 64], strides = [1, 1]} : vector<8x256xf32> to vector<8x64xf32>
    %137 = vector.extract_strided_slice %133 {offsets = [0, 192], sizes = [8, 64], strides = [1, 1]} : vector<8x256xf32> to vector<8x64xf32>
    %138 = arith.mulf %135, %117 : vector<8x64xf32>
    %139 = arith.mulf %134, %136 : vector<8x64xf32>
    %140 = arith.addf %138, %139 : vector<8x64xf32>
    %141 = math.tanh %140 : vector<8x64xf32>
    %142 = arith.mulf %137, %141 : vector<8x64xf32>
    %143 = arith.addf %120, %142 : vector<8x64xf32>
    %c2_43 = arith.constant 2 : index
    %c0_44 = arith.constant 0 : index
    %c0_45 = arith.constant 0 : index
    %144 = vector.load %arg14[%c2_43, %c0_44, %c0_45] : memref<8x8x256xf32, #tpu.memory_space<vmem>>, vector<1x8x256xf32>
    %145 = vector.shape_cast %144 : vector<1x8x256xf32> to vector<8x256xf32>
    %cst_46 = arith.constant dense<0.000000e+00> : vector<8x256xf32>
    %146 = tpu.matmul %142, %2, %cst_46 {dimension_numbers = #tpu.dot_dimension_numbers<[1], [0], [0], [1], [0, 0, 1, 1], [], []>} : vector<8x64xf32>, vector<64x256xf32>, vector<8x256xf32> -> vector<8x256xf32>
    %147 = arith.addf %145, %146 : vector<8x256xf32>
    %cst_47 = arith.constant 5.000000e-01 : f32
    %148 = vector.broadcast %cst_47 : f32 to vector<8x256xf32>
    %149 = arith.mulf %148, %147 : vector<8x256xf32>
    %150 = arith.select %32, %147, %149 : vector<8x256xi1>, vector<8x256xf32>
    %151 = math.tanh %150 : vector<8x256xf32>
    %cst_48 = arith.constant 5.000000e-01 : f32
    %152 = vector.broadcast %cst_48 : f32 to vector<8x256xf32>
    %153 = arith.mulf %152, %151 : vector<8x256xf32>
    %cst_49 = arith.constant 5.000000e-01 : f32
    %154 = vector.broadcast %cst_49 : f32 to vector<8x256xf32>
    %155 = arith.addf %153, %154 : vector<8x256xf32>
    %156 = arith.select %32, %151, %155 : vector<8x256xi1>, vector<8x256xf32>
    %157 = vector.extract_strided_slice %156 {offsets = [0, 0], sizes = [8, 64], strides = [1, 1]} : vector<8x256xf32> to vector<8x64xf32>
    %158 = vector.extract_strided_slice %156 {offsets = [0, 64], sizes = [8, 64], strides = [1, 1]} : vector<8x256xf32> to vector<8x64xf32>
    %159 = vector.extract_strided_slice %156 {offsets = [0, 128], sizes = [8, 64], strides = [1, 1]} : vector<8x256xf32> to vector<8x64xf32>
    %160 = vector.extract_strided_slice %156 {offsets = [0, 192], sizes = [8, 64], strides = [1, 1]} : vector<8x256xf32> to vector<8x64xf32>
    %161 = arith.mulf %158, %140 : vector<8x64xf32>
    %162 = arith.mulf %157, %159 : vector<8x64xf32>
    %163 = arith.addf %161, %162 : vector<8x64xf32>
    %164 = math.tanh %163 : vector<8x64xf32>
    %165 = arith.mulf %160, %164 : vector<8x64xf32>
    %166 = arith.addf %143, %165 : vector<8x64xf32>
    %c3_50 = arith.constant 3 : index
    %c0_51 = arith.constant 0 : index
    %c0_52 = arith.constant 0 : index
    %167 = vector.load %arg14[%c3_50, %c0_51, %c0_52] : memref<8x8x256xf32, #tpu.memory_space<vmem>>, vector<1x8x256xf32>
    %168 = vector.shape_cast %167 : vector<1x8x256xf32> to vector<8x256xf32>
    %cst_53 = arith.constant dense<0.000000e+00> : vector<8x256xf32>
    %169 = tpu.matmul %165, %2, %cst_53 {dimension_numbers = #tpu.dot_dimension_numbers<[1], [0], [0], [1], [0, 0, 1, 1], [], []>} : vector<8x64xf32>, vector<64x256xf32>, vector<8x256xf32> -> vector<8x256xf32>
    %170 = arith.addf %168, %169 : vector<8x256xf32>
    %cst_54 = arith.constant 5.000000e-01 : f32
    %171 = vector.broadcast %cst_54 : f32 to vector<8x256xf32>
    %172 = arith.mulf %171, %170 : vector<8x256xf32>
    %173 = arith.select %32, %170, %172 : vector<8x256xi1>, vector<8x256xf32>
    %174 = math.tanh %173 : vector<8x256xf32>
    %cst_55 = arith.constant 5.000000e-01 : f32
    %175 = vector.broadcast %cst_55 : f32 to vector<8x256xf32>
    %176 = arith.mulf %175, %174 : vector<8x256xf32>
    %cst_56 = arith.constant 5.000000e-01 : f32
    %177 = vector.broadcast %cst_56 : f32 to vector<8x256xf32>
    %178 = arith.addf %176, %177 : vector<8x256xf32>
    %179 = arith.select %32, %174, %178 : vector<8x256xi1>, vector<8x256xf32>
    %180 = vector.extract_strided_slice %179 {offsets = [0, 0], sizes = [8, 64], strides = [1, 1]} : vector<8x256xf32> to vector<8x64xf32>
    %181 = vector.extract_strided_slice %179 {offsets = [0, 64], sizes = [8, 64], strides = [1, 1]} : vector<8x256xf32> to vector<8x64xf32>
    %182 = vector.extract_strided_slice %179 {offsets = [0, 128], sizes = [8, 64], strides = [1, 1]} : vector<8x256xf32> to vector<8x64xf32>
    %183 = vector.extract_strided_slice %179 {offsets = [0, 192], sizes = [8, 64], strides = [1, 1]} : vector<8x256xf32> to vector<8x64xf32>
    %184 = arith.mulf %181, %163 : vector<8x64xf32>
    %185 = arith.mulf %180, %182 : vector<8x64xf32>
    %186 = arith.addf %184, %185 : vector<8x64xf32>
    %187 = math.tanh %186 : vector<8x64xf32>
    %188 = arith.mulf %183, %187 : vector<8x64xf32>
    %189 = arith.addf %166, %188 : vector<8x64xf32>
    %c4_57 = arith.constant 4 : index
    %c0_58 = arith.constant 0 : index
    %c0_59 = arith.constant 0 : index
    %190 = vector.load %arg14[%c4_57, %c0_58, %c0_59] : memref<8x8x256xf32, #tpu.memory_space<vmem>>, vector<1x8x256xf32>
    %191 = vector.shape_cast %190 : vector<1x8x256xf32> to vector<8x256xf32>
    %cst_60 = arith.constant dense<0.000000e+00> : vector<8x256xf32>
    %192 = tpu.matmul %188, %2, %cst_60 {dimension_numbers = #tpu.dot_dimension_numbers<[1], [0], [0], [1], [0, 0, 1, 1], [], []>} : vector<8x64xf32>, vector<64x256xf32>, vector<8x256xf32> -> vector<8x256xf32>
    %193 = arith.addf %191, %192 : vector<8x256xf32>
    %cst_61 = arith.constant 5.000000e-01 : f32
    %194 = vector.broadcast %cst_61 : f32 to vector<8x256xf32>
    %195 = arith.mulf %194, %193 : vector<8x256xf32>
    %196 = arith.select %32, %193, %195 : vector<8x256xi1>, vector<8x256xf32>
    %197 = math.tanh %196 : vector<8x256xf32>
    %cst_62 = arith.constant 5.000000e-01 : f32
    %198 = vector.broadcast %cst_62 : f32 to vector<8x256xf32>
    %199 = arith.mulf %198, %197 : vector<8x256xf32>
    %cst_63 = arith.constant 5.000000e-01 : f32
    %200 = vector.broadcast %cst_63 : f32 to vector<8x256xf32>
    %201 = arith.addf %199, %200 : vector<8x256xf32>
    %202 = arith.select %32, %197, %201 : vector<8x256xi1>, vector<8x256xf32>
    %203 = vector.extract_strided_slice %202 {offsets = [0, 0], sizes = [8, 64], strides = [1, 1]} : vector<8x256xf32> to vector<8x64xf32>
    %204 = vector.extract_strided_slice %202 {offsets = [0, 64], sizes = [8, 64], strides = [1, 1]} : vector<8x256xf32> to vector<8x64xf32>
    %205 = vector.extract_strided_slice %202 {offsets = [0, 128], sizes = [8, 64], strides = [1, 1]} : vector<8x256xf32> to vector<8x64xf32>
    %206 = vector.extract_strided_slice %202 {offsets = [0, 192], sizes = [8, 64], strides = [1, 1]} : vector<8x256xf32> to vector<8x64xf32>
    %207 = arith.mulf %204, %186 : vector<8x64xf32>
    %208 = arith.mulf %203, %205 : vector<8x64xf32>
    %209 = arith.addf %207, %208 : vector<8x64xf32>
    %210 = math.tanh %209 : vector<8x64xf32>
    %211 = arith.mulf %206, %210 : vector<8x64xf32>
    %212 = arith.addf %189, %211 : vector<8x64xf32>
    %c5_64 = arith.constant 5 : index
    %c0_65 = arith.constant 0 : index
    %c0_66 = arith.constant 0 : index
    %213 = vector.load %arg14[%c5_64, %c0_65, %c0_66] : memref<8x8x256xf32, #tpu.memory_space<vmem>>, vector<1x8x256xf32>
    %214 = vector.shape_cast %213 : vector<1x8x256xf32> to vector<8x256xf32>
    %cst_67 = arith.constant dense<0.000000e+00> : vector<8x256xf32>
    %215 = tpu.matmul %211, %2, %cst_67 {dimension_numbers = #tpu.dot_dimension_numbers<[1], [0], [0], [1], [0, 0, 1, 1], [], []>} : vector<8x64xf32>, vector<64x256xf32>, vector<8x256xf32> -> vector<8x256xf32>
    %216 = arith.addf %214, %215 : vector<8x256xf32>
    %cst_68 = arith.constant 5.000000e-01 : f32
    %217 = vector.broadcast %cst_68 : f32 to vector<8x256xf32>
    %218 = arith.mulf %217, %216 : vector<8x256xf32>
    %219 = arith.select %32, %216, %218 : vector<8x256xi1>, vector<8x256xf32>
    %220 = math.tanh %219 : vector<8x256xf32>
    %cst_69 = arith.constant 5.000000e-01 : f32
    %221 = vector.broadcast %cst_69 : f32 to vector<8x256xf32>
    %222 = arith.mulf %221, %220 : vector<8x256xf32>
    %cst_70 = arith.constant 5.000000e-01 : f32
    %223 = vector.broadcast %cst_70 : f32 to vector<8x256xf32>
    %224 = arith.addf %222, %223 : vector<8x256xf32>
    %225 = arith.select %32, %220, %224 : vector<8x256xi1>, vector<8x256xf32>
    %226 = vector.extract_strided_slice %225 {offsets = [0, 0], sizes = [8, 64], strides = [1, 1]} : vector<8x256xf32> to vector<8x64xf32>
    %227 = vector.extract_strided_slice %225 {offsets = [0, 64], sizes = [8, 64], strides = [1, 1]} : vector<8x256xf32> to vector<8x64xf32>
    %228 = vector.extract_strided_slice %225 {offsets = [0, 128], sizes = [8, 64], strides = [1, 1]} : vector<8x256xf32> to vector<8x64xf32>
    %229 = vector.extract_strided_slice %225 {offsets = [0, 192], sizes = [8, 64], strides = [1, 1]} : vector<8x256xf32> to vector<8x64xf32>
    %230 = arith.mulf %227, %209 : vector<8x64xf32>
    %231 = arith.mulf %226, %228 : vector<8x64xf32>
    %232 = arith.addf %230, %231 : vector<8x64xf32>
    %233 = math.tanh %232 : vector<8x64xf32>
    %234 = arith.mulf %229, %233 : vector<8x64xf32>
    %235 = arith.addf %212, %234 : vector<8x64xf32>
    %c6_71 = arith.constant 6 : index
    %c0_72 = arith.constant 0 : index
    %c0_73 = arith.constant 0 : index
    %236 = vector.load %arg14[%c6_71, %c0_72, %c0_73] : memref<8x8x256xf32, #tpu.memory_space<vmem>>, vector<1x8x256xf32>
    %237 = vector.shape_cast %236 : vector<1x8x256xf32> to vector<8x256xf32>
    %cst_74 = arith.constant dense<0.000000e+00> : vector<8x256xf32>
    %238 = tpu.matmul %234, %2, %cst_74 {dimension_numbers = #tpu.dot_dimension_numbers<[1], [0], [0], [1], [0, 0, 1, 1], [], []>} : vector<8x64xf32>, vector<64x256xf32>, vector<8x256xf32> -> vector<8x256xf32>
    %239 = arith.addf %237, %238 : vector<8x256xf32>
    %cst_75 = arith.constant 5.000000e-01 : f32
    %240 = vector.broadcast %cst_75 : f32 to vector<8x256xf32>
    %241 = arith.mulf %240, %239 : vector<8x256xf32>
    %242 = arith.select %32, %239, %241 : vector<8x256xi1>, vector<8x256xf32>
    %243 = math.tanh %242 : vector<8x256xf32>
    %cst_76 = arith.constant 5.000000e-01 : f32
    %244 = vector.broadcast %cst_76 : f32 to vector<8x256xf32>
    %245 = arith.mulf %244, %243 : vector<8x256xf32>
    %cst_77 = arith.constant 5.000000e-01 : f32
    %246 = vector.broadcast %cst_77 : f32 to vector<8x256xf32>
    %247 = arith.addf %245, %246 : vector<8x256xf32>
    %248 = arith.select %32, %243, %247 : vector<8x256xi1>, vector<8x256xf32>
    %249 = vector.extract_strided_slice %248 {offsets = [0, 0], sizes = [8, 64], strides = [1, 1]} : vector<8x256xf32> to vector<8x64xf32>
    %250 = vector.extract_strided_slice %248 {offsets = [0, 64], sizes = [8, 64], strides = [1, 1]} : vector<8x256xf32> to vector<8x64xf32>
    %251 = vector.extract_strided_slice %248 {offsets = [0, 128], sizes = [8, 64], strides = [1, 1]} : vector<8x256xf32> to vector<8x64xf32>
    %252 = vector.extract_strided_slice %248 {offsets = [0, 192], sizes = [8, 64], strides = [1, 1]} : vector<8x256xf32> to vector<8x64xf32>
    %253 = arith.mulf %250, %232 : vector<8x64xf32>
    %254 = arith.mulf %249, %251 : vector<8x64xf32>
    %255 = arith.addf %253, %254 : vector<8x64xf32>
    %256 = math.tanh %255 : vector<8x64xf32>
    %257 = arith.mulf %252, %256 : vector<8x64xf32>
    %258 = arith.addf %235, %257 : vector<8x64xf32>
    %c7_78 = arith.constant 7 : index
    %c0_79 = arith.constant 0 : index
    %c0_80 = arith.constant 0 : index
    %259 = vector.load %arg14[%c7_78, %c0_79, %c0_80] : memref<8x8x256xf32, #tpu.memory_space<vmem>>, vector<1x8x256xf32>
    %260 = vector.shape_cast %259 : vector<1x8x256xf32> to vector<8x256xf32>
    %cst_81 = arith.constant dense<0.000000e+00> : vector<8x256xf32>
    %261 = tpu.matmul %257, %2, %cst_81 {dimension_numbers = #tpu.dot_dimension_numbers<[1], [0], [0], [1], [0, 0, 1, 1], [], []>} : vector<8x64xf32>, vector<64x256xf32>, vector<8x256xf32> -> vector<8x256xf32>
    %262 = arith.addf %260, %261 : vector<8x256xf32>
    %cst_82 = arith.constant 5.000000e-01 : f32
    %263 = vector.broadcast %cst_82 : f32 to vector<8x256xf32>
    %264 = arith.mulf %263, %262 : vector<8x256xf32>
    %265 = arith.select %32, %262, %264 : vector<8x256xi1>, vector<8x256xf32>
    %266 = math.tanh %265 : vector<8x256xf32>
    %cst_83 = arith.constant 5.000000e-01 : f32
    %267 = vector.broadcast %cst_83 : f32 to vector<8x256xf32>
    %268 = arith.mulf %267, %266 : vector<8x256xf32>
    %cst_84 = arith.constant 5.000000e-01 : f32
    %269 = vector.broadcast %cst_84 : f32 to vector<8x256xf32>
    %270 = arith.addf %268, %269 : vector<8x256xf32>
    %271 = arith.select %32, %266, %270 : vector<8x256xi1>, vector<8x256xf32>
    %272 = vector.extract_strided_slice %271 {offsets = [0, 0], sizes = [8, 64], strides = [1, 1]} : vector<8x256xf32> to vector<8x64xf32>
    %273 = vector.extract_strided_slice %271 {offsets = [0, 64], sizes = [8, 64], strides = [1, 1]} : vector<8x256xf32> to vector<8x64xf32>
    %274 = vector.extract_strided_slice %271 {offsets = [0, 128], sizes = [8, 64], strides = [1, 1]} : vector<8x256xf32> to vector<8x64xf32>
    %275 = vector.extract_strided_slice %271 {offsets = [0, 192], sizes = [8, 64], strides = [1, 1]} : vector<8x256xf32> to vector<8x64xf32>
    %276 = arith.mulf %273, %255 : vector<8x64xf32>
    %277 = arith.mulf %272, %274 : vector<8x64xf32>
    %278 = arith.addf %276, %277 : vector<8x64xf32>
    %279 = math.tanh %278 : vector<8x64xf32>
    %280 = arith.mulf %275, %279 : vector<8x64xf32>
    %281 = arith.addf %258, %280 : vector<8x64xf32>
    %cst_85 = arith.constant 1.250000e-01 : f32
    %282 = vector.broadcast %cst_85 : f32 to vector<8x64xf32>
    %283 = arith.mulf %281, %282 : vector<8x64xf32>
    %c0_86 = arith.constant 0 : index
    %c0_87 = arith.constant 0 : index
    %c0_88 = arith.constant 0 : index
    %284 = vector.load %arg2[%c0_86, %c0_87, %c0_88] : memref<8x8x256xbf16, #tpu.memory_space<vmem>>, vector<8x8x256xbf16>
    %c0_89 = arith.constant 0 : index
    %c0_90 = arith.constant 0 : index
    %285 = vector.load %arg6[%c0_89, %c0_90] : memref<256x256xbf16, #tpu.memory_space<vmem>>, vector<256x256xbf16>
    %c0_91 = arith.constant 0 : index
    %c0_92 = arith.constant 0 : index
    %286 = vector.load %arg7[%c0_91, %c0_92] : memref<64x256xf32, #tpu.memory_space<vmem>>, vector<64x256xf32>
    %c0_93 = arith.constant 0 : index
    %c0_94 = arith.constant 0 : index
    %287 = vector.load %arg8[%c0_93, %c0_94] : memref<1x256xf32, #tpu.memory_space<vmem>>, vector<1x256xf32>
    %288 = vector.shape_cast %284 : vector<8x8x256xbf16> to vector<64x256xbf16>
    %cst_95 = arith.constant dense<0.000000e+00> : vector<64x256xf32>
    %289 = tpu.matmul %288, %285, %cst_95 {dimension_numbers = #tpu.dot_dimension_numbers<[1], [0], [0], [1], [0, 0, 1, 1], [], []>} : vector<64x256xbf16>, vector<256x256xbf16>, vector<64x256xf32> -> vector<64x256xf32>
    %290 = vector.broadcast %287 : vector<1x256xf32> to vector<64x256xf32>
    %291 = arith.addf %289, %290 : vector<64x256xf32>
    %292 = vector.shape_cast %291 : vector<64x256xf32> to vector<8x8x256xf32>
    %293 = tpu.iota {dimensions = array<i32: 1>} : vector<8x256xi32>
    %c64_i32_96 = arith.constant 64 : i32
    %c0_i32_97 = arith.constant 0 : i32
    %294 = arith.cmpi eq, %c64_i32_96, %c0_i32_97 : i32
    %c1_i32_98 = arith.constant 1 : i32
    %295 = arith.select %294, %c1_i32_98, %c64_i32_96 : i32
    %296 = vector.broadcast %295 : i32 to vector<8x256xi32>
    %297 = arith.remsi %293, %296 : vector<8x256xi32>
    %c0_i32_99 = arith.constant 0 : i32
    %298 = vector.broadcast %c0_i32_99 : i32 to vector<8x256xi32>
    %299 = arith.cmpi ne, %297, %298 : vector<8x256xi32>
    %c0_i32_100 = arith.constant 0 : i32
    %300 = vector.broadcast %c0_i32_100 : i32 to vector<8x256xi32>
    %301 = arith.cmpi slt, %297, %300 : vector<8x256xi32>
    %c0_i32_101 = arith.constant 0 : i32
    %302 = arith.cmpi slt, %295, %c0_i32_101 : i32
    %303 = vector.broadcast %302 : i1 to vector<8x256xi1>
    %304 = vector.broadcast %303 : vector<8x256xi1> to vector<8x256xi1>
    %305 = arith.xori %301, %304 : vector<8x256xi1>
    %306 = arith.andi %305, %299 : vector<8x256xi1>
    %307 = vector.broadcast %295 : i32 to vector<8x256xi32>
    %308 = arith.addi %297, %307 : vector<8x256xi32>
    %309 = arith.select %306, %308, %297 : vector<8x256xi1>, vector<8x256xi32>
    %c32_i32_102 = arith.constant 32 : i32
    %310 = vector.broadcast %c32_i32_102 : i32 to vector<8x256xi32>
    %311 = arith.cmpi slt, %309, %310 : vector<8x256xi32>
    %c128_i32_103 = arith.constant 128 : i32
    %312 = vector.broadcast %c128_i32_103 : i32 to vector<8x256xi32>
    %313 = arith.cmpi sge, %293, %312 : vector<8x256xi32>
    %c192_i32_104 = arith.constant 192 : i32
    %314 = vector.broadcast %c192_i32_104 : i32 to vector<8x256xi32>
    %315 = arith.cmpi slt, %293, %314 : vector<8x256xi32>
    %316 = arith.andi %313, %315 : vector<8x256xi1>
    %317 = vector.extract_strided_slice %292 {offsets = [0, 0, 0], sizes = [8, 1, 256], strides = [1, 1, 1]} : vector<8x8x256xf32> to vector<8x1x256xf32>
    %318 = vector.shape_cast %317 : vector<8x1x256xf32> to vector<8x256xf32>
    %319 = vector.extract_strided_slice %292 {offsets = [0, 7, 0], sizes = [8, 1, 256], strides = [1, 1, 1]} : vector<8x8x256xf32> to vector<8x1x256xf32>
    %320 = vector.shape_cast %319 : vector<8x1x256xf32> to vector<8x256xf32>
    %321 = arith.select %311, %318, %320 : vector<8x256xi1>, vector<8x256xf32>
    %c0_105 = arith.constant 0 : index
    %c0_106 = arith.constant 0 : index
    %c0_107 = arith.constant 0 : index
    %322 = vector.load %arg15[%c0_105, %c0_106, %c0_107] : memref<8x8x256xf32, #tpu.memory_space<vmem>>, vector<1x8x256xf32>
    %323 = vector.shape_cast %322 : vector<1x8x256xf32> to vector<8x256xf32>
    %324 = vector.shape_cast %321 : vector<8x256xf32> to vector<1x8x256xf32>
    tpu.vector_store %arg15[%c0_105, %c0_106, %c0_107], %324 {strides = array<i32>} : memref<8x8x256xf32, #tpu.memory_space<vmem>>, vector<1x8x256xf32>,
    %325 = vector.extract_strided_slice %292 {offsets = [0, 1, 0], sizes = [8, 1, 256], strides = [1, 1, 1]} : vector<8x8x256xf32> to vector<8x1x256xf32>
    %326 = vector.shape_cast %325 : vector<8x1x256xf32> to vector<8x256xf32>
    %327 = vector.extract_strided_slice %292 {offsets = [0, 6, 0], sizes = [8, 1, 256], strides = [1, 1, 1]} : vector<8x8x256xf32> to vector<8x1x256xf32>
    %328 = vector.shape_cast %327 : vector<8x1x256xf32> to vector<8x256xf32>
    %329 = arith.select %311, %326, %328 : vector<8x256xi1>, vector<8x256xf32>
    %c1_108 = arith.constant 1 : index
    %c0_109 = arith.constant 0 : index
    %c0_110 = arith.constant 0 : index
    %330 = vector.load %arg15[%c1_108, %c0_109, %c0_110] : memref<8x8x256xf32, #tpu.memory_space<vmem>>, vector<1x8x256xf32>
    %331 = vector.shape_cast %330 : vector<1x8x256xf32> to vector<8x256xf32>
    %332 = vector.shape_cast %329 : vector<8x256xf32> to vector<1x8x256xf32>
    tpu.vector_store %arg15[%c1_108, %c0_109, %c0_110], %332 {strides = array<i32>} : memref<8x8x256xf32, #tpu.memory_space<vmem>>, vector<1x8x256xf32>,
    %333 = vector.extract_strided_slice %292 {offsets = [0, 2, 0], sizes = [8, 1, 256], strides = [1, 1, 1]} : vector<8x8x256xf32> to vector<8x1x256xf32>
    %334 = vector.shape_cast %333 : vector<8x1x256xf32> to vector<8x256xf32>
    %335 = vector.extract_strided_slice %292 {offsets = [0, 5, 0], sizes = [8, 1, 256], strides = [1, 1, 1]} : vector<8x8x256xf32> to vector<8x1x256xf32>
    %336 = vector.shape_cast %335 : vector<8x1x256xf32> to vector<8x256xf32>
    %337 = arith.select %311, %334, %336 : vector<8x256xi1>, vector<8x256xf32>
    %c2_111 = arith.constant 2 : index
    %c0_112 = arith.constant 0 : index
    %c0_113 = arith.constant 0 : index
    %338 = vector.load %arg15[%c2_111, %c0_112, %c0_113] : memref<8x8x256xf32, #tpu.memory_space<vmem>>, vector<1x8x256xf32>
    %339 = vector.shape_cast %338 : vector<1x8x256xf32> to vector<8x256xf32>
    %340 = vector.shape_cast %337 : vector<8x256xf32> to vector<1x8x256xf32>
    tpu.vector_store %arg15[%c2_111, %c0_112, %c0_113], %340 {strides = array<i32>} : memref<8x8x256xf32, #tpu.memory_space<vmem>>, vector<1x8x256xf32>,
    %341 = vector.extract_strided_slice %292 {offsets = [0, 3, 0], sizes = [8, 1, 256], strides = [1, 1, 1]} : vector<8x8x256xf32> to vector<8x1x256xf32>
    %342 = vector.shape_cast %341 : vector<8x1x256xf32> to vector<8x256xf32>
    %343 = vector.extract_strided_slice %292 {offsets = [0, 4, 0], sizes = [8, 1, 256], strides = [1, 1, 1]} : vector<8x8x256xf32> to vector<8x1x256xf32>
    %344 = vector.shape_cast %343 : vector<8x1x256xf32> to vector<8x256xf32>
    %345 = arith.select %311, %342, %344 : vector<8x256xi1>, vector<8x256xf32>
    %c3_114 = arith.constant 3 : index
    %c0_115 = arith.constant 0 : index
    %c0_116 = arith.constant 0 : index
    %346 = vector.load %arg15[%c3_114, %c0_115, %c0_116] : memref<8x8x256xf32, #tpu.memory_space<vmem>>, vector<1x8x256xf32>
    %347 = vector.shape_cast %346 : vector<1x8x256xf32> to vector<8x256xf32>
    %348 = vector.shape_cast %345 : vector<8x256xf32> to vector<1x8x256xf32>
    tpu.vector_store %arg15[%c3_114, %c0_115, %c0_116], %348 {strides = array<i32>} : memref<8x8x256xf32, #tpu.memory_space<vmem>>, vector<1x8x256xf32>,
    %349 = vector.extract_strided_slice %292 {offsets = [0, 4, 0], sizes = [8, 1, 256], strides = [1, 1, 1]} : vector<8x8x256xf32> to vector<8x1x256xf32>
    %350 = vector.shape_cast %349 : vector<8x1x256xf32> to vector<8x256xf32>
    %351 = vector.extract_strided_slice %292 {offsets = [0, 3, 0], sizes = [8, 1, 256], strides = [1, 1, 1]} : vector<8x8x256xf32> to vector<8x1x256xf32>
    %352 = vector.shape_cast %351 : vector<8x1x256xf32> to vector<8x256xf32>
    %353 = arith.select %311, %350, %352 : vector<8x256xi1>, vector<8x256xf32>
    %c4_117 = arith.constant 4 : index
    %c0_118 = arith.constant 0 : index
    %c0_119 = arith.constant 0 : index
    %354 = vector.load %arg15[%c4_117, %c0_118, %c0_119] : memref<8x8x256xf32, #tpu.memory_space<vmem>>, vector<1x8x256xf32>
    %355 = vector.shape_cast %354 : vector<1x8x256xf32> to vector<8x256xf32>
    %356 = vector.shape_cast %353 : vector<8x256xf32> to vector<1x8x256xf32>
    tpu.vector_store %arg15[%c4_117, %c0_118, %c0_119], %356 {strides = array<i32>} : memref<8x8x256xf32, #tpu.memory_space<vmem>>, vector<1x8x256xf32>,
    %357 = vector.extract_strided_slice %292 {offsets = [0, 5, 0], sizes = [8, 1, 256], strides = [1, 1, 1]} : vector<8x8x256xf32> to vector<8x1x256xf32>
    %358 = vector.shape_cast %357 : vector<8x1x256xf32> to vector<8x256xf32>
    %359 = vector.extract_strided_slice %292 {offsets = [0, 2, 0], sizes = [8, 1, 256], strides = [1, 1, 1]} : vector<8x8x256xf32> to vector<8x1x256xf32>
    %360 = vector.shape_cast %359 : vector<8x1x256xf32> to vector<8x256xf32>
    %361 = arith.select %311, %358, %360 : vector<8x256xi1>, vector<8x256xf32>
    %c5_120 = arith.constant 5 : index
    %c0_121 = arith.constant 0 : index
    %c0_122 = arith.constant 0 : index
    %362 = vector.load %arg15[%c5_120, %c0_121, %c0_122] : memref<8x8x256xf32, #tpu.memory_space<vmem>>, vector<1x8x256xf32>
    %363 = vector.shape_cast %362 : vector<1x8x256xf32> to vector<8x256xf32>
    %364 = vector.shape_cast %361 : vector<8x256xf32> to vector<1x8x256xf32>
    tpu.vector_store %arg15[%c5_120, %c0_121, %c0_122], %364 {strides = array<i32>} : memref<8x8x256xf32, #tpu.memory_space<vmem>>, vector<1x8x256xf32>,
    %365 = vector.extract_strided_slice %292 {offsets = [0, 6, 0], sizes = [8, 1, 256], strides = [1, 1, 1]} : vector<8x8x256xf32> to vector<8x1x256xf32>
    %366 = vector.shape_cast %365 : vector<8x1x256xf32> to vector<8x256xf32>
    %367 = vector.extract_strided_slice %292 {offsets = [0, 1, 0], sizes = [8, 1, 256], strides = [1, 1, 1]} : vector<8x8x256xf32> to vector<8x1x256xf32>
    %368 = vector.shape_cast %367 : vector<8x1x256xf32> to vector<8x256xf32>
    %369 = arith.select %311, %366, %368 : vector<8x256xi1>, vector<8x256xf32>
    %c6_123 = arith.constant 6 : index
    %c0_124 = arith.constant 0 : index
    %c0_125 = arith.constant 0 : index
    %370 = vector.load %arg15[%c6_123, %c0_124, %c0_125] : memref<8x8x256xf32, #tpu.memory_space<vmem>>, vector<1x8x256xf32>
    %371 = vector.shape_cast %370 : vector<1x8x256xf32> to vector<8x256xf32>
    %372 = vector.shape_cast %369 : vector<8x256xf32> to vector<1x8x256xf32>
    tpu.vector_store %arg15[%c6_123, %c0_124, %c0_125], %372 {strides = array<i32>} : memref<8x8x256xf32, #tpu.memory_space<vmem>>, vector<1x8x256xf32>,
    %373 = vector.extract_strided_slice %292 {offsets = [0, 7, 0], sizes = [8, 1, 256], strides = [1, 1, 1]} : vector<8x8x256xf32> to vector<8x1x256xf32>
    %374 = vector.shape_cast %373 : vector<8x1x256xf32> to vector<8x256xf32>
    %375 = vector.extract_strided_slice %292 {offsets = [0, 0, 0], sizes = [8, 1, 256], strides = [1, 1, 1]} : vector<8x8x256xf32> to vector<8x1x256xf32>
    %376 = vector.shape_cast %375 : vector<8x1x256xf32> to vector<8x256xf32>
    %377 = arith.select %311, %374, %376 : vector<8x256xi1>, vector<8x256xf32>
    %c7_126 = arith.constant 7 : index
    %c0_127 = arith.constant 0 : index
    %c0_128 = arith.constant 0 : index
    %378 = vector.load %arg15[%c7_126, %c0_127, %c0_128] : memref<8x8x256xf32, #tpu.memory_space<vmem>>, vector<1x8x256xf32>
    %379 = vector.shape_cast %378 : vector<1x8x256xf32> to vector<8x256xf32>
    %380 = vector.shape_cast %377 : vector<8x256xf32> to vector<1x8x256xf32>
    tpu.vector_store %arg15[%c7_126, %c0_127, %c0_128], %380 {strides = array<i32>} : memref<8x8x256xf32, #tpu.memory_space<vmem>>, vector<1x8x256xf32>,
    %cst_129 = arith.constant 0.000000e+00 : f32
    %381 = vector.broadcast %cst_129 : f32 to vector<8x64xf32>
    %c0_130 = arith.constant 0 : index
    %c0_131 = arith.constant 0 : index
    %c0_132 = arith.constant 0 : index
    %382 = vector.load %arg15[%c0_130, %c0_131, %c0_132] : memref<8x8x256xf32, #tpu.memory_space<vmem>>, vector<1x8x256xf32>
    %383 = vector.shape_cast %382 : vector<1x8x256xf32> to vector<8x256xf32>
    %cst_133 = arith.constant dense<0.000000e+00> : vector<8x256xf32>
    %384 = tpu.matmul %381, %286, %cst_133 {dimension_numbers = #tpu.dot_dimension_numbers<[1], [0], [0], [1], [0, 0, 1, 1], [], []>} : vector<8x64xf32>, vector<64x256xf32>, vector<8x256xf32> -> vector<8x256xf32>
    %385 = arith.addf %383, %384 : vector<8x256xf32>
    %cst_134 = arith.constant 5.000000e-01 : f32
    %386 = vector.broadcast %cst_134 : f32 to vector<8x256xf32>
    %387 = arith.mulf %386, %385 : vector<8x256xf32>
    %388 = arith.select %316, %385, %387 : vector<8x256xi1>, vector<8x256xf32>
    %389 = math.tanh %388 : vector<8x256xf32>
    %cst_135 = arith.constant 5.000000e-01 : f32
    %390 = vector.broadcast %cst_135 : f32 to vector<8x256xf32>
    %391 = arith.mulf %390, %389 : vector<8x256xf32>
    %cst_136 = arith.constant 5.000000e-01 : f32
    %392 = vector.broadcast %cst_136 : f32 to vector<8x256xf32>
    %393 = arith.addf %391, %392 : vector<8x256xf32>
    %394 = arith.select %316, %389, %393 : vector<8x256xi1>, vector<8x256xf32>
    %395 = vector.extract_strided_slice %394 {offsets = [0, 0], sizes = [8, 64], strides = [1, 1]} : vector<8x256xf32> to vector<8x64xf32>
    %396 = vector.extract_strided_slice %394 {offsets = [0, 64], sizes = [8, 64], strides = [1, 1]} : vector<8x256xf32> to vector<8x64xf32>
    %397 = vector.extract_strided_slice %394 {offsets = [0, 128], sizes = [8, 64], strides = [1, 1]} : vector<8x256xf32> to vector<8x64xf32>
    %398 = vector.extract_strided_slice %394 {offsets = [0, 192], sizes = [8, 64], strides = [1, 1]} : vector<8x256xf32> to vector<8x64xf32>
    %399 = arith.mulf %396, %381 : vector<8x64xf32>
    %400 = arith.mulf %395, %397 : vector<8x64xf32>
    %401 = arith.addf %399, %400 : vector<8x64xf32>
    %402 = math.tanh %401 : vector<8x64xf32>
    %403 = arith.mulf %398, %402 : vector<8x64xf32>
    %404 = arith.addf %381, %403 : vector<8x64xf32>
    %c1_137 = arith.constant 1 : index
    %c0_138 = arith.constant 0 : index
    %c0_139 = arith.constant 0 : index
    %405 = vector.load %arg15[%c1_137, %c0_138, %c0_139] : memref<8x8x256xf32, #tpu.memory_space<vmem>>, vector<1x8x256xf32>
    %406 = vector.shape_cast %405 : vector<1x8x256xf32> to vector<8x256xf32>
    %cst_140 = arith.constant dense<0.000000e+00> : vector<8x256xf32>
    %407 = tpu.matmul %403, %286, %cst_140 {dimension_numbers = #tpu.dot_dimension_numbers<[1], [0], [0], [1], [0, 0, 1, 1], [], []>} : vector<8x64xf32>, vector<64x256xf32>, vector<8x256xf32> -> vector<8x256xf32>
    %408 = arith.addf %406, %407 : vector<8x256xf32>
    %cst_141 = arith.constant 5.000000e-01 : f32
    %409 = vector.broadcast %cst_141 : f32 to vector<8x256xf32>
    %410 = arith.mulf %409, %408 : vector<8x256xf32>
    %411 = arith.select %316, %408, %410 : vector<8x256xi1>, vector<8x256xf32>
    %412 = math.tanh %411 : vector<8x256xf32>
    %cst_142 = arith.constant 5.000000e-01 : f32
    %413 = vector.broadcast %cst_142 : f32 to vector<8x256xf32>
    %414 = arith.mulf %413, %412 : vector<8x256xf32>
    %cst_143 = arith.constant 5.000000e-01 : f32
    %415 = vector.broadcast %cst_143 : f32 to vector<8x256xf32>
    %416 = arith.addf %414, %415 : vector<8x256xf32>
    %417 = arith.select %316, %412, %416 : vector<8x256xi1>, vector<8x256xf32>
    %418 = vector.extract_strided_slice %417 {offsets = [0, 0], sizes = [8, 64], strides = [1, 1]} : vector<8x256xf32> to vector<8x64xf32>
    %419 = vector.extract_strided_slice %417 {offsets = [0, 64], sizes = [8, 64], strides = [1, 1]} : vector<8x256xf32> to vector<8x64xf32>
    %420 = vector.extract_strided_slice %417 {offsets = [0, 128], sizes = [8, 64], strides = [1, 1]} : vector<8x256xf32> to vector<8x64xf32>
    %421 = vector.extract_strided_slice %417 {offsets = [0, 192], sizes = [8, 64], strides = [1, 1]} : vector<8x256xf32> to vector<8x64xf32>
    %422 = arith.mulf %419, %401 : vector<8x64xf32>
    %423 = arith.mulf %418, %420 : vector<8x64xf32>
    %424 = arith.addf %422, %423 : vector<8x64xf32>
    %425 = math.tanh %424 : vector<8x64xf32>
    %426 = arith.mulf %421, %425 : vector<8x64xf32>
    %427 = arith.addf %404, %426 : vector<8x64xf32>
    %c2_144 = arith.constant 2 : index
    %c0_145 = arith.constant 0 : index
    %c0_146 = arith.constant 0 : index
    %428 = vector.load %arg15[%c2_144, %c0_145, %c0_146] : memref<8x8x256xf32, #tpu.memory_space<vmem>>, vector<1x8x256xf32>
    %429 = vector.shape_cast %428 : vector<1x8x256xf32> to vector<8x256xf32>
    %cst_147 = arith.constant dense<0.000000e+00> : vector<8x256xf32>
    %430 = tpu.matmul %426, %286, %cst_147 {dimension_numbers = #tpu.dot_dimension_numbers<[1], [0], [0], [1], [0, 0, 1, 1], [], []>} : vector<8x64xf32>, vector<64x256xf32>, vector<8x256xf32> -> vector<8x256xf32>
    %431 = arith.addf %429, %430 : vector<8x256xf32>
    %cst_148 = arith.constant 5.000000e-01 : f32
    %432 = vector.broadcast %cst_148 : f32 to vector<8x256xf32>
    %433 = arith.mulf %432, %431 : vector<8x256xf32>
    %434 = arith.select %316, %431, %433 : vector<8x256xi1>, vector<8x256xf32>
    %435 = math.tanh %434 : vector<8x256xf32>
    %cst_149 = arith.constant 5.000000e-01 : f32
    %436 = vector.broadcast %cst_149 : f32 to vector<8x256xf32>
    %437 = arith.mulf %436, %435 : vector<8x256xf32>
    %cst_150 = arith.constant 5.000000e-01 : f32
    %438 = vector.broadcast %cst_150 : f32 to vector<8x256xf32>
    %439 = arith.addf %437, %438 : vector<8x256xf32>
    %440 = arith.select %316, %435, %439 : vector<8x256xi1>, vector<8x256xf32>
    %441 = vector.extract_strided_slice %440 {offsets = [0, 0], sizes = [8, 64], strides = [1, 1]} : vector<8x256xf32> to vector<8x64xf32>
    %442 = vector.extract_strided_slice %440 {offsets = [0, 64], sizes = [8, 64], strides = [1, 1]} : vector<8x256xf32> to vector<8x64xf32>
    %443 = vector.extract_strided_slice %440 {offsets = [0, 128], sizes = [8, 64], strides = [1, 1]} : vector<8x256xf32> to vector<8x64xf32>
    %444 = vector.extract_strided_slice %440 {offsets = [0, 192], sizes = [8, 64], strides = [1, 1]} : vector<8x256xf32> to vector<8x64xf32>
    %445 = arith.mulf %442, %424 : vector<8x64xf32>
    %446 = arith.mulf %441, %443 : vector<8x64xf32>
    %447 = arith.addf %445, %446 : vector<8x64xf32>
    %448 = math.tanh %447 : vector<8x64xf32>
    %449 = arith.mulf %444, %448 : vector<8x64xf32>
    %450 = arith.addf %427, %449 : vector<8x64xf32>
    %c3_151 = arith.constant 3 : index
    %c0_152 = arith.constant 0 : index
    %c0_153 = arith.constant 0 : index
    %451 = vector.load %arg15[%c3_151, %c0_152, %c0_153] : memref<8x8x256xf32, #tpu.memory_space<vmem>>, vector<1x8x256xf32>
    %452 = vector.shape_cast %451 : vector<1x8x256xf32> to vector<8x256xf32>
    %cst_154 = arith.constant dense<0.000000e+00> : vector<8x256xf32>
    %453 = tpu.matmul %449, %286, %cst_154 {dimension_numbers = #tpu.dot_dimension_numbers<[1], [0], [0], [1], [0, 0, 1, 1], [], []>} : vector<8x64xf32>, vector<64x256xf32>, vector<8x256xf32> -> vector<8x256xf32>
    %454 = arith.addf %452, %453 : vector<8x256xf32>
    %cst_155 = arith.constant 5.000000e-01 : f32
    %455 = vector.broadcast %cst_155 : f32 to vector<8x256xf32>
    %456 = arith.mulf %455, %454 : vector<8x256xf32>
    %457 = arith.select %316, %454, %456 : vector<8x256xi1>, vector<8x256xf32>
    %458 = math.tanh %457 : vector<8x256xf32>
    %cst_156 = arith.constant 5.000000e-01 : f32
    %459 = vector.broadcast %cst_156 : f32 to vector<8x256xf32>
    %460 = arith.mulf %459, %458 : vector<8x256xf32>
    %cst_157 = arith.constant 5.000000e-01 : f32
    %461 = vector.broadcast %cst_157 : f32 to vector<8x256xf32>
    %462 = arith.addf %460, %461 : vector<8x256xf32>
    %463 = arith.select %316, %458, %462 : vector<8x256xi1>, vector<8x256xf32>
    %464 = vector.extract_strided_slice %463 {offsets = [0, 0], sizes = [8, 64], strides = [1, 1]} : vector<8x256xf32> to vector<8x64xf32>
    %465 = vector.extract_strided_slice %463 {offsets = [0, 64], sizes = [8, 64], strides = [1, 1]} : vector<8x256xf32> to vector<8x64xf32>
    %466 = vector.extract_strided_slice %463 {offsets = [0, 128], sizes = [8, 64], strides = [1, 1]} : vector<8x256xf32> to vector<8x64xf32>
    %467 = vector.extract_strided_slice %463 {offsets = [0, 192], sizes = [8, 64], strides = [1, 1]} : vector<8x256xf32> to vector<8x64xf32>
    %468 = arith.mulf %465, %447 : vector<8x64xf32>
    %469 = arith.mulf %464, %466 : vector<8x64xf32>
    %470 = arith.addf %468, %469 : vector<8x64xf32>
    %471 = math.tanh %470 : vector<8x64xf32>
    %472 = arith.mulf %467, %471 : vector<8x64xf32>
    %473 = arith.addf %450, %472 : vector<8x64xf32>
    %c4_158 = arith.constant 4 : index
    %c0_159 = arith.constant 0 : index
    %c0_160 = arith.constant 0 : index
    %474 = vector.load %arg15[%c4_158, %c0_159, %c0_160] : memref<8x8x256xf32, #tpu.memory_space<vmem>>, vector<1x8x256xf32>
    %475 = vector.shape_cast %474 : vector<1x8x256xf32> to vector<8x256xf32>
    %cst_161 = arith.constant dense<0.000000e+00> : vector<8x256xf32>
    %476 = tpu.matmul %472, %286, %cst_161 {dimension_numbers = #tpu.dot_dimension_numbers<[1], [0], [0], [1], [0, 0, 1, 1], [], []>} : vector<8x64xf32>, vector<64x256xf32>, vector<8x256xf32> -> vector<8x256xf32>
    %477 = arith.addf %475, %476 : vector<8x256xf32>
    %cst_162 = arith.constant 5.000000e-01 : f32
    %478 = vector.broadcast %cst_162 : f32 to vector<8x256xf32>
    %479 = arith.mulf %478, %477 : vector<8x256xf32>
    %480 = arith.select %316, %477, %479 : vector<8x256xi1>, vector<8x256xf32>
    %481 = math.tanh %480 : vector<8x256xf32>
    %cst_163 = arith.constant 5.000000e-01 : f32
    %482 = vector.broadcast %cst_163 : f32 to vector<8x256xf32>
    %483 = arith.mulf %482, %481 : vector<8x256xf32>
    %cst_164 = arith.constant 5.000000e-01 : f32
    %484 = vector.broadcast %cst_164 : f32 to vector<8x256xf32>
    %485 = arith.addf %483, %484 : vector<8x256xf32>
    %486 = arith.select %316, %481, %485 : vector<8x256xi1>, vector<8x256xf32>
    %487 = vector.extract_strided_slice %486 {offsets = [0, 0], sizes = [8, 64], strides = [1, 1]} : vector<8x256xf32> to vector<8x64xf32>
    %488 = vector.extract_strided_slice %486 {offsets = [0, 64], sizes = [8, 64], strides = [1, 1]} : vector<8x256xf32> to vector<8x64xf32>
    %489 = vector.extract_strided_slice %486 {offsets = [0, 128], sizes = [8, 64], strides = [1, 1]} : vector<8x256xf32> to vector<8x64xf32>
    %490 = vector.extract_strided_slice %486 {offsets = [0, 192], sizes = [8, 64], strides = [1, 1]} : vector<8x256xf32> to vector<8x64xf32>
    %491 = arith.mulf %488, %470 : vector<8x64xf32>
    %492 = arith.mulf %487, %489 : vector<8x64xf32>
    %493 = arith.addf %491, %492 : vector<8x64xf32>
    %494 = math.tanh %493 : vector<8x64xf32>
    %495 = arith.mulf %490, %494 : vector<8x64xf32>
    %496 = arith.addf %473, %495 : vector<8x64xf32>
    %c5_165 = arith.constant 5 : index
    %c0_166 = arith.constant 0 : index
    %c0_167 = arith.constant 0 : index
    %497 = vector.load %arg15[%c5_165, %c0_166, %c0_167] : memref<8x8x256xf32, #tpu.memory_space<vmem>>, vector<1x8x256xf32>
    %498 = vector.shape_cast %497 : vector<1x8x256xf32> to vector<8x256xf32>
    %cst_168 = arith.constant dense<0.000000e+00> : vector<8x256xf32>
    %499 = tpu.matmul %495, %286, %cst_168 {dimension_numbers = #tpu.dot_dimension_numbers<[1], [0], [0], [1], [0, 0, 1, 1], [], []>} : vector<8x64xf32>, vector<64x256xf32>, vector<8x256xf32> -> vector<8x256xf32>
    %500 = arith.addf %498, %499 : vector<8x256xf32>
    %cst_169 = arith.constant 5.000000e-01 : f32
    %501 = vector.broadcast %cst_169 : f32 to vector<8x256xf32>
    %502 = arith.mulf %501, %500 : vector<8x256xf32>
    %503 = arith.select %316, %500, %502 : vector<8x256xi1>, vector<8x256xf32>
    %504 = math.tanh %503 : vector<8x256xf32>
    %cst_170 = arith.constant 5.000000e-01 : f32
    %505 = vector.broadcast %cst_170 : f32 to vector<8x256xf32>
    %506 = arith.mulf %505, %504 : vector<8x256xf32>
    %cst_171 = arith.constant 5.000000e-01 : f32
    %507 = vector.broadcast %cst_171 : f32 to vector<8x256xf32>
    %508 = arith.addf %506, %507 : vector<8x256xf32>
    %509 = arith.select %316, %504, %508 : vector<8x256xi1>, vector<8x256xf32>
    %510 = vector.extract_strided_slice %509 {offsets = [0, 0], sizes = [8, 64], strides = [1, 1]} : vector<8x256xf32> to vector<8x64xf32>
    %511 = vector.extract_strided_slice %509 {offsets = [0, 64], sizes = [8, 64], strides = [1, 1]} : vector<8x256xf32> to vector<8x64xf32>
    %512 = vector.extract_strided_slice %509 {offsets = [0, 128], sizes = [8, 64], strides = [1, 1]} : vector<8x256xf32> to vector<8x64xf32>
    %513 = vector.extract_strided_slice %509 {offsets = [0, 192], sizes = [8, 64], strides = [1, 1]} : vector<8x256xf32> to vector<8x64xf32>
    %514 = arith.mulf %511, %493 : vector<8x64xf32>
    %515 = arith.mulf %510, %512 : vector<8x64xf32>
    %516 = arith.addf %514, %515 : vector<8x64xf32>
    %517 = math.tanh %516 : vector<8x64xf32>
    %518 = arith.mulf %513, %517 : vector<8x64xf32>
    %519 = arith.addf %496, %518 : vector<8x64xf32>
    %c6_172 = arith.constant 6 : index
    %c0_173 = arith.constant 0 : index
    %c0_174 = arith.constant 0 : index
    %520 = vector.load %arg15[%c6_172, %c0_173, %c0_174] : memref<8x8x256xf32, #tpu.memory_space<vmem>>, vector<1x8x256xf32>
    %521 = vector.shape_cast %520 : vector<1x8x256xf32> to vector<8x256xf32>
    %cst_175 = arith.constant dense<0.000000e+00> : vector<8x256xf32>
    %522 = tpu.matmul %518, %286, %cst_175 {dimension_numbers = #tpu.dot_dimension_numbers<[1], [0], [0], [1], [0, 0, 1, 1], [], []>} : vector<8x64xf32>, vector<64x256xf32>, vector<8x256xf32> -> vector<8x256xf32>
    %523 = arith.addf %521, %522 : vector<8x256xf32>
    %cst_176 = arith.constant 5.000000e-01 : f32
    %524 = vector.broadcast %cst_176 : f32 to vector<8x256xf32>
    %525 = arith.mulf %524, %523 : vector<8x256xf32>
    %526 = arith.select %316, %523, %525 : vector<8x256xi1>, vector<8x256xf32>
    %527 = math.tanh %526 : vector<8x256xf32>
    %cst_177 = arith.constant 5.000000e-01 : f32
    %528 = vector.broadcast %cst_177 : f32 to vector<8x256xf32>
    %529 = arith.mulf %528, %527 : vector<8x256xf32>
    %cst_178 = arith.constant 5.000000e-01 : f32
    %530 = vector.broadcast %cst_178 : f32 to vector<8x256xf32>
    %531 = arith.addf %529, %530 : vector<8x256xf32>
    %532 = arith.select %316, %527, %531 : vector<8x256xi1>, vector<8x256xf32>
    %533 = vector.extract_strided_slice %532 {offsets = [0, 0], sizes = [8, 64], strides = [1, 1]} : vector<8x256xf32> to vector<8x64xf32>
    %534 = vector.extract_strided_slice %532 {offsets = [0, 64], sizes = [8, 64], strides = [1, 1]} : vector<8x256xf32> to vector<8x64xf32>
    %535 = vector.extract_strided_slice %532 {offsets = [0, 128], sizes = [8, 64], strides = [1, 1]} : vector<8x256xf32> to vector<8x64xf32>
    %536 = vector.extract_strided_slice %532 {offsets = [0, 192], sizes = [8, 64], strides = [1, 1]} : vector<8x256xf32> to vector<8x64xf32>
    %537 = arith.mulf %534, %516 : vector<8x64xf32>
    %538 = arith.mulf %533, %535 : vector<8x64xf32>
    %539 = arith.addf %537, %538 : vector<8x64xf32>
    %540 = math.tanh %539 : vector<8x64xf32>
    %541 = arith.mulf %536, %540 : vector<8x64xf32>
    %542 = arith.addf %519, %541 : vector<8x64xf32>
    %c7_179 = arith.constant 7 : index
    %c0_180 = arith.constant 0 : index
    %c0_181 = arith.constant 0 : index
    %543 = vector.load %arg15[%c7_179, %c0_180, %c0_181] : memref<8x8x256xf32, #tpu.memory_space<vmem>>, vector<1x8x256xf32>
    %544 = vector.shape_cast %543 : vector<1x8x256xf32> to vector<8x256xf32>
    %cst_182 = arith.constant dense<0.000000e+00> : vector<8x256xf32>
    %545 = tpu.matmul %541, %286, %cst_182 {dimension_numbers = #tpu.dot_dimension_numbers<[1], [0], [0], [1], [0, 0, 1, 1], [], []>} : vector<8x64xf32>, vector<64x256xf32>, vector<8x256xf32> -> vector<8x256xf32>
    %546 = arith.addf %544, %545 : vector<8x256xf32>
    %cst_183 = arith.constant 5.000000e-01 : f32
    %547 = vector.broadcast %cst_183 : f32 to vector<8x256xf32>
    %548 = arith.mulf %547, %546 : vector<8x256xf32>
    %549 = arith.select %316, %546, %548 : vector<8x256xi1>, vector<8x256xf32>
    %550 = math.tanh %549 : vector<8x256xf32>
    %cst_184 = arith.constant 5.000000e-01 : f32
    %551 = vector.broadcast %cst_184 : f32 to vector<8x256xf32>
    %552 = arith.mulf %551, %550 : vector<8x256xf32>
    %cst_185 = arith.constant 5.000000e-01 : f32
    %553 = vector.broadcast %cst_185 : f32 to vector<8x256xf32>
    %554 = arith.addf %552, %553 : vector<8x256xf32>
    %555 = arith.select %316, %550, %554 : vector<8x256xi1>, vector<8x256xf32>
    %556 = vector.extract_strided_slice %555 {offsets = [0, 0], sizes = [8, 64], strides = [1, 1]} : vector<8x256xf32> to vector<8x64xf32>
    %557 = vector.extract_strided_slice %555 {offsets = [0, 64], sizes = [8, 64], strides = [1, 1]} : vector<8x256xf32> to vector<8x64xf32>
    %558 = vector.extract_strided_slice %555 {offsets = [0, 128], sizes = [8, 64], strides = [1, 1]} : vector<8x256xf32> to vector<8x64xf32>
    %559 = vector.extract_strided_slice %555 {offsets = [0, 192], sizes = [8, 64], strides = [1, 1]} : vector<8x256xf32> to vector<8x64xf32>
    %560 = arith.mulf %557, %539 : vector<8x64xf32>
    %561 = arith.mulf %556, %558 : vector<8x64xf32>
    %562 = arith.addf %560, %561 : vector<8x64xf32>
    %563 = math.tanh %562 : vector<8x64xf32>
    %564 = arith.mulf %559, %563 : vector<8x64xf32>
    %565 = arith.addf %542, %564 : vector<8x64xf32>
    %cst_186 = arith.constant 1.250000e-01 : f32
    %566 = vector.broadcast %cst_186 : f32 to vector<8x64xf32>
    %567 = arith.mulf %565, %566 : vector<8x64xf32>
    %568 = arith.subf %283, %567 : vector<8x64xf32>
    %569 = tpu.concatenate %283, %567, %568 in 1 : vector<8x64xf32>, vector<8x64xf32>, vector<8x64xf32> -> vector<8x192xf32>
    %c0_187 = arith.constant 0 : index
    %c0_188 = arith.constant 0 : index
    %570 = vector.load %arg9[%c0_187, %c0_188] : memref<192x192xf32, #tpu.memory_space<vmem>>, vector<192x192xf32>
    %cst_189 = arith.constant dense<0.000000e+00> : vector<8x192xf32>
    %571 = tpu.matmul %569, %570, %cst_189 {dimension_numbers = #tpu.dot_dimension_numbers<[1], [0], [0], [1], [0, 0, 1, 1], [], []>} : vector<8x192xf32>, vector<192x192xf32>, vector<8x192xf32> -> vector<8x192xf32>
    %c0_190 = arith.constant 0 : index
    %c0_191 = arith.constant 0 : index
    %572 = vector.load %arg10[%c0_190, %c0_191] : memref<1x192xf32, #tpu.memory_space<vmem>>, vector<1x192xf32>
    %573 = vector.broadcast %572 : vector<1x192xf32> to vector<8x192xf32>
    %574 = arith.addf %571, %573 : vector<8x192xf32>
    %cst_192 = arith.constant 0.000000e+00 : f32
    %575 = vector.broadcast %cst_192 : f32 to vector<8x192xf32>
    %576 = arith.maximumf %574, %575 : vector<8x192xf32>
    %c0_193 = arith.constant 0 : index
    %c0_194 = arith.constant 0 : index
    %577 = vector.load %arg11[%c0_193, %c0_194] : memref<192x1xf32, #tpu.memory_space<vmem>>, vector<192x1xf32>
    %cst_195 = arith.constant dense<0.000000e+00> : vector<8x1xf32>
    %578 = tpu.matmul %576, %577, %cst_195 {dimension_numbers = #tpu.dot_dimension_numbers<[1], [0], [0], [1], [0, 0, 1, 1], [], []>} : vector<8x192xf32>, vector<192x1xf32>, vector<8x1xf32> -> vector<8x1xf32>
    %c0_196 = arith.constant 0 : index
    %c0_197 = arith.constant 0 : index
    %579 = vector.load %arg12[%c0_196, %c0_197] : memref<1x1xf32, #tpu.memory_space<vmem>>, vector<1x1xf32>
    %580 = vector.broadcast %579 : vector<1x1xf32> to vector<8x1xf32>
    %581 = arith.addf %578, %580 : vector<8x1xf32>
    %582 = arith.negf %581 : vector<8x1xf32>
    %583 = math.exp %582 : vector<8x1xf32>
    %cst_198 = arith.constant 1.000000e+00 : f32
    %584 = vector.broadcast %cst_198 : f32 to vector<8x1xf32>
    %585 = arith.addf %584, %583 : vector<8x1xf32>
    %586 = arith.divf %584, %585 : vector<8x1xf32>
    %c0_199 = arith.constant 0 : index
    %c0_200 = arith.constant 0 : index
    %587 = vector.load %arg13[%c0_199, %c0_200] : memref<8x1xf32, #tpu.memory_space<vmem>>, vector<8x1xf32>
    tpu.vector_store %arg13[%c0_199, %c0_200], %586 {strides = array<i32>} : memref<8x1xf32, #tpu.memory_space<vmem>>, vector<8x1xf32>,
    return
  }
  func.func @transform_0(%arg0: i32) -> (i32, i32, i32) {
    %c0_i32 = arith.constant 0 : i32
    %c0_i32_0 = arith.constant 0 : i32
    %c0_i32_1 = arith.constant 0 : i32
    return %arg0, %c0_i32, %c0_i32_0 : i32, i32, i32
  }
  func.func @transform_1(%arg0: i32) -> (i32, i32, i32) {
    %c0_i32 = arith.constant 0 : i32
    %c0_i32_0 = arith.constant 0 : i32
    %c0_i32_1 = arith.constant 0 : i32
    return %arg0, %c0_i32, %c0_i32_0 : i32, i32, i32
  }
  func.func @transform_2(%arg0: i32) -> (i32, i32) {
    %c0_i32 = arith.constant 0 : i32
    %c0_i32_0 = arith.constant 0 : i32
    %c0_i32_1 = arith.constant 0 : i32
    return %c0_i32, %c0_i32_0 : i32, i32
  }
  func.func @transform_3(%arg0: i32) -> (i32, i32) {
    %c0_i32 = arith.constant 0 : i32
    %c0_i32_0 = arith.constant 0 : i32
    %c0_i32_1 = arith.constant 0 : i32
    return %c0_i32, %c0_i32_0 : i32, i32
  }
  func.func @transform_4(%arg0: i32) -> (i32, i32) {
    %c0_i32 = arith.constant 0 : i32
    %c0_i32_0 = arith.constant 0 : i32
    %c0_i32_1 = arith.constant 0 : i32
    return %c0_i32, %c0_i32_0 : i32, i32
  }
  func.func @transform_5(%arg0: i32) -> (i32, i32) {
    %c0_i32 = arith.constant 0 : i32
    %c0_i32_0 = arith.constant 0 : i32
    %c0_i32_1 = arith.constant 0 : i32
    return %c0_i32, %c0_i32_0 : i32, i32
  }
  func.func @transform_6(%arg0: i32) -> (i32, i32) {
    %c0_i32 = arith.constant 0 : i32
    %c0_i32_0 = arith.constant 0 : i32
    %c0_i32_1 = arith.constant 0 : i32
    return %c0_i32, %c0_i32_0 : i32, i32
  }
  func.func @transform_7(%arg0: i32) -> (i32, i32) {
    %c0_i32 = arith.constant 0 : i32
    %c0_i32_0 = arith.constant 0 : i32
    %c0_i32_1 = arith.constant 0 : i32
    return %c0_i32, %c0_i32_0 : i32, i32
  }
  func.func @transform_8(%arg0: i32) -> (i32, i32) {
    %c0_i32 = arith.constant 0 : i32
    %c0_i32_0 = arith.constant 0 : i32
    %c0_i32_1 = arith.constant 0 : i32
    return %c0_i32, %c0_i32_0 : i32, i32
  }
  func.func @transform_9(%arg0: i32) -> (i32, i32) {
    %c0_i32 = arith.constant 0 : i32
    %c0_i32_0 = arith.constant 0 : i32
    %c0_i32_1 = arith.constant 0 : i32
    return %c0_i32, %c0_i32_0 : i32, i32
  }
  func.func @transform_10(%arg0: i32) -> (i32, i32) {
    %c0_i32 = arith.constant 0 : i32
    %c0_i32_0 = arith.constant 0 : i32
    %c0_i32_1 = arith.constant 0 : i32
    return %c0_i32, %c0_i32_0 : i32, i32
  }
  func.func @transform_11(%arg0: i32) -> (i32, i32) {
    %c0_i32 = arith.constant 0 : i32
    %c0_i32_0 = arith.constant 0 : i32
    %c0_i32_1 = arith.constant 0 : i32
    return %c0_i32, %c0_i32_0 : i32, i32
  }
  func.func @transform_12(%arg0: i32) -> (i32, i32) {
    %c0_i32 = arith.constant 0 : i32
    %c0_i32_0 = arith.constant 0 : i32
    return %arg0, %c0_i32 : i32, i32
  }
}

</mosaic_0001>

<bundles_post_ra>
// kernel: tpu_custom_call.1
= control target key start
LH: loop header
LB: loop body
LE: loop exit
PB: predicated region body
PF: predicated region fallthrough
CT: control target
= control target key end

     0   :  { %s5312_s0 = inlined_call_operand.vmem [shape: bf16[8,8,256], index: 0, kind: input, shape index: {}]   ;;  %s5313_s1 = inlined_call_operand.hbm [shape: bf16[8,8,256], index: 1, kind: input, shape index: {}]   ;;  %s5314_s2 = inlined_call_operand.hbm [shape: bf16[256,256], index: 2, kind: input, shape index: {}]   ;;  %s5315_s3 = inlined_call_operand.vmem [shape: f32[64,256], index: 3, kind: input, shape index: {}]   ;;  %s5316_s4 = inlined_call_operand.vmem [shape: f32[1,256], index: 4, kind: input, shape index: {}]   ;;  %s5317_s5 = inlined_call_operand.hbm [shape: bf16[256,256], index: 5, kind: input, shape index: {}]   ;;  %s5318_s6 = inlined_call_operand.hbm [shape: f32[64,256], index: 6, kind: input, shape index: {}]   ;;  %s5319_s7 = inlined_call_operand.vmem [shape: f32[1,256], index: 7, kind: input, shape index: {}]   ;;  %s5320_s8 = inlined_call_operand.hbm [shape: f32[192,192], index: 8, kind: input, shape index: {}]   ;;  %s5321_s9 = inlined_call_operand.vmem [shape: f32[1,192], index: 9, kind: input, shape index: {}]   ;;  %s5322_s10 = inlined_call_operand.vmem [shape: f32[192,1], index: 10, kind: input, shape index: {}]   ;;  %s5323_s11 = inlined_call_operand.<no memory space> [shape: f32[1,1], index: 11, kind: input, shape index: {}]   ;;  %s5324_s12 = inlined_call_operand.vmem [shape: f32[8,1], index: 12, kind: output, shape index: {}]  }
   0x1   :  { %v17_v0 = vstv %s5323_s11 }
   0x2   :  { %18 = vst [vmem:[#allocation4] sm:$0x1] %v17_v0 }
   0x3   :  { %19 = vsyncpa [#allocation6], 0 }
   0x4   :  { %20 = vsyncpa [#allocation8], 0 }
   0x5   :  { %21 = vsyncpa [#allocation11], 0  ;;  %s41_s25 = sshll.u32 %s5314_s2, 4  ;;  %s3585_s26 = smov [#allocation7]   ;;  %s42_s25 = int_to_ptr.hbm [resolvable:$true] %s41_s25 }
   0x6   :  { %s43_s27 = sshll.u32 %s3585_s26, 4  ;;  %s71_s30 = sshll.u32 %s5318_s6, 4  ;;  %s44_s27 = int_to_ptr.vmem [resolvable:$true] %s43_s27  ;;  %s72_s30 = int_to_ptr.hbm [resolvable:$true] %s71_s30 }
   0x7   :  { %s3586_s13 = smov 128   ;;  %s3587_s14 = smov 8  }
   0x8   :  { %49 = dma.hbm_to_vmem [thread:$0]  %s42_s25, 4096, %s44_s27, [#allocation8], %s3586_s13, %s3586_s13, %s3587_s14  }
   0x9   :  { %s3588_s11 = smov [#allocation10]   ;;  %s3589_s16 = smov 256  }
   0xa   :  { %s73_s15 = sshll.u32 %s3588_s11, 4  ;;  %s3590_s17 = smov 16   ;;  %s74_s15 = int_to_ptr.vmem [resolvable:$true] %s73_s15 }
   0xb   :  { %79 = dma.hbm_to_vmem [thread:$0]  %s72_s30, 2048, %s74_s15, [#allocation11], %s3589_s16, %s3589_s16, %s3590_s17  }
   0xc   :  { %s28_s19 = sshll.u32 %s5313_s1, 4  ;;  %s3591_s20 = smov [#allocation5]   ;;  %s29_s19 = int_to_ptr.hbm [resolvable:$true] %s28_s19 }
   0xd   :  { %s30_s21 = sshll.u32 %s3591_s20, 4  ;;  %s58_s23 = sshll.u32 %s5317_s5, 4  ;;  %s31_s21 = int_to_ptr.vmem [resolvable:$true] %s30_s21  ;;  %s59_s23 = int_to_ptr.hbm [resolvable:$true] %s58_s23 }
   0xe   :  { %36 = dma.hbm_to_vmem [thread:$0]  %s29_s19, 1024, %s31_s21, [#allocation6], %s3586_s13, %s3586_s13, %s3587_s14  }
   0xf   :  { %s3592_s24 = smov [#allocation9]   ;;  %s86_s28 = sshll.u32 %s5320_s8, 4  ;;  %s87_s28 = int_to_ptr.hbm [resolvable:$true] %s86_s28 }
  0x10   :  { %s60_s25 = sshll.u32 %s3592_s24, 4  ;;  %s3593_s1 = smov [#allocation12]   ;;  %s61_s25 = int_to_ptr.vmem [resolvable:$true] %s60_s25 }
  0x11   :  { %66 = dma.hbm_to_vmem [thread:$0]  %s59_s23, 4096, %s61_s25, [#allocation8], %s3586_s13, %s3586_s13, %s3587_s14  }
  0x12   :  { %s88_s29 = sshll.u32 %s3593_s1, 4  ;;  %s89_s29 = int_to_ptr.vmem [resolvable:$true] %s88_s29 }
  0x13   :  { %94 = dma.hbm_to_vmem [thread:$0]  %s87_s28, 6144, %s89_s29, [#allocation11], %s3589_s16, %s3589_s16, %s3590_s17  }
  0x14   :  { %3579 = dma.done.wait [#allocation6], 1024  }
  0x15   :  { %3580 = vsyncadd [#allocation6], 4294966272 }
  0x16   :  { %3581 = dma.done.wait [#allocation8], 8192  }
  0x17   :  { %3582 = vsyncadd [#allocation8], 4294959104 }
  0x18   :  { %3583 = dma.done.wait [#allocation11], 8192  }
  0x19   :  { %3584 = vsyncadd [#allocation11], 4294959104  ;;  %v2977_v1 = vld [vmem:[#allocation7 + $0x70] sm:$0xf]  ;;  %v3262_v2 = vld [vmem:[#allocation7 + $0x74] sm:$0xf0] }
  0x1a   :  { %v3041_v3 = vld [vmem:[#allocation7 + $0xf0] sm:$0xf]  ;;  %v2978_v4 = vor.u32 %v3262_v2, %v2977_v1  ;;  %v3278_v5 = vld [vmem:[#allocation7 + $0xf4] sm:$0xf0]  ;;  %v3261_v6 = vld [vmem:[#allocation7 + $0x74] sm:$0xf] }
  0x1b   :  { %v2979_v7 = vld [vmem:[#allocation7 + $0x78] sm:$0xf0]  ;;  %v3042_v8 = vor.u32 %v3278_v5, %v3041_v3  ;;  %v3277_v10 = vld [vmem:[#allocation7 + $0xf4] sm:$0xf]  ;;  %v2969_v12 = vld [vmem:[#allocation7 + $0x60] sm:$0xf] }
  0x1c   :  { %v2982_v9 = vor.u32 %v3261_v6, %v2979_v7  ;;  %v3043_v11 = vld [vmem:[#allocation7 + $0xf8] sm:$0xf0]  ;;  %383 = vmatpush.bf16.msra.mxu0 %v2978_v4  ;;  %v3260_v14 = vld [vmem:[#allocation7 + $0x64] sm:$0xf0]  ;;  %v3033_v15 = vld [vmem:[#allocation7 + $0xe0] sm:$0xf] }
  0x1d   :  { %v3046_v13 = vor.u32 %v3277_v10, %v3043_v11  ;;  %v3276_v16 = vld [vmem:[#allocation7 + $0xe4] sm:$0xf0]  ;;  %412 = vmatpush.bf16.msra.mxu1 %v3042_v8  ;;  %v2970_v17 = vor.u32 %v3260_v14, %v2969_v12  ;;  %v3259_v19 = vld [vmem:[#allocation7 + $0x64] sm:$0xf]  ;;  %v2971_v20 = vld [vmem:[#allocation7 + $0x68] sm:$0xf0] }
  0x1e   :  { %441 = vmatpush.bf16.msra.mxu2 %v2982_v9  ;;  %v3034_v18 = vor.u32 %v3276_v16, %v3033_v15  ;;  %v3275_v21 = vld [vmem:[#allocation7 + $0xe4] sm:$0xf]  ;;  %v2974_v22 = vor.u32 %v3259_v19, %v2971_v20  ;;  %v3035_v23 = vld [vmem:[#allocation7 + $0xe8] sm:$0xf0]  ;;  %v2961_v24 = vld [vmem:[#allocation7 + $0x50] sm:$0xf] }
  0x1f   :  { %470 = vmatpush.bf16.msra.mxu3 %v3046_v13  ;;  %v3258_v25 = vld [vmem:[#allocation7 + $0x54] sm:$0xf0]  ;;  %v3038_v26 = vor.u32 %v3275_v21, %v3035_v23  ;;  %v3025_v27 = vld [vmem:[#allocation7 + $0xd0] sm:$0xf]  ;;  %v3257_v29 = vld [vmem:[#allocation7 + $0x54] sm:$0xf] }
  0x20   :  { %v3274_v28 = vld [vmem:[#allocation7 + $0xd4] sm:$0xf0]  ;;  %384 = vmatpush.bf16.msra.mxu0 %v2970_v17  ;;  %v2962_v30 = vor.u32 %v3258_v25, %v2961_v24  ;;  %v2963_v31 = vld [vmem:[#allocation7 + $0x58] sm:$0xf0]  ;;  %v3273_v32 = vld [vmem:[#allocation7 + $0xd4] sm:$0xf] }
  0x21   :  { %v3027_v33 = vld [vmem:[#allocation7 + $0xd8] sm:$0xf0]  ;;  %413 = vmatpush.bf16.msra.mxu1 %v3034_v18  ;;  %v3026_v34 = vor.u32 %v3274_v28, %v3025_v27  ;;  %v2966_v35 = vor.u32 %v3257_v29, %v2963_v31  ;;  %v2953_v36 = vld [vmem:[#allocation7 + $0x40] sm:$0xf]  ;;  %v3256_v37 = vld [vmem:[#allocation7 + $0x44] sm:$0xf0] }
  0x22   :  { %442 = vmatpush.bf16.msra.mxu2 %v2974_v22  ;;  %v3017_v38 = vld [vmem:[#allocation7 + $0xc0] sm:$0xf]  ;;  %v3030_v39 = vor.u32 %v3273_v32, %v3027_v33  ;;  %v3272_v40 = vld [vmem:[#allocation7 + $0xc4] sm:$0xf0]  ;;  %v3255_v41 = vld [vmem:[#allocation7 + $0x44] sm:$0xf]  ;;  %v2954_v45 = vor.u32 %v3256_v37, %v2953_v36 }
  0x23   :  { %471 = vmatpush.bf16.msra.mxu3 %v3038_v26  ;;  %v2955_v42 = vld [vmem:[#allocation7 + $0x48] sm:$0xf0]  ;;  %v3271_v43 = vld [vmem:[#allocation7 + $0xc4] sm:$0xf]  ;;  %v3018_v46 = vor.u32 %v3272_v40, %v3017_v38  ;;  %v2945_v48 = vld [vmem:[#allocation7 + $0x30] sm:$0xf] }
  0x24   :  { %v3019_v44 = vld [vmem:[#allocation7 + $0xc8] sm:$0xf0]  ;;  %385 = vmatpush.bf16.msra.mxu0 %v2962_v30  ;;  %v2958_v47 = vor.u32 %v3255_v41, %v2955_v42  ;;  %v3254_v49 = vld [vmem:[#allocation7 + $0x34] sm:$0xf0]  ;;  %v3009_v50 = vld [vmem:[#allocation7 + $0xb0] sm:$0xf] }
  0x25   :  { %414 = vmatpush.bf16.msra.mxu1 %v3026_v34  ;;  %v3022_v51 = vor.u32 %v3271_v43, %v3019_v44  ;;  %v3270_v52 = vld [vmem:[#allocation7 + $0xb4] sm:$0xf0]  ;;  %v3253_v53 = vld [vmem:[#allocation7 + $0x34] sm:$0xf]  ;;  %v2947_v54 = vld [vmem:[#allocation7 + $0x38] sm:$0xf0]  ;;  %v2946_v57 = vor.u32 %v3254_v49, %v2945_v48 }
  0x26   :  { %443 = vmatpush.bf16.msra.mxu2 %v2966_v35  ;;  %v3269_v55 = vld [vmem:[#allocation7 + $0xb4] sm:$0xf]  ;;  %v3011_v56 = vld [vmem:[#allocation7 + $0xb8] sm:$0xf0]  ;;  %v3010_v58 = vor.u32 %v3270_v52, %v3009_v50  ;;  %v2950_v59 = vor.u32 %v3253_v53, %v2947_v54  ;;  %v2937_v60 = vld [vmem:[#allocation7 + $0x20] sm:$0xf] }
  0x27   :  { %472 = vmatpush.bf16.msra.mxu3 %v3030_v39  ;;  %v3252_v61 = vld [vmem:[#allocation7 + $0x24] sm:$0xf0]  ;;  %v3001_v62 = vld [vmem:[#allocation7 + $0xa0] sm:$0xf]  ;;  %v3014_v63 = vor.u32 %v3269_v55, %v3011_v56  ;;  %v3251_v1 = vld [vmem:[#allocation7 + $0x24] sm:$0xf] }
  0x28   :  { %386 = vmatpush.bf16.msra.mxu0 %v2954_v45  ;;  %v3268_v0 = vld [vmem:[#allocation7 + $0xa4] sm:$0xf0]  ;;  %v2939_v2 = vld [vmem:[#allocation7 + $0x28] sm:$0xf0]  ;;  %v3267_v3 = vld [vmem:[#allocation7 + $0xa4] sm:$0xf]  ;;  %v2938_v5 = vor.u32 %v3252_v61, %v2937_v60 }
  0x29   :  { %415 = vmatpush.bf16.msra.mxu1 %v3018_v46  ;;  %v3003_v4 = vld [vmem:[#allocation7 + $0xa8] sm:$0xf0]  ;;  %v3002_v6 = vor.u32 %v3268_v0, %v3001_v62  ;;  %v2942_v7 = vor.u32 %v3251_v1, %v2939_v2  ;;  %v2929_v8 = vld [vmem:[#allocation7 + $0x10] sm:$0xf]  ;;  %v3250_v9 = vld [vmem:[#allocation7 + $0x14] sm:$0xf0] }
  0x2a   :  { %444 = vmatpush.bf16.msra.mxu2 %v2958_v47  ;;  %v2993_v10 = vld [vmem:[#allocation7 + $0x90] sm:$0xf]  ;;  %v3006_v11 = vor.u32 %v3267_v3, %v3003_v4  ;;  %v3266_v12 = vld [vmem:[#allocation7 + $0x94] sm:$0xf0]  ;;  %v3249_v13 = vld [vmem:[#allocation7 + $0x14] sm:$0xf]  ;;  %v2930_v17 = vor.u32 %v3250_v9, %v2929_v8 }
  0x2b   :  { %473 = vmatpush.bf16.msra.mxu3 %v3022_v51  ;;  %v2931_v14 = vld [vmem:[#allocation7 + $0x18] sm:$0xf0]  ;;  %v3265_v15 = vld [vmem:[#allocation7 + $0x94] sm:$0xf]  ;;  %v2994_v18 = vor.u32 %v3266_v12, %v2993_v10  ;;  %v2921_v20 = vld [vmem:[#allocation7] sm:$0xf] }
  0x2c   :  { %387 = vmatpush.bf16.msra.mxu0 %v2946_v57  ;;  %v2995_v16 = vld [vmem:[#allocation7 + $0x98] sm:$0xf0]  ;;  %v2934_v19 = vor.u32 %v3249_v13, %v2931_v14  ;;  %v3248_v21 = vld [vmem:[#allocation7 + $0x4] sm:$0xf0]  ;;  %v2985_v22 = vld [vmem:[#allocation7 + $0x80] sm:$0xf] }
  0x2d   :  { %416 = vmatpush.bf16.msra.mxu1 %v3010_v58  ;;  %v2998_v23 = vor.u32 %v3265_v15, %v2995_v16  ;;  %v3264_v24 = vld [vmem:[#allocation7 + $0x84] sm:$0xf0]  ;;  %v3247_v25 = vld [vmem:[#allocation7 + $0x4] sm:$0xf]  ;;  %v2923_v26 = vld [vmem:[#allocation7 + $0x8] sm:$0xf0]  ;;  %v2922_v29 = vor.u32 %v3248_v21, %v2921_v20 }
  0x2e   :  { %445 = vmatpush.bf16.msra.mxu2 %v2950_v59  ;;  %v3263_v27 = vld [vmem:[#allocation7 + $0x84] sm:$0xf]  ;;  %v2987_v28 = vld [vmem:[#allocation7 + $0x88] sm:$0xf0]  ;;  %v2889_v30 = vld [vmem:[%s5312_s0] sm:$0xf]  ;;  %v2986_v32 = vor.u32 %v3264_v24, %v2985_v22  ;;  %v2926_v33 = vor.u32 %v3247_v25, %v2923_v26 }
  0x2f   :  { %474 = vmatpush.bf16.msra.mxu3 %v3014_v63  ;;  %v3240_v31 = vld [vmem:[%s5312_s0 + $0x4] sm:$0xf0]  ;;  %v3239_v34 = vld [vmem:[%s5312_s0 + $0x4] sm:$0xf]  ;;  %v2891_v35 = vld [vmem:[%s5312_s0 + $0x8] sm:$0xf0]  ;;  %v2990_v36 = vor.u32 %v3263_v27, %v2987_v28 }
  0x30   :  { %388 = vmatpush.bf16.msra.mxu0 %v2938_v5  ;;  %v2890_v37 = vor.u32 %v3240_v31, %v2889_v30  ;;  %v3694_v38 = vld [vmem:[%s5315_s3 + $0x78] sm:$0xff]  ;;  %v2894_v39 = vor.u32 %v3239_v34, %v2891_v35  ;;  %v3700_v40 = vld [vmem:[%s5315_s3 + $0x70] sm:$0xff]  ;;  %v3705_v41 = vld [vmem:[%s5315_s3 + $0x68] sm:$0xff]  ;;  %v5325_v9 = vmov 0.0   ;;  %vm551_vm0 = vcmask 1041409  }
  0x31   :  { %417 = vmatpush.bf16.msra.mxu1 %v3002_v6  ;;  %v3711_v42 = vld [vmem:[%s5315_s3 + $0x60] sm:$0xff]  ;;  %v3717_v43 = vld [vmem:[%s5315_s3 + $0x58] sm:$0xff]  ;;  %v3723_v44 = vld [vmem:[%s5315_s3 + $0x50] sm:$0xff]  ;;  %vm554_vm1 = vcmask 1042434   ;;  %vm557_vm2 = vcmask 1043459   ;;  %vm560_vm3 = vcmask 1044484  }
  0x32   :  { %446 = vmatpush.bf16.msra.mxu2 %v2942_v7  ;;  %v3730_v45 = vld [vmem:[%s5315_s3 + $0x48] sm:$0xff]  ;;  %v3737_v46 = vld [vmem:[%s5315_s3 + $0x40] sm:$0xff]  ;;  %v3744_v47 = vld [vmem:[%s5315_s3 + $0x38] sm:$0xff]  ;;  %vm563_vm4 = vcmask 1045509   ;;  %vm566_vm5 = vcmask 1046534   ;;  %vm569_vm6 = vcmask 1047559  }
  0x33   :  { %475 = vmatpush.bf16.msra.mxu3 %v3006_v11  ;;  %v3751_v48 = vld [vmem:[%s5315_s3 + $0x30] sm:$0xff]  ;;  %v3758_v49 = vld [vmem:[%s5315_s3 + $0x28] sm:$0xff]  ;;  %v3242_v51 = vld [vmem:[%s5312_s0 + $0x14] sm:$0xf0]  ;;  %vm838_vm10 = vcmask 523264   ;;  %vm2878_vm14 = vcmask 7168  }
  0x34   :  { %389 = vmatpush.bf16.msra.mxu0 %v2930_v17  ;;  %v2897_v50 = vld [vmem:[%s5312_s0 + $0x10] sm:$0xf]  ;;  %v3241_v52 = vld [vmem:[%s5312_s0 + $0x14] sm:$0xf]  ;;  %v2899_v53 = vld [vmem:[%s5312_s0 + $0x18] sm:$0xf0] }
  0x35   :  { %418 = vmatpush.bf16.msra.mxu1 %v2994_v18  ;;  %v2898_v54 = vor.u32 %v3242_v51, %v2897_v50  ;;  %v2902_v55 = vor.u32 %v3241_v52, %v2899_v53  ;;  %v3783_v56 = vld [vmem:[%s5315_s3 + $0x20] sm:$0xff]  ;;  %v3788_v57 = vld [vmem:[%s5315_s3 + $0x18] sm:$0xff]  ;;  %v3793_v58 = vld [vmem:[%s5315_s3 + $0x10] sm:$0xff] }
  0x36   :  { %447 = vmatpush.bf16.msra.mxu2 %v2934_v19  ;;  %v3800_v59 = vld [vmem:[%s5315_s3 + $0x8] sm:$0xff]  ;;  %v3805_v60 = vld [vmem:[%s5315_s3] sm:$0xff]  ;;  %v2913_v3 = vld [vmem:[%s5312_s0 + $0x30] sm:$0xf] }
  0x37   :  { %476 = vmatpush.bf16.msra.mxu3 %v2998_v23  ;;  %v2905_v61 = vld [vmem:[%s5312_s0 + $0x20] sm:$0xf]  ;;  %v3244_v62 = vld [vmem:[%s5312_s0 + $0x24] sm:$0xf0]  ;;  %v3243_v63 = vld [vmem:[%s5312_s0 + $0x24] sm:$0xf] }
  0x38   :  { %390 = vmatpush.bf16.msra.mxu0 %v2922_v29  ;;  %v2907_v0 = vld [vmem:[%s5312_s0 + $0x28] sm:$0xf0]  ;;  %v2906_v1 = vor.u32 %v3244_v62, %v2905_v61  ;;  %v3246_v4 = vld [vmem:[%s5312_s0 + $0x34] sm:$0xf0]  ;;  %v3245_v5 = vld [vmem:[%s5312_s0 + $0x34] sm:$0xf] }
  0x39   :  { %419 = vmatpush.bf16.msra.mxu1 %v2986_v32  ;;  %v2910_v2 = vor.u32 %v3243_v63, %v2907_v0  ;;  %v2915_v6 = vld [vmem:[%s5312_s0 + $0x38] sm:$0xf0]  ;;  %v2914_v7 = vor.u32 %v3246_v4, %v2913_v3  ;;  %v177_v10 = vld [vmem:[%s5316_s4] sm:$0x3]  ;;  %s3595_s4 = smov 64  }
  0x3a   :  { %448 = vmatpush.bf16.msra.mxu2 %v2926_v33  ;;  %v2918_v8 = vor.u32 %v3245_v5, %v2915_v6  ;;  %v3892_v11 = vperm.slane %v177_v10, 0  ;;  %v3895_v15 = vperm.slane %v177_v10, 1 }
  0x3b   :  { %477 = vmatpush.bf16.msra.mxu3 %v2990_v36  ;;  %391 = vmatmul.bf16.vlgmr.msra.gmra.mxu0 %v2890_v37 }
  0x3c   :  { %420 = vmatmul.bf16.vlgmr.msra.gmra.mxu1 %v2894_v39  ;;  %850 = vmatpush.msrb.mxu0 %v3700_v40 }
  0x3d   :  { %870 = vmatpush.msrb.mxu1 %v3694_v38  ;;  %449 = vmatmul.bf16.vlgmr.msra.gmra.mxu2 %v2890_v37 }
  0x3e   :  { %478 = vmatmul.bf16.vlgmr.msra.gmra.mxu3 %v2894_v39  ;;  %921 = vmatpush.msrb.mxu2 %v3700_v40 }
  0x3f   :  { %941 = vmatpush.msrb.mxu3 %v3694_v38  ;;  %871 = vmatpush.msrb.mxu1 %v3705_v41 }
  0x40   :  { %851 = vmatpush.msrb.mxu0 %v3711_v42  ;;  %922 = vmatpush.msrb.mxu2 %v3711_v42 }
  0x41   :  { %942 = vmatpush.msrb.mxu3 %v3705_v41  ;;  %872 = vmatpush.msrb.mxu1 %v3717_v43 }
  0x42   :  { %852 = vmatpush.msrb.mxu0 %v3723_v44  ;;  %923 = vmatpush.msrb.mxu2 %v3723_v44 }
  0x43   :  { %943 = vmatpush.msrb.mxu3 %v3717_v43  ;;  %873 = vmatpush.msrb.mxu1 %v3730_v45 }
  0x44   :  { %853 = vmatpush.msrb.mxu0 %v3737_v46  ;;  %924 = vmatpush.msrb.mxu2 %v3737_v46 }
  0x45   :  { %944 = vmatpush.msrb.mxu3 %v3730_v45  ;;  %874 = vmatpush.msrb.mxu1 %v3744_v47 }
  0x46   :  { %854 = vmatpush.msrb.mxu0 %v3751_v48  ;;  %925 = vmatpush.msrb.mxu2 %v3751_v48 }
  0x47   :  { %945 = vmatpush.msrb.mxu3 %v3744_v47  ;;  %875 = vmatpush.msrb.mxu1 %v3758_v49 }
  0x48   :  { %855 = vmatpush.msrb.mxu0 %v3783_v56  ;;  %926 = vmatpush.msrb.mxu2 %v3783_v56 }
  0x49   :  { %946 = vmatpush.msrb.mxu3 %v3758_v49  ;;  %876 = vmatpush.msrb.mxu1 %v3788_v57 }
  0x4a   :  { %856 = vmatpush.msrb.mxu0 %v3793_v58  ;;  %927 = vmatpush.msrb.mxu2 %v3793_v58 }
  0x4b   :  { %396 = vmatmul.bf16.gmra.mxu0 %v2898_v54  ;;  %947 = vmatpush.msrb.mxu3 %v3788_v57 }
  0x4c   :  { %425 = vmatmul.bf16.gmra.mxu1 %v2902_v55  ;;  %857 = vmatpush.msrb.mxu0 %v3805_v60 }
  0x4d   :  { %454 = vmatmul.bf16.gmra.mxu2 %v2898_v54  ;;  %877 = vmatpush.msrb.mxu1 %v3800_v59 }
  0x4e   :  { %483 = vmatmul.bf16.gmra.mxu3 %v2902_v55  ;;  %928 = vmatpush.msrb.mxu2 %v3805_v60 }
  0x4f   :  { %948 = vmatpush.msrb.mxu3 %v3800_v59  ;;  %1012 = vmatpush.msra.mxu1 %v3694_v38 }
  0x50   :  { %992 = vmatpush.msra.mxu0 %v3700_v40  ;;  %1063 = vmatpush.msra.mxu2 %v3700_v40 }
  0x51   :  { %1013 = vmatpush.msra.mxu1 %v3705_v41  ;;  %1083 = vmatpush.msra.mxu3 %v3694_v38 }
  0x52   :  { %993 = vmatpush.msra.mxu0 %v3711_v42  ;;  %1064 = vmatpush.msra.mxu2 %v3711_v42 }
  0x53   :  { %1014 = vmatpush.msra.mxu1 %v3717_v43  ;;  %1084 = vmatpush.msra.mxu3 %v3705_v41 }
  0x54   :  { %994 = vmatpush.msra.mxu0 %v3723_v44  ;;  %1065 = vmatpush.msra.mxu2 %v3723_v44 }
  0x55   :  { %1015 = vmatpush.msra.mxu1 %v3730_v45  ;;  %1085 = vmatpush.msra.mxu3 %v3717_v43 }
  0x56   :  { %995 = vmatpush.msra.mxu0 %v3737_v46  ;;  %1066 = vmatpush.msra.mxu2 %v3737_v46 }
  0x57   :  { %1016 = vmatpush.msra.mxu1 %v3744_v47  ;;  %1086 = vmatpush.msra.mxu3 %v3730_v45 }
  0x58   :  { %996 = vmatpush.msra.mxu0 %v3751_v48  ;;  %1067 = vmatpush.msra.mxu2 %v3751_v48 }
  0x59   :  { %1017 = vmatpush.msra.mxu1 %v3758_v49  ;;  %1087 = vmatpush.msra.mxu3 %v3744_v47 }
  0x5a   :  { %997 = vmatpush.msra.mxu0 %v3783_v56  ;;  %1068 = vmatpush.msra.mxu2 %v3783_v56 }
  0x5b   :  { %401 = vmatmul.bf16.gmra.mxu0 %v2906_v1  ;;  %1018 = vmatpush.msra.mxu1 %v3788_v57 }
  0x5c   :  { %430 = vmatmul.bf16.gmra.mxu1 %v2910_v2  ;;  %998 = vmatpush.msra.mxu0 %v3793_v58 }
  0x5d   :  { %459 = vmatmul.bf16.gmra.mxu2 %v2906_v1  ;;  %1088 = vmatpush.msra.mxu3 %v3758_v49 }
  0x5e   :  { %488 = vmatmul.bf16.gmra.mxu3 %v2910_v2  ;;  %1019 = vmatpush.msra.mxu1 %v3800_v59 }
  0x5f   :  { %1069 = vmatpush.msra.mxu2 %v3793_v58  ;;  %999 = vmatpush.msra.mxu0 %v3805_v60 }
  0x60   :  { %1089 = vmatpush.msra.mxu3 %v3788_v57 }
  0x61   :  { %1070 = vmatpush.msra.mxu2 %v3805_v60 }
  0x62   :  { %1090 = vmatpush.msra.mxu3 %v3800_v59 }
  0x6b   :  { %406 = vmatmul.bf16.gmra.mxu0 %v2914_v7 }
  0x6c   :  { %435 = vmatmul.bf16.gmra.mxu1 %v2918_v8 }
  0x6d   :  { %464 = vmatmul.bf16.gmra.mxu2 %v2914_v7 }
  0x6e   :  { %493 = vmatmul.bf16.gmra.mxu3 %v2918_v8 }
  0x7b   :  { %858 = vmatmul.f32.vlgmr.msrb.gmra.mxu0 %v5325_v9 }
  0x7c   :  { %878 = vmatmul.f32.vlgmr.msrb.gmra.mxu1 %v5325_v9  ;;  %1134 = vmatpush.msrb.mxu0 %v3700_v40 }
  0x7d   :  { %1154 = vmatpush.msrb.mxu1 %v3694_v38 }
  0x7e   :  { %1135 = vmatpush.msrb.mxu0 %v3711_v42 }
  0x7f   :  { %1155 = vmatpush.msrb.mxu1 %v3705_v41 }
  0x80   :  { %1136 = vmatpush.msrb.mxu0 %v3723_v44 }
  0x81   :  { %1156 = vmatpush.msrb.mxu1 %v3717_v43 }
  0x82   :  { %1137 = vmatpush.msrb.mxu0 %v3737_v46 }
  0x83   :  { %1157 = vmatpush.msrb.mxu1 %v3730_v45 }
  0x84   :  { %1138 = vmatpush.msrb.mxu0 %v3751_v48 }
  0x85   :  { %1158 = vmatpush.msrb.mxu1 %v3744_v47 }
  0x86   :  { %1139 = vmatpush.msrb.mxu0 %v3783_v56 }
  0x87   :  { %1159 = vmatpush.msrb.mxu1 %v3758_v49 }
  0x88   :  { %1140 = vmatpush.msrb.mxu0 %v3793_v58 }
  0x89   :  { %1160 = vmatpush.msrb.mxu1 %v3788_v57 }
  0x8a   :  { %1141 = vmatpush.msrb.mxu0 %v3805_v60 }
  0x8b   :  { %1161 = vmatpush.msrb.mxu1 %v3800_v59 }
  0xb8   :  { %v392_v12 = vpop.f32.mrf.mxu0 }
  0xb9   :  { %v421_v13 = vpop.f32.mrf.mxu1  ;;  %v393_v14 = vadd.f32 %v392_v12, %v3892_v11 }
  0xbb   :  { %v422_v16 = vadd.f32 %v421_v13, %v393_v14 }
  0xbd   :  { %v621_v24 = vrot.slane %v422_v16, 1  ;;  %v651_v26 = vrot.slane %v422_v16, 6  ;;  %v686_v28 = vrot.slane %v422_v16, 2  ;;  %v716_v31 = vrot.slane %v422_v16, 5 }
  0xbe   :  { %v751_v35 = vrot.slane %v422_v16, 3  ;;  %v781_v37 = vrot.slane %v422_v16, 4  ;;  %v587_v5 = vrot.slane %v422_v16, 7 }
  0xc0   :  { %v450_v17 = vpop.f32.mrf.mxu2  ;;  %v394_v19 = vpop.f32.mrf.mxu0 }
  0xc1   :  { %v479_v18 = vpop.f32.mrf.mxu3  ;;  %v395_v20 = vadd.f32 %v394_v19, %v3892_v11  ;;  %v423_v21 = vpop.f32.mrf.mxu1  ;;  %v451_v22 = vadd.f32 %v450_v17, %v3895_v15 }
  0xc3   :  { %v424_v23 = vadd.f32 %v423_v21, %v395_v20  ;;  %v3900_v29 = vadd.f32 %v479_v18, %v451_v22 }
  0xc5   :  { %v622_v25 = vsel %vm551_vm0, %v424_v23, %v621_v24  ;;  %v652_v27 = vrot.slane %v424_v23, 5  ;;  %v687_v30 = vrot.slane %v424_v23, 1  ;;  %v717_v32 = vrot.slane %v424_v23, 4 }
  0xc6   :  { %v752_v36 = vrot.slane %v424_v23, 2  ;;  %v782_v54 = vrot.slane %v424_v23, 3  ;;  %v550_v62 = vrot.slane %v424_v23, 7  ;;  %v588_v1 = vrot.slane %v424_v23, 6 }
  0xc7   :  { %v653_v34 = vsel %vm551_vm0, %v652_v27, %v651_v26  ;;  %v688_v52 = vsel %vm551_vm0, %v687_v30, %v686_v28  ;;  %v718_v53 = vsel %vm551_vm0, %v717_v32, %v716_v31  ;;  %v635_v2 = vrot.slane %v3900_v29, 1 }
  0xc8   :  { %v452_v33 = vpop.f32.mrf.mxu2  ;;  %v397_v51 = vpop.f32.mrf.mxu0  ;;  %v753_v63 = vsel %vm551_vm0, %v752_v36, %v751_v35  ;;  %v3912_v3 = vsel %vm551_vm0, %v782_v54, %v781_v37  ;;  %v601_v6 = vrot.slane %v3900_v29, 7  ;;  %v665_v7 = vrot.slane %v3900_v29, 6 }
  0xc9   :  { %v453_v39 = vadd.f32 %v452_v33, %v3895_v15  ;;  %v481_v50 = vpop.f32.mrf.mxu3  ;;  %v398_v55 = vadd.f32 %v397_v51, %v3892_v11  ;;  %v426_v61 = vpop.f32.mrf.mxu1  ;;  %v700_v12 = vrot.slane %v3900_v29, 2  ;;  %v730_v13 = vrot.slane %v3900_v29, 5 }
  0xca   :  { %v552_v14 = vsel %vm551_vm0, %v550_v62, %v422_v16  ;;  %v589_v20 = vsel %vm551_vm0, %v588_v1, %v587_v5  ;;  %v499_v62 = vlaneseq }
  0xcb   :  { %v3908_v0 = vadd.f32 %v481_v50, %v453_v39  ;;  %v3914_v4 = vadd.f32 %v426_v61, %v398_v55 }
  0xcd   :  { %v636_v8 = vsel %vm551_vm0, %v3908_v0, %v635_v2  ;;  %v666_v10 = vrot.slane %v3908_v0, 5  ;;  %v571_v17 = vrot.slane %v3908_v0, 7  ;;  %v623_v18 = vrot.slane %v3914_v4, 7 }
  0xce   :  { %v654_v19 = vrot.slane %v3914_v4, 4  ;;  %v602_v21 = vrot.slane %v3908_v0, 6  ;;  %v553_v26 = vrot.slane %v3914_v4, 6  ;;  %v590_v16 = vrot.slane %v3914_v4, 5 }
  0xcf   :  { %v667_v22 = vsel %vm551_vm0, %v666_v10, %v665_v7  ;;  %v624_v27 = vsel %vm554_vm1, %v623_v18, %v622_v25  ;;  %v689_v33 = vsel %vm554_vm1, %v3914_v4, %v688_v52  ;;  %v719_v35 = vrot.slane %v3914_v4, 3 }
  0xd0   :  { %v455_v24 = vpop.f32.mrf.mxu2  ;;  %v655_v28 = vsel %vm554_vm1, %v654_v19, %v653_v34  ;;  %v399_v32 = vpop.f32.mrf.mxu0  ;;  %v701_v36 = vrot.slane %v3908_v0, 1  ;;  %v572_v50 = vsel %vm551_vm0, %v571_v17, %v3900_v29  ;;  %v731_v25 = vrot.slane %v3908_v0, 4 }
  0xd1   :  { %v456_v30 = vadd.f32 %v455_v24, %v3895_v15  ;;  %v484_v31 = vpop.f32.mrf.mxu3  ;;  %v400_v37 = vadd.f32 %v399_v32, %v3892_v11  ;;  %v428_v39 = vpop.f32.mrf.mxu1  ;;  %v754_v34 = vrot.slane %v3914_v4, 1  ;;  %v603_v54 = vsel %vm551_vm0, %v602_v21, %v601_v6 }
  0xd2   :  { %v720_v52 = vsel %vm554_vm1, %v719_v35, %v718_v53  ;;  %v702_v55 = vsel %vm551_vm0, %v701_v36, %v700_v12  ;;  %v3953_v1 = vsel %vm551_vm0, %v731_v25, %v730_v13  ;;  %v3960_v17 = vand.u32 127, %v499_v62 }
  0xd3   :  { %v3945_v51 = vadd.f32 %v484_v31, %v456_v30  ;;  %v3950_v61 = vadd.f32 %v428_v39, %v400_v37  ;;  %v755_v2 = vsel %vm554_vm1, %v754_v34, %v753_v63  ;;  %v555_v53 = vsel %vm554_vm1, %v553_v26, %v552_v14 }
  0xd4   :  { %v591_v12 = vsel %vm554_vm1, %v590_v16, %v589_v20  ;;  %v784_v19 = vrot.slane %v3914_v4, 2  ;;  %v506_v34 = vand.u32 63, %v3960_v17 }
  0xd5   :  { %v573_v5 = vrot.slane %v3945_v51, 6  ;;  %v604_v7 = vrot.slane %v3945_v51, 5  ;;  %v637_v10 = vrot.slane %v3945_v51, 7  ;;  %v668_v6 = vrot.slane %v3945_v51, 4 }
  0xd6   :  { %v625_v18 = vrot.slane %v3950_v61, 6  ;;  %v556_v13 = vrot.slane %v3950_v61, 5  ;;  %v656_v63 = vrot.slane %v3950_v61, 3  ;;  %v592_v30 = vrot.slane %v3950_v61, 4 }
  0xd7   :  { %v574_v31 = vsel %vm554_vm1, %v573_v5, %v572_v50  ;;  %v605_v14 = vsel %vm554_vm1, %v604_v7, %v603_v54  ;;  %v638_v36 = vsel %vm554_vm1, %v637_v10, %v636_v8  ;;  %v669_v37 = vsel %vm554_vm1, %v668_v6, %v667_v22 }
  0xd8   :  { %v457_v24 = vpop.f32.mrf.mxu2  ;;  %v626_v20 = vsel %vm557_vm2, %v625_v18, %v624_v27  ;;  %v402_v32 = vpop.f32.mrf.mxu0  ;;  %v657_v35 = vsel %vm557_vm2, %v656_v63, %v655_v28  ;;  %v690_v50 = vrot.slane %v3950_v61, 7  ;;  %v721_v54 = vrot.slane %v3950_v61, 2 }
  0xd9   :  { %v458_v26 = vadd.f32 %v457_v24, %v3895_v15  ;;  %v486_v16 = vpop.f32.mrf.mxu3  ;;  %v403_v39 = vadd.f32 %v402_v32, %v3892_v11  ;;  %v431_v25 = vpop.f32.mrf.mxu1  ;;  %v558_v62 = vsel %vm557_vm2, %v556_v13, %v555_v53  ;;  %v703_v28 = vsel %vm554_vm1, %v3945_v51, %v702_v55 }
  0xda   :  { %v3988_v8 = vsel %vm557_vm2, %v3950_v61, %v755_v2  ;;  %v3993_v5 = vadd.s32 128, %v3960_v17  ;;  %v691_v7 = vsel %vm557_vm2, %v690_v50, %v689_v33  ;;  %v722_v10 = vsel %vm557_vm2, %v721_v54, %v720_v52 }
  0xdb   :  { %v3981_v27 = vadd.f32 %v486_v16, %v458_v26  ;;  %v3990_v22 = vadd.f32 %v431_v25, %v403_v39  ;;  %v593_v13 = vsel %vm557_vm2, %v592_v30, %v591_v12  ;;  %v733_v24 = vrot.slane %v3945_v51, 3 }
  0xdc   :  { %vm4079_vm7 = vcmp.lt.s32.totalorder %v506_v34, 32  ;;  %vm531_vm9 = vcmp.lt.s32.totalorder %v3993_v5, 192 }
  0xdd   :  { %v575_v6 = vrot.slane %v3981_v27, 5  ;;  %v606_v53 = vrot.slane %v3981_v27, 4  ;;  %v639_v18 = vrot.slane %v3981_v27, 6  ;;  %v670_v55 = vrot.slane %v3981_v27, 3 }
  0xde   :  { %v559_v2 = vrot.slane %v3990_v22, 4  ;;  %v627_v63 = vrot.slane %v3990_v22, 5  ;;  %v594_v33 = vrot.slane %v3990_v22, 3  ;;  %v658_v26 = vrot.slane %v3990_v22, 2 }
  0xdf   :  { %v640_v16 = vsel %vm557_vm2, %v639_v18, %v638_v36  ;;  %v576_v25 = vsel %vm557_vm2, %v575_v6, %v574_v31  ;;  %v607_v50 = vsel %vm557_vm2, %v606_v53, %v605_v14  ;;  %v671_v23 = vsel %vm557_vm2, %v670_v55, %v669_v37 }
  0xe0   :  { %v460_v32 = vpop.f32.mrf.mxu2  ;;  %v561_v39 = vsel %vm560_vm3, %v559_v2, %v558_v62  ;;  %v628_v12 = vsel %vm560_vm3, %v627_v63, %v626_v20  ;;  %v404_v9 = vpop.f32.mrf.mxu0  ;;  %v659_v21 = vsel %vm560_vm3, %v658_v26, %v657_v35  ;;  %v692_v52 = vrot.slane %v3990_v22, 6 }
  0xe1   :  { %v461_v30 = vadd.f32 %v460_v32, %v3895_v15  ;;  %v489_v54 = vpop.f32.mrf.mxu3  ;;  %v405_v36 = vadd.f32 %v404_v9, %v3892_v11  ;;  %v433_v18 = vpop.f32.mrf.mxu1  ;;  %v723_v62 = vrot.slane %v3990_v22, 1  ;;  %v704_v31 = vrot.slane %v3981_v27, 7 }
  0xe2   :  { %v734_v14 = vsel %vm554_vm1, %v733_v24, %v3953_v1  ;;  %v595_v6 = vsel %vm560_vm3, %v594_v33, %v593_v13  ;;  %v693_v35 = vsel %vm560_vm3, %v692_v52, %v691_v7  ;;  %v735_v37 = vrot.slane %v3981_v27, 2 }
  0xe3   :  { %v4022_v20 = vadd.f32 %v489_v54, %v461_v30  ;;  %v4027_v53 = vadd.f32 %v433_v18, %v405_v36  ;;  %v724_v9 = vsel %vm560_vm3, %v723_v62, %v722_v10  ;;  %v705_v55 = vsel %vm557_vm2, %v704_v31, %v703_v28 }
  0xe4   :  { %v4035_v1 = vsel %vm554_vm1, %v784_v19, %v3912_v3  ;;  %v757_v63 = vrot.slane %v3990_v22, 7 }
  0xe5   :  { %v577_v2 = vrot.slane %v4022_v20, 4  ;;  %v608_v13 = vrot.slane %v4022_v20, 3  ;;  %v641_v7 = vrot.slane %v4022_v20, 5  ;;  %v562_v24 = vrot.slane %v4027_v53, 3 }
  0xe6   :  { %v596_v10 = vrot.slane %v4027_v53, 2  ;;  %v629_v28 = vrot.slane %v4027_v53, 4  ;;  %v660_v33 = vrot.slane %v4027_v53, 1  ;;  %v672_v52 = vrot.slane %v4022_v20, 2 }
  0xe7   :  { %v578_v4 = vsel %vm560_vm3, %v577_v2, %v576_v25  ;;  %v609_v3 = vsel %vm560_vm3, %v608_v13, %v607_v50  ;;  %v642_v19 = vsel %vm560_vm3, %v641_v7, %v640_v16  ;;  %v564_v32 = vsel %vm563_vm4, %v562_v24, %v561_v39 }
  0xe8   :  { %v462_v26 = vpop.f32.mrf.mxu2  ;;  %v597_v30 = vsel %vm563_vm4, %v596_v10, %v595_v6  ;;  %v630_v54 = vsel %vm563_vm4, %v629_v28, %v628_v12  ;;  %v661_v36 = vsel %vm563_vm4, %v660_v33, %v659_v21  ;;  %v407_v31 = vpop.f32.mrf.mxu0  ;;  %v673_v25 = vsel %vm560_vm3, %v672_v52, %v671_v23 }
  0xe9   :  { %v463_v18 = vadd.f32 %v462_v26, %v3895_v15  ;;  %v491_v62 = vpop.f32.mrf.mxu3  ;;  %v694_v50 = vrot.slane %v4027_v53, 5  ;;  %v725_v16 = vsel %vm563_vm4, %v4027_v53, %v724_v9  ;;  %v408_v2 = vadd.f32 %v407_v31, %v3892_v11  ;;  %v436_v39 = vpop.f32.mrf.mxu1 }
  0xea   :  { %v706_v6 = vrot.slane %v4022_v20, 6  ;;  %v736_v12 = vsel %vm557_vm2, %v735_v37, %v734_v14  ;;  %v737_v21 = vrot.slane %v4022_v20, 1  ;;  %v758_v23 = vsel %vm560_vm3, %v757_v63, %v3988_v8 }
  0xeb   :  { %v4062_v13 = vadd.f32 %v491_v62, %v463_v18  ;;  %v695_v7 = vsel %vm563_vm4, %v694_v50, %v693_v35  ;;  %v759_v24 = vrot.slane %v4027_v53, 6  ;;  %v4068_v9 = vadd.f32 %v436_v39, %v408_v2 }
  0xec   :  { %v707_v10 = vsel %vm560_vm3, %v706_v6, %v705_v55  ;;  %v738_v28 = vsel %vm560_vm3, %v737_v21, %v736_v12  ;;  %v786_v14 = vrot.slane %v3950_v61, 1 }
  0xed   :  { %v579_v37 = vrot.slane %v4062_v13, 3  ;;  %v610_v33 = vrot.slane %v4062_v13, 2  ;;  %v643_v52 = vrot.slane %v4062_v13, 4  ;;  %v674_v35 = vrot.slane %v4062_v13, 1 }
  0xee   :  { %v565_v55 = vrot.slane %v4068_v9, 2  ;;  %v598_v63 = vrot.slane %v4068_v9, 1  ;;  %v631_v61 = vrot.slane %v4068_v9, 3  ;;  %v662_v26 = vsel %vm566_vm5, %v4068_v9, %v661_v36 }
  0xef   :  { %v580_v18 = vsel %vm563_vm4, %v579_v37, %v578_v4  ;;  %v611_v62 = vsel %vm563_vm4, %v610_v33, %v609_v3  ;;  %v644_v31 = vsel %vm563_vm4, %v643_v52, %v642_v19  ;;  %v675_v17 = vsel %vm563_vm4, %v674_v35, %v673_v25 }
  0xf0   :  { %v465_v34 = vpop.f32.mrf.mxu2  ;;  %v567_v50 = vsel %vm566_vm5, %v565_v55, %v564_v32  ;;  %v599_v2 = vsel %vm566_vm5, %v598_v63, %v597_v30  ;;  %v632_v39 = vsel %vm566_vm5, %v631_v61, %v630_v54  ;;  %v696_v6 = vrot.slane %v4068_v9, 4  ;;  %v409_v21 = vpop.f32.mrf.mxu0 }
  0xf1   :  { %v466_v12 = vadd.f32 %v465_v34, %v3895_v15  ;;  %v494_v36 = vpop.f32.mrf.mxu3  ;;  %v726_v4 = vrot.slane %v4068_v9, 7  ;;  %v708_v3 = vrot.slane %v4062_v13, 5  ;;  %v739_v19 = vsel %vm563_vm4, %v4062_v13, %v738_v28  ;;  %v438_v33 = vpop.f32.mrf.mxu1 }
  0xf2   :  { %v410_v25 = vadd.f32 %v409_v21, %v3892_v11  ;;  %v697_v32 = vsel %vm566_vm5, %v696_v6, %v695_v7  ;;  %v760_v30 = vsel %vm563_vm4, %v759_v24, %v758_v23  ;;  %v761_v54 = vrot.slane %v4068_v9, 5 }
  0xf3   :  { %v4105_v37 = vadd.f32 %v494_v36, %v466_v12  ;;  %v727_v52 = vsel %vm566_vm5, %v726_v4, %v725_v16  ;;  %v709_v35 = vsel %vm563_vm4, %v708_v3, %v707_v10  ;;  %v787_v55 = vsel %vm557_vm2, %v786_v14, %v4035_v1 }
  0xf4   :  { %v4111_v63 = vadd.f32 %v438_v33, %v410_v25  ;;  %v762_v11 = vsel %vm566_vm5, %v761_v54, %v760_v30  ;;  %v788_v7 = vsel %vm560_vm3, %v3990_v22, %v787_v55  ;;  %v789_v23 = vrot.slane %v4027_v53, 7 }
  0xf5   :  { %v5339_v24 = vand.u32 63, %v3993_v5  ;;  %v581_v16 = vrot.slane %v4105_v37, 2  ;;  %v612_v10 = vrot.slane %v4105_v37, 1  ;;  %v645_v1 = vrot.slane %v4105_v37, 3  ;;  %v2656_v5 = vld [vmem:[#allocation12 + $0x30] sm:$0xff] }
  0xf6   :  { %v676_v14 = vsel %vm566_vm5, %v4105_v37, %v675_v17  ;;  %v568_v61 = vrot.slane %v4111_v63, 1  ;;  %v4131_v22 = vsel %vm569_vm6, %v4111_v63, %v599_v2  ;;  %v633_v53 = vrot.slane %v4111_v63, 2 }
  0xf7   :  { %vm4119_vm8 = vcmp.lt.s32.totalorder %v5339_v24, 32  ;;  %v663_v34 = vrot.slane %v4111_v63, 7  ;;  %v582_v6 = vsel %vm566_vm5, %v581_v16, %v580_v18  ;;  %v613_v12 = vsel %vm566_vm5, %v612_v10, %v611_v62 }
  0xf8   :  { %v646_v36 = vsel %vm566_vm5, %v645_v1, %v644_v31  ;;  %v698_v21 = vrot.slane %v4111_v63, 3  ;;  %v467_v4 = vpop.f32.mrf.mxu2  ;;  %v4140_v17 = vsel %vm569_vm6, %v568_v61, %v567_v50  ;;  %v4143_v3 = vsel %vm569_vm6, %v633_v53, %v632_v39  ;;  %v859_v31 = vpop.f32.mrf.mxu0 }
  0xf9   :  { %v4146_v2 = vsel %vm569_vm6, %v663_v34, %v662_v26  ;;  %v728_v25 = vrot.slane %v4111_v63, 6  ;;  %v468_v18 = vadd.f32 %v467_v4, %v3895_v15  ;;  %v617_v62 = vsel %vm4079_vm7, %v4140_v17, %v4131_v22  ;;  %v496_v26 = vpop.f32.mrf.mxu3 }
  0xfa   :  { %v681_v50 = vsel %vm4079_vm7, %v4143_v3, %v4146_v2  ;;  %v4159_v39 = vsel %vm569_vm6, %v698_v21, %v697_v32  ;;  %v882_v30 = vadd.f32 %v859_v31, %v617_v62  ;;  %v710_v54 = vrot.slane %v4105_v37, 4 }
  0xfb   :  { %v4163_v15 = vsel %vm569_vm6, %v728_v25, %v727_v52  ;;  %v740_v33 = vrot.slane %v4105_v37, 7  ;;  %v4167_v55 = vadd.f32 %v496_v26, %v468_v18  ;;  %v763_v32 = vrot.slane %v4111_v63, 4  ;;  %v879_v25 = vpop.f32.mrf.mxu1 }
  0xfc   :  { %v746_v24 = vsel %vm4079_vm7, %v4159_v39, %v4163_v15  ;;  %v790_v16 = vsel %vm563_vm4, %v789_v23, %v788_v7  ;;  %v884_v10 = vmul.f32 0.5, %v882_v30  ;;  %v711_v1 = vsel %vm566_vm5, %v710_v54, %v709_v35 }
  0xfd   :  { %v741_v52 = vsel %vm566_vm5, %v740_v33, %v739_v19  ;;  %v791_v61 = vrot.slane %v4068_v9, 6  ;;  %v583_v53 = vrot.slane %v4167_v55, 1  ;;  %v4181_v34 = vsel %vm569_vm6, %v4167_v55, %v613_v12 }
  0xfe   :  { %v647_v21 = vrot.slane %v4167_v55, 2  ;;  %v677_v4 = vrot.slane %v4167_v55, 7  ;;  %3331 = vtanh.f32 %v884_v10  ;;  %v712_v7 = vrot.slane %v4167_v55, 3 }
  0xff   :  { %v742_v35 = vrot.slane %v4167_v55, 6  ;;  %v4188_v19 = vsel %vm569_vm6, %v763_v32, %v762_v11  ;;  %v4191_v9 = vsel %vm569_vm6, %v583_v53, %v582_v6  ;;  %v792_v18 = vsel %vm566_vm5, %v791_v61, %v790_v16 }
 0x100   :  { %v4194_v23 = vsel %vm569_vm6, %v647_v21, %v646_v36  ;;  %v4197_v12 = vsel %vm569_vm6, %v677_v4, %v676_v14  ;;  %v618_v62 = vsel %vm4119_vm8, %v4191_v9, %v4181_v34  ;;  %v4209_v6 = vsel %vm569_vm6, %v712_v7, %v711_v1 }
 0x101   :  { %v682_v11 = vsel %vm4119_vm8, %v4194_v23, %v4197_v12  ;;  %v4212_v36 = vsel %vm569_vm6, %v742_v35, %v741_v52  ;;  %v883_v14 = vadd.f32 %v879_v25, %v618_v62  ;;  %v793_v26 = vrot.slane %v4111_v63, 5 }
 0x102   :  { %v747_v31 = vsel %vm4119_vm8, %v4209_v6, %v4212_v36  ;;  %v5342_v30 = vrot.slane %v3900_v29, 3  ;;  %v5343_v54 = vrot.slane %v3908_v0, 2  ;;  %v768_v32 = vrot.slane %v3945_v51, 1 }
 0x103   :  { %v771_v16 = vrot.slane %v4022_v20, 7  ;;  %v773_v10 = vrot.slane %v4062_v13, 6  ;;  %v795_v1 = vrot.slane %v3900_v29, 4  ;;  %v885_v52 = vmul.f32 0.5, %v883_v14 }
 0x104   :  { %v767_v33 = vsel %vm551_vm0, %v5343_v54, %v5342_v30  ;;  %v4229_v61 = vsel %vm569_vm6, %v793_v26, %v792_v18  ;;  %v796_v63 = vrot.slane %v3908_v0, 3  ;;  %v798_v53 = vrot.slane %v3945_v51, 2  ;;  %v3332_v21 = vpop.eup %3331 }
 0x105   :  { %v811_v4 = vsel %vm4079_vm7, %v4188_v19, %v4229_v61  ;;  %v769_v25 = vsel %vm554_vm1, %v768_v32, %v767_v33  ;;  %v800_v7 = vrot.slane %v3981_v27, 1  ;;  %v887_v29 = vsel %vm531_vm9, %v883_v14, %v885_v52 }
 0x106   :  { %v770_v35 = vsel %vm557_vm2, %v3981_v27, %v769_v25  ;;  %v797_v0 = vsel %vm551_vm0, %v796_v63, %v795_v1  ;;  %3333 = vtanh.f32 %v887_v29  ;;  %v775_v26 = vrot.slane %v4105_v37, 5 }
 0x107   :  { %v772_v51 = vsel %vm560_vm3, %v771_v16, %v770_v35  ;;  %v799_v18 = vsel %vm554_vm1, %v798_v53, %v797_v0  ;;  %v803_v27 = vrot.slane %v4062_v13, 7  ;;  %v890_v32 = vmul.f32 0.5, %v3332_v21 }
 0x108   :  { %v774_v62 = vsel %vm563_vm4, %v773_v10, %v772_v51  ;;  %v801_v30 = vsel %vm557_vm2, %v800_v7, %v799_v18  ;;  %v777_v63 = vrot.slane %v4167_v55, 4  ;;  %v805_v7 = vrot.slane %v4105_v37, 6 }
 0x109   :  { %v802_v54 = vsel %vm560_vm3, %v4022_v20, %v801_v30  ;;  %v776_v14 = vsel %vm566_vm5, %v775_v26, %v774_v62  ;;  %v892_v10 = vadd.f32 0.5, %v890_v32  ;;  %v816_v21 = vsel %vm4079_vm7, %v4229_v61, %v4188_v19 }
 0x10a   :  { %v804_v1 = vsel %vm563_vm4, %v803_v27, %v802_v54  ;;  %v4258_v25 = vsel %vm569_vm6, %v777_v63, %v776_v14  ;;  %v821_v29 = vsel %vm4079_vm7, %v4163_v15, %v4159_v39  ;;  %v826_v37 = vsel %vm4079_vm7, %v4146_v2, %v4143_v3 }
 0x10b   :  { %v806_v13 = vsel %vm566_vm5, %v805_v7, %v804_v1  ;;  %v831_v35 = vsel %vm4079_vm7, %v4131_v22, %v4140_v17  ;;  %v807_v0 = vrot.slane %v4167_v55, 5  ;;  %v822_v26 = vsel %vm4119_vm8, %v4212_v36, %v4209_v6 }
 0x10c   :  { %v3334_v33 = vpop.eup %3333  ;;  %v827_v55 = vsel %vm4119_vm8, %v4197_v12, %v4194_v23  ;;  %v832_v30 = vsel %vm4119_vm8, %v4181_v34, %v4191_v9  ;;  %v896_v54 = vmul.f32 0.0, %v892_v10  ;;  %v3151_v12 = vld [vmem:[#allocation9 + $0x70] sm:$0xf] }
 0x10d   :  { %v891_v16 = vmul.f32 0.5, %v3334_v33  ;;  %v4281_v51 = vsel %vm569_vm6, %v807_v0, %v806_v13  ;;  %v3431_v0 = vld [vmem:[%s5315_s3 + $0x70] sm:$0xff] }
 0x10e   :  { %v812_v18 = vsel %vm4119_vm8, %v4258_v25, %v4281_v51  ;;  %v817_v62 = vsel %vm4119_vm8, %v4281_v51, %v4258_v25 }
 0x10f   :  { %v893_v52 = vadd.f32 0.5, %v891_v16 }
 0x111   :  { %v895_v53 = vsel %vm531_vm9, %v3334_v33, %v893_v52 }
 0x112   :  { %v897_v20 = vmul.f32 %v895_v53, %v892_v10 }
 0x114   :  { %899 = vrot.lane.b32.xlu0 %v897_v20, %s3595_s4 }
 0x186   :  { %v900_v14 = vpop.permute.xlu0 %899 }
 0x187   :  { %v902_v27 = vadd.f32 %v900_v14, %v896_v54  ;;  %v3432_v54 = vld [vmem:[%s5315_s3 + $0x78] sm:$0xff]  ;;  %v3433_v14 = vld [vmem:[%s5315_s3 + $0x60] sm:$0xff] }
 0x189   :  { %3335 = vtanh.f32 %v902_v27 }
 0x18f   :  { %v3336_v33 = vpop.eup %3335 }
 0x190   :  { %v4303_v32 = vmul.f32 %v3336_v33, %v895_v53  ;;  %v3435_v33 = vld [vmem:[%s5315_s3 + $0x50] sm:$0xff] }
 0x192   :  { %909 = vrot.lane.b32.xlu0 %v4303_v32, %s3595_s4 }
 0x204   :  { %v910_v1 = vpop.permute.xlu0 %909 }
 0x205   :  { %3047 = vmatmul.msk.f32.vlgmr.msrb.gmra.mxu2 %vm838_vm10, %v910_v1  ;;  %3048 = vmatmul.msk.f32.vlgmr.msrb.gmra.mxu3 %vm838_vm10, %v910_v1  ;;  %v3436_v1 = vld [vmem:[%s5315_s3 + $0x58] sm:$0xff] }
 0x206   :  { %1205 = vmatpush.msrb.mxu2 %v3700_v40  ;;  %1225 = vmatpush.msrb.mxu3 %v3694_v38 }
 0x208   :  { %1206 = vmatpush.msrb.mxu2 %v3711_v42  ;;  %1226 = vmatpush.msrb.mxu3 %v3705_v41 }
 0x20a   :  { %1207 = vmatpush.msrb.mxu2 %v3723_v44  ;;  %1227 = vmatpush.msrb.mxu3 %v3717_v43 }
 0x20c   :  { %1208 = vmatpush.msrb.mxu2 %v3737_v46  ;;  %1228 = vmatpush.msrb.mxu3 %v3730_v45 }
 0x20e   :  { %1209 = vmatpush.msrb.mxu2 %v3751_v48  ;;  %1229 = vmatpush.msrb.mxu3 %v3744_v47 }
 0x210   :  { %1210 = vmatpush.msrb.mxu2 %v3783_v56  ;;  %1230 = vmatpush.msrb.mxu3 %v3758_v49 }
 0x212   :  { %1211 = vmatpush.msrb.mxu2 %v3793_v58  ;;  %1231 = vmatpush.msrb.mxu3 %v3788_v57 }
 0x214   :  { %1212 = vmatpush.msrb.mxu2 %v3805_v60  ;;  %1232 = vmatpush.msrb.mxu3 %v3800_v59 }
 0x288   :  { %v930_v38 = vpop.f32.mrf.mxu2  ;;  %v950_v40 = vpop.f32.mrf.mxu3 }
 0x289   :  { %v953_v41 = vadd.f32 %v930_v38, %v681_v50  ;;  %v954_v42 = vadd.f32 %v950_v40, %v682_v11  ;;  %v3437_v38 = vld [vmem:[%s5315_s3 + $0x40] sm:$0xff]  ;;  %v3438_v40 = vld [vmem:[%s5315_s3 + $0x48] sm:$0xff] }
 0x28b   :  { %v955_v43 = vmul.f32 0.5, %v953_v41  ;;  %v956_v44 = vmul.f32 0.5, %v954_v42  ;;  %v3439_v41 = vld [vmem:[%s5315_s3 + $0x30] sm:$0xff] }
 0x28d   :  { %3337 = vtanh.f32 %v955_v43  ;;  %v958_v45 = vsel %vm531_vm9, %v954_v42, %v956_v44  ;;  %v3440_v42 = vld [vmem:[%s5315_s3 + $0x38] sm:$0xff]  ;;  %v3441_v43 = vld [vmem:[%s5315_s3 + $0x28] sm:$0xff] }
 0x28e   :  { %3339 = vtanh.f32 %v958_v45 }
 0x293   :  { %v3338_v46 = vpop.eup %3337 }
 0x294   :  { %v3340_v47 = vpop.eup %3339  ;;  %v961_v48 = vmul.f32 0.5, %v3338_v46 }
 0x295   :  { %v962_v49 = vmul.f32 0.5, %v3340_v47 }
 0x296   :  { %v963_v52 = vadd.f32 0.5, %v961_v48 }
 0x297   :  { %v964_v16 = vadd.f32 0.5, %v962_v49 }
 0x298   :  { %v967_v11 = vmul.f32 %v963_v52, %v902_v27  ;;  %v3434_v27 = vld [vmem:[%s5315_s3 + $0x68] sm:$0xff] }
 0x299   :  { %v966_v50 = vsel %vm531_vm9, %v3340_v47, %v964_v16 }
 0x29a   :  { %v968_v63 = vmul.f32 %v966_v50, %v963_v52 }
 0x29c   :  { %970 = vrot.lane.b32.xlu1 %v968_v63, %s3595_s4 }
 0x30e   :  { %v971_v10 = vpop.permute.xlu1 %970 }
 0x30f   :  { %v973_v53 = vadd.f32 %v971_v10, %v967_v11 }
 0x311   :  { %3341 = vtanh.f32 %v973_v53 }
 0x317   :  { %v3342_v20 = vpop.eup %3341 }
 0x318   :  { %v975_v7 = vmul.f32 %v3342_v20, %v966_v50 }
 0x31a   :  { %980 = vrot.lane.b32.xlu1 %v975_v7, %s3595_s4  ;;  %v976_v20 = vadd.f32 %v975_v7, %v4303_v32  ;;  %v3442_v32 = vld [vmem:[%s5315_s3 + $0x20] sm:$0xff]  ;;  %v3444_v7 = vld [vmem:[%s5315_s3 + $0x18] sm:$0xff] }
 0x38c   :  { %v981_v13 = vpop.permute.xlu1 %980 }
 0x38d   :  { %3049 = vmatmul.msk.f32.vlgmr.msra.gmra.mxu0 %vm838_vm10, %v981_v13  ;;  %3050 = vmatmul.msk.f32.vlgmr.msra.gmra.mxu1 %vm838_vm10, %v981_v13 }
 0x38e   :  { %1276 = vmatpush.msra.mxu0 %v3431_v0  ;;  %1296 = vmatpush.msra.mxu1 %v3432_v54 }
 0x390   :  { %1277 = vmatpush.msra.mxu0 %v3433_v14  ;;  %1297 = vmatpush.msra.mxu1 %v3434_v27 }
 0x392   :  { %1278 = vmatpush.msra.mxu0 %v3435_v33  ;;  %1298 = vmatpush.msra.mxu1 %v3436_v1 }
 0x394   :  { %1279 = vmatpush.msra.mxu0 %v3437_v38  ;;  %1299 = vmatpush.msra.mxu1 %v3438_v40 }
 0x396   :  { %1280 = vmatpush.msra.mxu0 %v3439_v41  ;;  %1300 = vmatpush.msra.mxu1 %v3440_v42 }
 0x398   :  { %1281 = vmatpush.msra.mxu0 %v3783_v56  ;;  %1301 = vmatpush.msra.mxu1 %v3441_v43 }
 0x39a   :  { %1282 = vmatpush.msra.mxu0 %v3793_v58  ;;  %1302 = vmatpush.msra.mxu1 %v3788_v57 }
 0x39c   :  { %1283 = vmatpush.msra.mxu0 %v3805_v60  ;;  %1303 = vmatpush.msra.mxu1 %v3800_v59 }
 0x40a   :  { %v1001_v44 = vpop.f32.mrf.mxu0  ;;  %v1021_v45 = vpop.f32.mrf.mxu1 }
 0x40b   :  { %v1024_v56 = vadd.f32 %v1001_v44, %v746_v24  ;;  %v1025_v58 = vadd.f32 %v1021_v45, %v747_v31 }
 0x40d   :  { %v1026_v46 = vmul.f32 0.5, %v1024_v56  ;;  %v1027_v57 = vmul.f32 0.5, %v1025_v58 }
 0x40f   :  { %3343 = vtanh.f32 %v1026_v46  ;;  %v1029_v59 = vsel %vm531_vm9, %v1025_v58, %v1027_v57 }
 0x410   :  { %3345 = vtanh.f32 %v1029_v59 }
 0x415   :  { %v3344_v60 = vpop.eup %3343 }
 0x416   :  { %v3346_v47 = vpop.eup %3345  ;;  %v1032_v48 = vmul.f32 0.5, %v3344_v60 }
 0x417   :  { %v1033_v49 = vmul.f32 0.5, %v3346_v47 }
 0x418   :  { %v1034_v52 = vadd.f32 0.5, %v1032_v48 }
 0x419   :  { %v1035_v16 = vadd.f32 0.5, %v1033_v49 }
 0x41a   :  { %v1038_v31 = vmul.f32 %v1034_v52, %v973_v53  ;;  %v3443_v53 = vld [vmem:[%s5315_s3 + $0x10] sm:$0xff] }
 0x41b   :  { %v1037_v24 = vsel %vm531_vm9, %v3346_v47, %v1035_v16 }
 0x41c   :  { %v1039_v50 = vmul.f32 %v1037_v24, %v1034_v52 }
 0x41e   :  { %1041 = vrot.lane.b32.xlu2 %v1039_v50, %s3595_s4 }
 0x478   :  { %v1042_v63 = vpop.permute.xlu2 %1041 }
 0x479   :  { %v1044_v11 = vadd.f32 %v1042_v63, %v1038_v31 }
 0x47b   :  { %3347 = vtanh.f32 %v1044_v11 }
 0x481   :  { %v3348_v10 = vpop.eup %3347 }
 0x482   :  { %v1046_v13 = vmul.f32 %v3348_v10, %v1037_v24 }
 0x484   :  { %1051 = vrot.lane.b32.xlu2 %v1046_v13, %s3595_s4  ;;  %v1047_v44 = vadd.f32 %v1046_v13, %v976_v20 }
 0x4de   :  { %v1052_v45 = vpop.permute.xlu2 %1051 }
 0x4df   :  { %3051 = vmatmul.msk.f32.vlgmr.msra.gmra.mxu2 %vm838_vm10, %v1052_v45  ;;  %3052 = vmatmul.msk.f32.vlgmr.msra.gmra.mxu3 %vm838_vm10, %v1052_v45 }
 0x4e0   :  { %1347 = vmatpush.msra.mxu2 %v3431_v0  ;;  %1367 = vmatpush.msra.mxu3 %v3432_v54  ;;  %v3445_v0 = vld [vmem:[%s5315_s3] sm:$0xff]  ;;  %v3446_v54 = vld [vmem:[%s5315_s3 + $0x8] sm:$0xff] }
 0x4e2   :  { %1348 = vmatpush.msra.mxu2 %v3433_v14  ;;  %1368 = vmatpush.msra.mxu3 %v3434_v27 }
 0x4e4   :  { %1349 = vmatpush.msra.mxu2 %v3435_v33  ;;  %1369 = vmatpush.msra.mxu3 %v3436_v1 }
 0x4e6   :  { %1350 = vmatpush.msra.mxu2 %v3437_v38  ;;  %1370 = vmatpush.msra.mxu3 %v3438_v40 }
 0x4e8   :  { %1351 = vmatpush.msra.mxu2 %v3439_v41  ;;  %1371 = vmatpush.msra.mxu3 %v3440_v42 }
 0x4ea   :  { %1352 = vmatpush.msra.mxu2 %v3442_v32  ;;  %1372 = vmatpush.msra.mxu3 %v3441_v43 }
 0x4ec   :  { %1353 = vmatpush.msra.mxu2 %v3443_v53  ;;  %1373 = vmatpush.msra.mxu3 %v3444_v7 }
 0x4ee   :  { %1354 = vmatpush.msra.mxu2 %v3445_v0  ;;  %1374 = vmatpush.msra.mxu3 %v3446_v54 }
 0x562   :  { %v1072_v14 = vpop.f32.mrf.mxu2  ;;  %v1092_v27 = vpop.f32.mrf.mxu3 }
 0x563   :  { %v1095_v33 = vadd.f32 %v1072_v14, %v811_v4  ;;  %v1096_v1 = vadd.f32 %v1092_v27, %v812_v18 }
 0x565   :  { %v1097_v38 = vmul.f32 0.5, %v1095_v33  ;;  %v1098_v40 = vmul.f32 0.5, %v1096_v1 }
 0x567   :  { %3349 = vtanh.f32 %v1097_v38  ;;  %v1100_v41 = vsel %vm531_vm9, %v1096_v1, %v1098_v40 }
 0x568   :  { %3351 = vtanh.f32 %v1100_v41 }
 0x56d   :  { %v3350_v42 = vpop.eup %3349 }
 0x56e   :  { %v3352_v43 = vpop.eup %3351  ;;  %v1103_v56 = vmul.f32 0.5, %v3350_v42 }
 0x56f   :  { %v1104_v58 = vmul.f32 0.5, %v3352_v43 }
 0x570   :  { %v1105_v57 = vadd.f32 0.5, %v1103_v56 }
 0x571   :  { %v1106_v46 = vadd.f32 0.5, %v1104_v58 }
 0x572   :  { %v1109_v18 = vmul.f32 %v1105_v57, %v1044_v11 }
 0x573   :  { %v1108_v4 = vsel %vm531_vm9, %v3352_v43, %v1106_v46 }
 0x574   :  { %v1110_v59 = vmul.f32 %v1108_v4, %v1105_v57 }
 0x576   :  { %1112 = vrot.lane.b32.xlu0 %v1110_v59, %s3595_s4 }
 0x5e8   :  { %v1113_v60 = vpop.permute.xlu0 %1112 }
 0x5e9   :  { %v1115_v47 = vadd.f32 %v1113_v60, %v1109_v18 }
 0x5eb   :  { %3353 = vtanh.f32 %v1115_v47 }
 0x5f1   :  { %v3354_v48 = vpop.eup %3353 }
 0x5f2   :  { %v1117_v49 = vmul.f32 %v3354_v48, %v1108_v4 }
 0x5f4   :  { %1122 = vrot.lane.b32.xlu1 %v1117_v49, %s3595_s4  ;;  %v1118_v16 = vadd.f32 %v1117_v49, %v1047_v44 }
 0x666   :  { %v1123_v52 = vpop.permute.xlu1 %1122 }
 0x667   :  { %3053 = vmatmul.msk.f32.vlgmr.msrb.gmra.mxu0 %vm838_vm10, %v1123_v52  ;;  %3054 = vmatmul.msk.f32.vlgmr.msrb.gmra.mxu1 %vm838_vm10, %v1123_v52 }
 0x6e4   :  { %v1143_v24 = vpop.f32.mrf.mxu0  ;;  %v1163_v50 = vpop.f32.mrf.mxu1 }
 0x6e5   :  { %v1166_v31 = vadd.f32 %v1143_v24, %v816_v21  ;;  %v1167_v63 = vadd.f32 %v1163_v50, %v817_v62 }
 0x6e7   :  { %v1168_v11 = vmul.f32 0.5, %v1166_v31  ;;  %v1169_v10 = vmul.f32 0.5, %v1167_v63 }
 0x6e9   :  { %3355 = vtanh.f32 %v1168_v11  ;;  %v1171_v20 = vsel %vm531_vm9, %v1167_v63, %v1169_v10 }
 0x6ea   :  { %3357 = vtanh.f32 %v1171_v20 }
 0x6ef   :  { %v3356_v13 = vpop.eup %3355 }
 0x6f0   :  { %v3358_v44 = vpop.eup %3357  ;;  %v1174_v45 = vmul.f32 0.5, %v3356_v13 }
 0x6f1   :  { %v1175_v32 = vmul.f32 0.5, %v3358_v44 }
 0x6f2   :  { %v1176_v19 = vadd.f32 0.5, %v1174_v45  ;;  %v3143_v45 = vld [vmem:[#allocation9 + $0x60] sm:$0xf] }
 0x6f3   :  { %v1177_v53 = vadd.f32 0.5, %v1175_v32  ;;  %v3300_v32 = vld [vmem:[#allocation9 + $0x64] sm:$0xf0] }
 0x6f4   :  { %v1180_v25 = vmul.f32 %v1176_v19, %v1115_v47 }
 0x6f5   :  { %v1179_v61 = vsel %vm531_vm9, %v3358_v44, %v1177_v53  ;;  %v3318_v44 = vld [vmem:[#allocation9 + $0xf4] sm:$0xf0] }
 0x6f6   :  { %v1181_v21 = vmul.f32 %v1179_v61, %v1176_v19  ;;  %v3207_v19 = vld [vmem:[#allocation9 + $0xe0] sm:$0xf] }
 0x6f8   :  { %1183 = vrot.lane.b32.xlu2 %v1181_v21, %s3595_s4  ;;  %v3144_v21 = vor.u32 %v3300_v32, %v3143_v45  ;;  %v3313_v45 = vld [vmem:[#allocation9 + $0xd4] sm:$0xf]  ;;  %v3201_v32 = vld [vmem:[#allocation9 + $0xd8] sm:$0xf0] }
 0x752   :  { %v1184_v51 = vpop.permute.xlu2 %1183 }
 0x753   :  { %v1186_v62 = vadd.f32 %v1184_v51, %v1180_v25  ;;  %v3135_v51 = vld [vmem:[#allocation9 + $0x50] sm:$0xf] }
 0x755   :  { %3359 = vtanh.f32 %v1186_v62 }
 0x75b   :  { %v3360_v7 = vpop.eup %3359 }
 0x75c   :  { %v1188_v0 = vmul.f32 %v3360_v7, %v1179_v61  ;;  %v3316_v61 = vld [vmem:[#allocation9 + $0xe4] sm:$0xf0]  ;;  %v3199_v7 = vld [vmem:[#allocation9 + $0xd0] sm:$0xf] }
 0x75d   :  { %v3208_v25 = vor.u32 %v3316_v61, %v3207_v19  ;;  %v3095_v19 = vld [vmem:[#allocation9] sm:$0xf]  ;;  %v3288_v61 = vld [vmem:[#allocation9 + $0x4] sm:$0xf0] }
 0x75e   :  { %1193 = vrot.lane.b32.xlu0 %v1188_v0, %s3595_s4  ;;  %v1189_v54 = vadd.f32 %v1188_v0, %v1118_v16  ;;  %v3314_v0 = vld [vmem:[#allocation9 + $0xd4] sm:$0xf0] }
 0x7d0   :  { %v1194_v14 = vpop.permute.xlu0 %1193 }
 0x7d1   :  { %3055 = vmatmul.msk.f32.vlgmr.msrb.gmra.mxu2 %vm838_vm10, %v1194_v14  ;;  %3056 = vmatmul.msk.f32.vlgmr.msrb.gmra.mxu3 %vm838_vm10, %v1194_v14  ;;  %v3200_v14 = vor.u32 %v3314_v0, %v3199_v7  ;;  %v3204_v7 = vor.u32 %v3313_v45, %v3201_v32  ;;  %v3295_v0 = vld [vmem:[#allocation9 + $0x44] sm:$0xf]  ;;  %v3169_v45 = vld [vmem:[#allocation9 + $0x98] sm:$0xf0] }
 0x7d2   :  { %v3287_v32 = vld [vmem:[#allocation9 + $0x4] sm:$0xf] }
 0x854   :  { %v1214_v27 = vpop.f32.mrf.mxu2  ;;  %v1234_v33 = vpop.f32.mrf.mxu3 }
 0x855   :  { %v1237_v1 = vadd.f32 %v1214_v27, %v821_v29  ;;  %v1238_v38 = vadd.f32 %v1234_v33, %v822_v26  ;;  %v3127_v27 = vld [vmem:[#allocation9 + $0x40] sm:$0xf]  ;;  %v3296_v33 = vld [vmem:[#allocation9 + $0x44] sm:$0xf0] }
 0x857   :  { %v1239_v40 = vmul.f32 0.5, %v1237_v1  ;;  %v1240_v41 = vmul.f32 0.5, %v1238_v38  ;;  %v3191_v1 = vld [vmem:[#allocation9 + $0xc0] sm:$0xf] }
 0x859   :  { %3361 = vtanh.f32 %v1239_v40  ;;  %v1242_v42 = vsel %vm531_vm9, %v1238_v38, %v1240_v41  ;;  %v3312_v38 = vld [vmem:[#allocation9 + $0xc4] sm:$0xf0]  ;;  %v3128_v40 = vor.u32 %v3296_v33, %v3127_v27  ;;  %v3311_v33 = vld [vmem:[#allocation9 + $0xc4] sm:$0xf] }
 0x85a   :  { %3363 = vtanh.f32 %v1242_v42  ;;  %v3192_v41 = vor.u32 %v3312_v38, %v3191_v1  ;;  %v3119_v42 = vld [vmem:[#allocation9 + $0x30] sm:$0xf]  ;;  %v3280_v27 = vld [vmem:[#allocation5 + $0x4] sm:$0xf0]  ;;  %v3193_v1 = vld [vmem:[#allocation9 + $0xc8] sm:$0xf0] }
 0x85f   :  { %v3362_v43 = vpop.eup %3361 }
 0x860   :  { %v3364_v56 = vpop.eup %3363  ;;  %v1245_v58 = vmul.f32 0.5, %v3362_v43  ;;  %v3294_v43 = vld [vmem:[#allocation9 + $0x34] sm:$0xf0] }
 0x861   :  { %v1246_v46 = vmul.f32 0.5, %v3364_v56 }
 0x862   :  { %v1247_v39 = vadd.f32 0.5, %v1245_v58  ;;  %v3310_v58 = vld [vmem:[#allocation9 + $0xb4] sm:$0xf0] }
 0x863   :  { %v1248_v57 = vadd.f32 0.5, %v1246_v46  ;;  %v3120_v46 = vor.u32 %v3294_v43, %v3119_v42 }
 0x864   :  { %v1251_v6 = vmul.f32 %v1247_v39, %v1186_v62  ;;  %v3298_v62 = vld [vmem:[#allocation9 + $0x54] sm:$0xf0] }
 0x865   :  { %v1250_v15 = vsel %vm531_vm9, %v3364_v56, %v1248_v57  ;;  %v3183_v56 = vld [vmem:[#allocation9 + $0xb0] sm:$0xf] }
 0x866   :  { %v1252_v29 = vmul.f32 %v1250_v15, %v1247_v39  ;;  %v3184_v57 = vor.u32 %v3310_v58, %v3183_v56  ;;  %v3111_v39 = vld [vmem:[#allocation9 + $0x20] sm:$0xf] }
 0x868   :  { %1254 = vrot.lane.b32.xlu1 %v1252_v29, %s3595_s4  ;;  %v3175_v29 = vld [vmem:[#allocation9 + $0xa0] sm:$0xf] }
 0x8da   :  { %v1255_v36 = vpop.permute.xlu1 %1254 }
 0x8db   :  { %v4466_v26 = vadd.f32 %v1255_v36, %v1251_v6  ;;  %v3308_v6 = vld [vmem:[#allocation9 + $0xa4] sm:$0xf0]  ;;  %v3301_v36 = vld [vmem:[#allocation9 + $0x74] sm:$0xf] }
 0x8dd   :  { %3365 = vtanh.f32 %v4466_v26 }
 0x8e3   :  { %v3366_v4 = vpop.eup %3365 }
 0x8e4   :  { %v1259_v59 = vmul.f32 %v3366_v4, %v1250_v15  ;;  %v3292_v15 = vld [vmem:[#allocation9 + $0x24] sm:$0xf0]  ;;  %v3153_v4 = vld [vmem:[#allocation9 + $0x78] sm:$0xf0] }
 0x8e6   :  { %1264 = vrot.lane.b32.xlu2 %v1259_v59, %s3595_s4  ;;  %v4470_v18 = vadd.f32 %v1259_v59, %v1189_v54  ;;  %v3136_v54 = vor.u32 %v3298_v62, %v3135_v51  ;;  %v3317_v59 = vld [vmem:[#allocation9 + $0xf4] sm:$0xf]  ;;  %v3063_v62 = vld [vmem:[#allocation5] sm:$0xf] }
 0x8e7   :  { %v4497_v58 = vor.u32 %v3280_v27, %v3063_v62  ;;  %v3286_v62 = vld [vmem:[#allocation5 + $0x34] sm:$0xf0]  ;;  %v3089_v27 = vld [vmem:[#allocation5 + $0x38] sm:$0xf0] }
 0x940   :  { %v1265_v60 = vpop.permute.xlu2 %1264 }
 0x941   :  { %3057 = vmatmul.msk.f32.vlgmr.msra.gmra.mxu0 %vm838_vm10, %v1265_v60  ;;  %3058 = vmatmul.msk.f32.vlgmr.msra.gmra.mxu1 %vm838_vm10, %v1265_v60 }
 0x9be   :  { %v1285_v47 = vpop.f32.mrf.mxu0  ;;  %v1305_v48 = vpop.f32.mrf.mxu1 }
 0x9bf   :  { %v1308_v49 = vadd.f32 %v1285_v47, %v826_v37  ;;  %v1309_v16 = vadd.f32 %v1305_v48, %v827_v55  ;;  %v3302_v37 = vld [vmem:[#allocation9 + $0x74] sm:$0xf0]  ;;  %v3215_v55 = vld [vmem:[#allocation9 + $0xf0] sm:$0xf]  ;;  %v3112_v47 = vor.u32 %v3292_v15, %v3111_v39  ;;  %v3293_v15 = vld [vmem:[#allocation9 + $0x34] sm:$0xf] }
 0x9c0   :  { %v3152_v13 = vor.u32 %v3302_v37, %v3151_v12  ;;  %v3216_v53 = vor.u32 %v3318_v44, %v3215_v55  ;;  %v3103_v48 = vld [vmem:[#allocation9 + $0x10] sm:$0xf]  ;;  %v3306_v12 = vld [vmem:[#allocation9 + $0x94] sm:$0xf0]  ;;  %v3297_v55 = vld [vmem:[#allocation9 + $0x54] sm:$0xf] }
 0x9c1   :  { %v1310_v52 = vmul.f32 0.5, %v1308_v49  ;;  %v1311_v24 = vmul.f32 0.5, %v1309_v16  ;;  %v3290_v49 = vld [vmem:[#allocation9 + $0x14] sm:$0xf0] }
 0x9c2   :  { %1666 = vmatpush.bf16.msrb.mxu0 %v3152_v13  ;;  %1695 = vmatpush.bf16.msrb.mxu1 %v3216_v53  ;;  %v3137_v13 = vld [vmem:[#allocation9 + $0x58] sm:$0xf0]  ;;  %v3104_v44 = vor.u32 %v3290_v49, %v3103_v48 }
 0x9c3   :  { %3367 = vtanh.f32 %v1310_v52  ;;  %v1313_v50 = vsel %vm531_vm9, %v1309_v16, %v1311_v24  ;;  %v3156_v16 = vor.u32 %v3301_v36, %v3153_v4  ;;  %v3217_v52 = vld [vmem:[#allocation9 + $0xf8] sm:$0xf0]  ;;  %v3140_v51 = vor.u32 %v3297_v55, %v3137_v13  ;;  %v3305_v13 = vld [vmem:[#allocation9 + $0x94] sm:$0xf] }
 0x9c4   :  { %3369 = vtanh.f32 %v1313_v50  ;;  %v3176_v50 = vor.u32 %v3308_v6, %v3175_v29  ;;  %v3121_v29 = vld [vmem:[#allocation9 + $0x38] sm:$0xf0] }
 0x9c5   :  { %1724 = vmatpush.bf16.msrb.mxu2 %v3156_v16  ;;  %v3124_v6 = vor.u32 %v3293_v15, %v3121_v29  ;;  %v3185_v36 = vld [vmem:[#allocation9 + $0xb8] sm:$0xf0]  ;;  %v3071_v16 = vld [vmem:[#allocation5 + $0x10] sm:$0xf]  ;;  %v4551_v15 = vld [vmem:[#allocation10] sm:$0xff]  ;;  %v5347_v29 = vmov 0.0  }
 0x9c6   :  { %1667 = vmatpush.bf16.msrb.mxu0 %v3144_v21  ;;  %1696 = vmatpush.bf16.msrb.mxu1 %v3208_v25  ;;  %v3159_v21 = vld [vmem:[#allocation9 + $0x80] sm:$0xf]  ;;  %v3304_v25 = vld [vmem:[#allocation9 + $0x84] sm:$0xf0]  ;;  %v3105_v55 = vld [vmem:[#allocation9 + $0x18] sm:$0xf0] }
 0x9c7   :  { %v3160_v38 = vor.u32 %v3304_v25, %v3159_v21  ;;  %v3161_v21 = vld [vmem:[#allocation9 + $0x88] sm:$0xf0]  ;;  %v3087_v25 = vld [vmem:[#allocation5 + $0x30] sm:$0xf]  ;;  %5346 = vst [vmem:[#allocation18_spill] sm:$0xff] %v4551_v15 }
 0x9c9   :  { %v3368_v31 = vpop.eup %3367 }
 0x9ca   :  { %v3370_v63 = vpop.eup %3369  ;;  %v1316_v11 = vmul.f32 0.5, %v3368_v31  ;;  %1668 = vmatpush.bf16.msrb.mxu0 %v3136_v54  ;;  %1697 = vmatpush.bf16.msrb.mxu1 %v3200_v14  ;;  %v3220_v31 = vor.u32 %v3317_v59, %v3217_v52  ;;  %v3129_v54 = vld [vmem:[#allocation9 + $0x48] sm:$0xf0]  ;;  %v3096_v14 = vor.u32 %v3288_v61, %v3095_v19  ;;  %v3291_v59 = vld [vmem:[#allocation9 + $0x24] sm:$0xf]  ;;  %v3172_v19 = vor.u32 %v3305_v13, %v3169_v45 }
 0x9cb   :  { %v1317_v10 = vmul.f32 0.5, %v3370_v63  ;;  %v3132_v43 = vor.u32 %v3295_v0, %v3129_v54  ;;  %v3282_v52 = vld [vmem:[#allocation5 + $0x14] sm:$0xf0]  ;;  %v3303_v61 = vld [vmem:[#allocation9 + $0x84] sm:$0xf]  ;;  %v4519_v0 = vor.u32 %v3286_v62, %v3087_v25  ;;  %v4522_v54 = vld [vmem:[#allocation10 + $0x70] sm:$0xff] }
 0x9cc   :  { %v1318_v3 = vadd.f32 0.5, %v1316_v11  ;;  %v3145_v11 = vld [vmem:[#allocation9 + $0x68] sm:$0xf0]  ;;  %1753 = vmatpush.bf16.msrb.mxu3 %v3220_v31  ;;  %v4507_v31 = vor.u32 %v3282_v52, %v3071_v16 }
 0x9cd   :  { %v1319_v20 = vadd.f32 0.5, %v1317_v10  ;;  %v3315_v10 = vld [vmem:[#allocation9 + $0xe4] sm:$0xf] }
 0x9ce   :  { %1669 = vmatpush.bf16.msrb.mxu0 %v3128_v40  ;;  %1698 = vmatpush.bf16.msrb.mxu1 %v3192_v41  ;;  %v1322_v60 = vmul.f32 %v1318_v3, %v4466_v26  ;;  %v3209_v26 = vld [vmem:[#allocation9 + $0xe8] sm:$0xf0]  ;;  %v3279_v40 = vld [vmem:[#allocation5 + $0x4] sm:$0xf] }
 0x9cf   :  { %v4488_v2 = vsel %vm531_vm9, %v3370_v63, %v1319_v20  ;;  %v3299_v63 = vld [vmem:[#allocation9 + $0x64] sm:$0xf]  ;;  %v3065_v41 = vld [vmem:[#allocation5 + $0x8] sm:$0xf0] }
 0x9d0   :  { %v1323_v23 = vmul.f32 %v4488_v2, %v1318_v3  ;;  %v3148_v37 = vor.u32 %v3299_v63, %v3145_v11  ;;  %v3212_v3 = vor.u32 %v3315_v10, %v3209_v26  ;;  %v3079_v11 = vld [vmem:[#allocation5 + $0x20] sm:$0xf]  ;;  %v3284_v10 = vld [vmem:[#allocation5 + $0x24] sm:$0xf0] }
 0x9d2   :  { %1325 = vrot.lane.b32.xlu0 %v1323_v23, %s3595_s4  ;;  %1670 = vmatpush.bf16.msrb.mxu0 %v3120_v46  ;;  %v3167_v23 = vld [vmem:[#allocation9 + $0x90] sm:$0xf]  ;;  %v3196_v46 = vor.u32 %v3311_v33, %v3193_v1  ;;  %v4527_v1 = vld [vmem:[#allocation10 + $0x60] sm:$0xff] }
 0x9d3   :  { %1699 = vmatpush.bf16.msrb.mxu1 %v3184_v57  ;;  %v3168_v53 = vor.u32 %v3306_v12, %v3167_v23  ;;  %1725 = vmatpush.bf16.msrb.mxu2 %v3148_v37  ;;  %v4499_v57 = vor.u32 %v3279_v40, %v3065_v41  ;;  %v3283_v23 = vld [vmem:[#allocation5 + $0x24] sm:$0xf]  ;;  %v3081_v12 = vld [vmem:[#allocation5 + $0x28] sm:$0xf0]  ;;  %v4513_v37 = vor.u32 %v3284_v10, %v3079_v11  ;;  %v4531_v40 = vld [vmem:[#allocation10 + $0x50] sm:$0xff] }
 0x9d4   :  { %1754 = vmatpush.bf16.msrb.mxu3 %v3212_v3  ;;  %v4515_v26 = vor.u32 %v3283_v23, %v3081_v12  ;;  %v3289_v3 = vld [vmem:[#allocation9 + $0x14] sm:$0xf]  ;;  %v4536_v41 = vld [vmem:[#allocation10 + $0x68] sm:$0xff] }
 0x9d6   :  { %1671 = vmatpush.bf16.msrb.mxu0 %v3112_v47  ;;  %v3307_v47 = vld [vmem:[#allocation9 + $0xa4] sm:$0xf] }
 0x9d7   :  { %1700 = vmatpush.bf16.msrb.mxu1 %v3176_v50  ;;  %1726 = vmatpush.bf16.msrb.mxu2 %v3140_v51  ;;  %v3073_v50 = vld [vmem:[#allocation5 + $0x18] sm:$0xf0] }
 0x9d8   :  { %1755 = vmatpush.bf16.msrb.mxu3 %v3204_v7  ;;  %v3164_v7 = vor.u32 %v3303_v61, %v3161_v21 }
 0x9da   :  { %1672 = vmatpush.bf16.msrb.mxu0 %v3104_v44  ;;  %v3108_v44 = vor.u32 %v3289_v3, %v3105_v55 }
 0x9db   :  { %1701 = vmatpush.bf16.msrb.mxu1 %v3168_v53  ;;  %1727 = vmatpush.bf16.msrb.mxu2 %v3132_v43  ;;  %v3097_v53 = vld [vmem:[#allocation9 + $0x8] sm:$0xf0]  ;;  %v4542_v43 = vld [vmem:[#allocation10 + $0x30] sm:$0xff] }
 0x9dc   :  { %1756 = vmatpush.bf16.msrb.mxu3 %v3196_v46  ;;  %v3100_v51 = vor.u32 %v3287_v32, %v3097_v53  ;;  %v4548_v46 = vld [vmem:[#allocation10 + $0x10] sm:$0xff] }
 0x9de   :  { %1673 = vmatpush.bf16.msrb.mxu0 %v3096_v14  ;;  %v3285_v14 = vld [vmem:[#allocation5 + $0x34] sm:$0xf] }
 0x9df   :  { %1702 = vmatpush.bf16.msrb.mxu1 %v3160_v38  ;;  %1728 = vmatpush.bf16.msrb.mxu2 %v3124_v6  ;;  %v4525_v33 = vor.u32 %v3285_v14, %v3089_v27  ;;  %v4529_v38 = vld [vmem:[#allocation10 + $0x78] sm:$0xff]  ;;  %v4558_v6 = vld [vmem:[#allocation10 + $0x48] sm:$0xff] }
 0x9e1   :  { %1674 = vmatmul.bf16.vlgmr.msrb.gmra.mxu0 %v4497_v58 }
 0x9e2   :  { %1703 = vmatmul.bf16.vlgmr.msrb.gmra.mxu1 %v4499_v57  ;;  %2087 = vmatpush.msra.mxu0 %v4522_v54 }
 0x9e3   :  { %2107 = vmatpush.msra.mxu1 %v4529_v38 }
 0x9e4   :  { %2088 = vmatpush.msra.mxu0 %v4527_v1 }
 0x9e5   :  { %2108 = vmatpush.msra.mxu1 %v4536_v41 }
 0x9e6   :  { %2089 = vmatpush.msra.mxu0 %v4531_v40 }
 0x9f1   :  { %1679 = vmatmul.bf16.gmra.mxu0 %v4507_v31 }
 0xa01   :  { %1684 = vmatmul.bf16.gmra.mxu0 %v4513_v37 }
 0xa11   :  { %1689 = vmatmul.bf16.gmra.mxu0 %v4519_v0 }
 0xa44   :  { %v1326_v24 = vpop.permute.xlu0 %1325 }
 0xa45   :  { %v4493_v20 = vadd.f32 %v1326_v24, %v1322_v60  ;;  %v3113_v60 = vld [vmem:[#allocation9 + $0x28] sm:$0xf0]  ;;  %v3281_v24 = vld [vmem:[#allocation5 + $0x14] sm:$0xf] }
 0xa46   :  { %v3116_v48 = vor.u32 %v3291_v59, %v3113_v60  ;;  %v4509_v63 = vor.u32 %v3281_v24, %v3073_v50  ;;  %v4583_v59 = vld [vmem:[#allocation10 + $0x28] sm:$0xff] }
 0xa47   :  { %5344 = vst [vmem:[#allocation16_spill] sm:$0xff] %v4493_v20  ;;  %3371 = vtanh.f32 %v4493_v20 }
 0xa48   :  { %1729 = vmatpush.bf16.msrb.mxu2 %v3116_v48  ;;  %1708 = vmatmul.bf16.gmra.mxu1 %v4509_v63 }
 0xa4c   :  { %1730 = vmatpush.bf16.msrb.mxu2 %v3108_v44 }
 0xa4d   :  { %v3372_v42 = vpop.eup %3371 }
 0xa4e   :  { %v1330_v56 = vmul.f32 %v3372_v42, %v4488_v2  ;;  %v3309_v2 = vld [vmem:[#allocation9 + $0xb4] sm:$0xf]  ;;  %v4538_v42 = vld [vmem:[#allocation10 + $0x40] sm:$0xff] }
 0xa4f   :  { %v3188_v4 = vor.u32 %v3309_v2, %v3185_v36  ;;  %2090 = vmatpush.msra.mxu0 %v4538_v42  ;;  %v4556_v2 = vld [vmem:[#allocation10 + $0x58] sm:$0xff] }
 0xa50   :  { %1335 = vrot.lane.b32.xlu1 %v1330_v56, %s3595_s4  ;;  %v4503_v39 = vadd.f32 %v1330_v56, %v4470_v18  ;;  %v3177_v18 = vld [vmem:[#allocation9 + $0xa8] sm:$0xf0]  ;;  %1731 = vmatpush.bf16.msrb.mxu2 %v3100_v51  ;;  %v4545_v56 = vld [vmem:[#allocation10 + $0x20] sm:$0xff] }
 0xa51   :  { %1757 = vmatpush.bf16.msrb.mxu3 %v3188_v4  ;;  %v3180_v49 = vor.u32 %v3307_v47, %v3177_v18  ;;  %2091 = vmatpush.msra.mxu0 %v4542_v43  ;;  %v4581_v4 = vld [vmem:[#allocation10 + $0x38] sm:$0xff] }
 0xa52   :  { %5345 = vst [vmem:[#allocation17_spill] sm:$0xff] %v4503_v39  ;;  %2109 = vmatpush.msra.mxu1 %v4556_v2 }
 0xa53   :  { %2092 = vmatpush.msra.mxu0 %v4545_v56 }
 0xa54   :  { %2110 = vmatpush.msra.mxu1 %v4558_v6 }
 0xa55   :  { %1758 = vmatpush.bf16.msrb.mxu3 %v3180_v49  ;;  %2093 = vmatpush.msra.mxu0 %v4548_v46 }
 0xa56   :  { %2111 = vmatpush.msra.mxu1 %v4581_v4 }
 0xa57   :  { %2094 = vmatpush.msra.mxu0 %v4551_v15 }
 0xa58   :  { %1713 = vmatmul.bf16.gmra.mxu1 %v4515_v26  ;;  %2095 = vmatmul.f32.vlgmr.msra.gmra.mxu0 %v5347_v29 }
 0xa59   :  { %1759 = vmatpush.bf16.msrb.mxu3 %v3172_v19  ;;  %2229 = vmatpush.msrb.mxu0 %v4522_v54 }
 0xa5a   :  { %2112 = vmatpush.msra.mxu1 %v4583_v59 }
 0xa5b   :  { %2230 = vmatpush.msrb.mxu0 %v4527_v1 }
 0xa5d   :  { %1760 = vmatpush.bf16.msrb.mxu3 %v3164_v7  ;;  %2231 = vmatpush.msrb.mxu0 %v4531_v40 }
 0xa5e   :  { %v1675_v60 = vpop.f32.mrf.mxu0 }
 0xa5f   :  { %2232 = vmatpush.msrb.mxu0 %v4538_v42  ;;  %v1704_v47 = vpop.f32.mrf.mxu1 }
 0xa61   :  { %2233 = vmatpush.msrb.mxu0 %v4542_v43 }
 0xa63   :  { %2234 = vmatpush.msrb.mxu0 %v4545_v56 }
 0xa65   :  { %2235 = vmatpush.msrb.mxu0 %v4548_v46 }
 0xa66   :  { %v1677_v48 = vpop.f32.mrf.mxu0 }
 0xa67   :  { %2236 = vmatpush.msrb.mxu0 %v4551_v15  ;;  %v1706_v18 = vpop.f32.mrf.mxu1 }
 0xa68   :  { %1718 = vmatmul.bf16.gmra.mxu1 %v4525_v33 }
 0xa69   :  { %2371 = vmatpush.msra.mxu0 %v4522_v54 }
 0xa6b   :  { %2372 = vmatpush.msra.mxu0 %v4527_v1 }
 0xa6d   :  { %2373 = vmatpush.msra.mxu0 %v4531_v40 }
 0xa6e   :  { %v1680_v49 = vpop.f32.mrf.mxu0 }
 0xa6f   :  { %2374 = vmatpush.msra.mxu0 %v4538_v42 }
 0xa71   :  { %2375 = vmatpush.msra.mxu0 %v4542_v43 }
 0xa73   :  { %2376 = vmatpush.msra.mxu0 %v4545_v56 }
 0xa75   :  { %2377 = vmatpush.msra.mxu0 %v4548_v46 }
 0xa76   :  { %v1682_v52 = vpop.f32.mrf.mxu0 }
 0xa77   :  { %2378 = vmatpush.msra.mxu0 %v4551_v15 }
 0xa7e   :  { %v1685_v50 = vpop.f32.mrf.mxu0 }
 0xa86   :  { %v1687_v11 = vpop.f32.mrf.mxu0 }
 0xa8e   :  { %v1690_v53 = vpop.f32.mrf.mxu0 }
 0xac2   :  { %v1336_v36 = vpop.permute.xlu1 %1335 }
 0xac3   :  { %3059 = vmatmul.msk.f32.vlgmr.msra.gmra.mxu2 %vm838_vm10, %v1336_v36  ;;  %3060 = vmatmul.msk.f32.vlgmr.msra.gmra.mxu3 %vm838_vm10, %v1336_v36 }
 0xac4   :  { %2178 = vmatpush.msra.mxu3 %v4529_v38  ;;  %2158 = vmatpush.msra.mxu2 %v4522_v54 }
 0xac5   :  { %v1709_v16 = vpop.f32.mrf.mxu1 }
 0xac6   :  { %2179 = vmatpush.msra.mxu3 %v4536_v41  ;;  %2159 = vmatpush.msra.mxu2 %v4527_v1 }
 0xac8   :  { %2180 = vmatpush.msra.mxu3 %v4556_v2  ;;  %2160 = vmatpush.msra.mxu2 %v4531_v40 }
 0xaca   :  { %2181 = vmatpush.msra.mxu3 %v4558_v6  ;;  %2161 = vmatpush.msra.mxu2 %v4538_v42 }
 0xacb   :  { %1732 = vmatmul.bf16.vlgmr.msrb.gmra.mxu2 %v4497_v58  ;;  %1761 = vmatmul.bf16.vlgmr.msrb.gmra.mxu3 %v4499_v57  ;;  %v4606_v58 = vld [vmem:[#allocation10 + $0x18] sm:$0xff]  ;;  %v4608_v57 = vld [vmem:[#allocation10 + $0x8] sm:$0xff] }
 0xacc   :  { %2182 = vmatpush.msra.mxu3 %v4581_v4  ;;  %2162 = vmatpush.msra.mxu2 %v4542_v43  ;;  %5348 = vst [vmem:[#allocation19_spill] sm:$0xff] %v4606_v58 }
 0xacd   :  { %5349 = vst [vmem:[#allocation20_spill] sm:$0xff] %v4608_v57  ;;  %2113 = vmatpush.msra.mxu1 %v4606_v58  ;;  %v1711_v24 = vpop.f32.mrf.mxu1 }
 0xace   :  { %2183 = vmatpush.msra.mxu3 %v4583_v59  ;;  %2163 = vmatpush.msra.mxu2 %v4545_v56 }
 0xacf   :  { %2114 = vmatpush.msra.mxu1 %v4608_v57 }
 0xad0   :  { %2164 = vmatpush.msra.mxu2 %v4548_v46  ;;  %2184 = vmatpush.msra.mxu3 %v4606_v58 }
 0xad1   :  { %2115 = vmatmul.f32.vlgmr.msra.gmra.mxu1 %v5347_v29 }
 0xad2   :  { %2165 = vmatpush.msra.mxu2 %v4551_v15  ;;  %2185 = vmatpush.msra.mxu3 %v4608_v57 }
 0xad3   :  { %2249 = vmatpush.msrb.mxu1 %v4529_v38 }
 0xad4   :  { %2300 = vmatpush.msrb.mxu2 %v4522_v54  ;;  %2320 = vmatpush.msrb.mxu3 %v4529_v38 }
 0xad5   :  { %2250 = vmatpush.msrb.mxu1 %v4536_v41 }
 0xad6   :  { %2301 = vmatpush.msrb.mxu2 %v4527_v1  ;;  %2321 = vmatpush.msrb.mxu3 %v4536_v41 }
 0xad7   :  { %2251 = vmatpush.msrb.mxu1 %v4556_v2 }
 0xad8   :  { %2302 = vmatpush.msrb.mxu2 %v4531_v40  ;;  %2322 = vmatpush.msrb.mxu3 %v4556_v2 }
 0xad9   :  { %2252 = vmatpush.msrb.mxu1 %v4558_v6 }
 0xada   :  { %2303 = vmatpush.msrb.mxu2 %v4538_v42  ;;  %2323 = vmatpush.msrb.mxu3 %v4558_v6 }
 0xadb   :  { %1737 = vmatmul.bf16.gmra.mxu2 %v4507_v31  ;;  %1766 = vmatmul.bf16.gmra.mxu3 %v4509_v63  ;;  %v1714_v31 = vpop.f32.mrf.mxu1  ;;  %v1460_v63 = vld [vmem:[%s5319_s7] sm:$0x3] }
 0xadc   :  { %2304 = vmatpush.msrb.mxu2 %v4542_v43  ;;  %2324 = vmatpush.msrb.mxu3 %v4581_v4  ;;  %v1462_v10 = vperm.slane %v1460_v63, 0 }
 0xadd   :  { %2253 = vmatpush.msrb.mxu1 %v4581_v4 }
 0xade   :  { %2305 = vmatpush.msrb.mxu2 %v4545_v56  ;;  %2325 = vmatpush.msrb.mxu3 %v4583_v59  ;;  %v1676_v12 = vadd.f32 %v1675_v60, %v1462_v10  ;;  %v1681_v55 = vadd.f32 %v1680_v49, %v1462_v10  ;;  %v1683_v19 = vadd.f32 %v1682_v52, %v1462_v10  ;;  %v1692_v60 = vpop.f32.mrf.mxu0 }
 0xadf   :  { %2254 = vmatpush.msrb.mxu1 %v4583_v59  ;;  %v1688_v7 = vadd.f32 %v1687_v11, %v1462_v10  ;;  %v1691_v36 = vadd.f32 %v1690_v53, %v1462_v10  ;;  %v1693_v52 = vadd.f32 %v1692_v60, %v1462_v10 }
 0xae0   :  { %2306 = vmatpush.msrb.mxu2 %v4548_v46  ;;  %2326 = vmatpush.msrb.mxu3 %v4606_v58  ;;  %v4666_v45 = vadd.f32 %v1704_v47, %v1676_v12  ;;  %v4670_v61 = vadd.f32 %v1709_v16, %v1681_v55  ;;  %v4675_v51 = vadd.f32 %v1711_v24, %v1683_v19 }
 0xae1   :  { %2255 = vmatpush.msrb.mxu1 %v4606_v58 }
 0xae2   :  { %2307 = vmatpush.msrb.mxu2 %v4551_v15  ;;  %2327 = vmatpush.msrb.mxu3 %v4608_v57  ;;  %v1828_v22 = vrot.slane %v4666_v45, 7  ;;  %v1831_v62 = vrot.slane %v4670_v61, 5  ;;  %v1833_v29 = vrot.slane %v4675_v51, 4 }
 0xae3   :  { %2256 = vmatpush.msrb.mxu1 %v4608_v57  ;;  %v1716_v23 = vpop.f32.mrf.mxu1 }
 0xae5   :  { %2391 = vmatpush.msra.mxu1 %v4529_v38 }
 0xae6   :  { %v2096_v60 = vpop.f32.mrf.mxu0 }
 0xae7   :  { %2392 = vmatpush.msra.mxu1 %v4536_v41 }
 0xae9   :  { %2393 = vmatpush.msra.mxu1 %v4556_v2 }
 0xaeb   :  { %1742 = vmatmul.bf16.gmra.mxu2 %v4513_v37  ;;  %1771 = vmatmul.bf16.gmra.mxu3 %v4515_v26  ;;  %v1678_v37 = vadd.f32 %v1677_v48, %v1462_v10  ;;  %v1719_v25 = vpop.f32.mrf.mxu1 }
 0xaec   :  { %2394 = vmatpush.msra.mxu1 %v4558_v6  ;;  %v4694_v12 = vadd.f32 %v1719_v25, %v1691_v36 }
 0xaed   :  { %v4668_v32 = vadd.f32 %v1706_v18, %v1678_v37  ;;  %v4688_v18 = vadd.f32 %v1716_v23, %v1688_v7 }
 0xaee   :  { %2395 = vmatpush.msra.mxu1 %v4581_v4  ;;  %v1839_v19 = vrot.slane %v4694_v12, 1 }
 0xaef   :  { %v1798_v21 = vrot.slane %v4668_v32, 7  ;;  %v1829_v17 = vrot.slane %v4668_v32, 6 }
 0xaf0   :  { %2396 = vmatpush.msra.mxu1 %v4583_v59 }
 0xaf1   :  { %v1830_v14 = vsel %vm551_vm0, %v1829_v17, %v1828_v22 }
 0xaf2   :  { %2397 = vmatpush.msra.mxu1 %v4606_v58  ;;  %v1832_v48 = vsel %vm554_vm1, %v1831_v62, %v1830_v14 }
 0xaf3   :  { %v1834_v11 = vsel %vm557_vm2, %v1833_v29, %v1832_v48  ;;  %v1721_v37 = vpop.f32.mrf.mxu1 }
 0xaf4   :  { %2398 = vmatpush.msra.mxu1 %v4608_v57  ;;  %v4700_v53 = vadd.f32 %v1721_v37, %v1693_v52  ;;  %v1862_v37 = vrot.slane %v4666_v45, 1 }
 0xaf6   :  { %v1810_v17 = vrot.slane %v4700_v53, 1 }
 0xafb   :  { %1747 = vmatmul.bf16.gmra.mxu2 %v4519_v0  ;;  %1776 = vmatmul.bf16.gmra.mxu3 %v4525_v33  ;;  %v1799_v0 = vsel %vm551_vm0, %v1798_v21, %v4666_v45  ;;  %v1802_v33 = vrot.slane %v4675_v51, 5 }
 0xb46   :  { %v1356_v26 = vpop.f32.mrf.mxu2  ;;  %v1376_v3 = vpop.f32.mrf.mxu3 }
 0xb47   :  { %v4657_v13 = vadd.f32 %v1356_v26, %v831_v35  ;;  %v4664_v44 = vadd.f32 %v1376_v3, %v832_v30  ;;  %v1686_v35 = vadd.f32 %v1685_v50, %v1462_v10  ;;  %v1800_v30 = vrot.slane %v4670_v61, 6 }
 0xb48   :  { %v1806_v26 = vrot.slane %v4688_v18, 3  ;;  %v1837_v3 = vrot.slane %v4688_v18, 2  ;;  %v1808_v10 = vrot.slane %v4694_v12, 2 }
 0xb49   :  { %5350 = vst [vmem:[#allocation21_spill] sm:$0xff] %v4657_v13  ;;  %v4682_v27 = vadd.f32 %v1714_v31, %v1686_v35  ;;  %v1801_v47 = vsel %vm554_vm1, %v1800_v30, %v1799_v0  ;;  %v4707_v30 = vperm.slane %v1460_v63, 1 }
 0xb4a   :  { %5351 = vst [vmem:[#allocation22_spill] sm:$0xff] %v4664_v44  ;;  %v1803_v31 = vsel %vm557_vm2, %v1802_v33, %v1801_v47 }
 0xb4b   :  { %v1804_v49 = vrot.slane %v4682_v27, 4  ;;  %v1835_v16 = vrot.slane %v4682_v27, 3 }
 0xb4d   :  { %v1805_v23 = vsel %vm560_vm3, %v1804_v49, %v1803_v31  ;;  %v1836_v55 = vsel %vm560_vm3, %v1835_v16, %v1834_v11 }
 0xb4e   :  { %v1733_v34 = vpop.f32.mrf.mxu2  ;;  %v1762_v9 = vpop.f32.mrf.mxu3  ;;  %v1807_v21 = vsel %vm563_vm4, %v1806_v26, %v1805_v23  ;;  %v1838_v22 = vsel %vm563_vm4, %v1837_v3, %v1836_v55  ;;  %v1892_v26 = vrot.slane %v4666_v45, 6  ;;  %v1893_v3 = vrot.slane %v4668_v32, 5 }
 0xb4f   :  { %v1809_v62 = vsel %vm566_vm5, %v1808_v10, %v1807_v21  ;;  %v1840_v7 = vsel %vm566_vm5, %v1839_v19, %v1838_v22  ;;  %v1734_v29 = vadd.f32 %v1733_v34, %v4707_v30 }
 0xb50   :  { %v4713_v14 = vsel %vm569_vm6, %v1810_v17, %v1809_v62  ;;  %v4717_v33 = vsel %vm569_vm6, %v4700_v53, %v1840_v7  ;;  %v1863_v17 = vsel %vm551_vm0, %v4668_v32, %v1862_v37 }
 0xb51   :  { %5352 = vst [vmem:[#allocation23_spill] sm:$0xff] %v4713_v14  ;;  %v1858_v63 = vsel %vm4079_vm7, %v4713_v14, %v4717_v33 }
 0xb52   :  { %5353 = vst [vmem:[#allocation24_spill] sm:$0xff] %v4717_v33  ;;  %v2119_v52 = vadd.f32 %v2096_v60, %v1858_v63 }
 0xb54   :  { %v2121_v11 = vmul.f32 0.5, %v2119_v52 }
 0xb56   :  { %v1735_v24 = vpop.f32.mrf.mxu2  ;;  %v1764_v50 = vpop.f32.mrf.mxu3  ;;  %3373 = vtanh.f32 %v2121_v11  ;;  %v1937_v11 = vrot.slane %v4694_v12, 4 }
 0xb57   :  { %v1736_v0 = vadd.f32 %v1735_v24, %v4707_v30  ;;  %v4728_v24 = vadd.f32 %v1762_v9, %v1734_v29  ;;  %v1894_v29 = vsel %vm551_vm0, %v1893_v3, %v1892_v26 }
 0xb59   :  { %v4720_v36 = vadd.f32 %v1764_v50, %v1736_v0  ;;  %v1842_v10 = vrot.slane %v4728_v24, 7  ;;  %v1868_v0 = vrot.slane %v4682_v27, 5 }
 0xb5b   :  { %v1812_v50 = vrot.slane %v4720_v36, 7  ;;  %v1843_v22 = vrot.slane %v4720_v36, 6 }
 0xb5d   :  { %v1813_v23 = vsel %vm551_vm0, %v1812_v50, %v4728_v24  ;;  %v1872_v50 = vrot.slane %v4694_v12, 3  ;;  %v1844_v37 = vsel %vm551_vm0, %v1843_v22, %v1842_v10 }
 0xb5e   :  { %v1738_v35 = vpop.f32.mrf.mxu2  ;;  %v1767_v25 = vpop.f32.mrf.mxu3 }
 0xb5f   :  { %v1739_v47 = vadd.f32 %v1738_v35, %v4707_v30  ;;  %v1864_v35 = vrot.slane %v4670_v61, 7 }
 0xb61   :  { %v4730_v31 = vadd.f32 %v1767_v25, %v1739_v47  ;;  %v1866_v25 = vrot.slane %v4675_v51, 6  ;;  %v1865_v60 = vsel %vm554_vm1, %v1864_v35, %v1863_v17  ;;  %v1870_v47 = vrot.slane %v4688_v18, 4 }
 0xb63   :  { %v1814_v55 = vrot.slane %v4730_v31, 6  ;;  %v1845_v7 = vrot.slane %v4730_v31, 5  ;;  %v1867_v52 = vsel %vm557_vm2, %v1866_v25, %v1865_v60  ;;  %v1878_v20 = vrot.slane %v4730_v31, 7 }
 0xb64   :  { %v1869_v26 = vsel %vm560_vm3, %v1868_v0, %v1867_v52  ;;  %v1928_v52 = vrot.slane %v4668_v32, 1  ;;  %v1909_v13 = vrot.slane %v4730_v31, 4 }
 0xb65   :  { %v1846_v35 = vsel %vm554_vm1, %v1845_v7, %v1844_v37  ;;  %v1901_v7 = vrot.slane %v4688_v18, 1 }
 0xb66   :  { %v1740_v48 = vpop.f32.mrf.mxu2  ;;  %v1769_v49 = vpop.f32.mrf.mxu3 }
 0xb67   :  { %v1741_v16 = vadd.f32 %v1740_v48, %v4707_v30  ;;  %v1895_v48 = vrot.slane %v4670_v61, 4 }
 0xb69   :  { %v4732_v34 = vadd.f32 %v1769_v49, %v1741_v16  ;;  %v1815_v16 = vsel %vm554_vm1, %v1814_v55, %v1813_v23  ;;  %v1896_v3 = vsel %vm554_vm1, %v1895_v48, %v1894_v29  ;;  %v1899_v23 = vrot.slane %v4682_v27, 2 }
 0xb6b   :  { %v1816_v9 = vrot.slane %v4732_v34, 5  ;;  %v1847_v63 = vrot.slane %v4732_v34, 4 }
 0xb6d   :  { %v1817_v55 = vsel %vm557_vm2, %v1816_v9, %v1815_v16  ;;  %v1848_v25 = vsel %vm557_vm2, %v1847_v63, %v1846_v35  ;;  %v1876_v9 = vrot.slane %v4728_v24, 1  ;;  %v1927_v63 = vrot.slane %v4666_v45, 2 }
 0xb6e   :  { %v1743_v19 = vpop.f32.mrf.mxu2  ;;  %v1772_v21 = vpop.f32.mrf.mxu3 }
 0xb6f   :  { %v1744_v62 = vadd.f32 %v1743_v19, %v4707_v30  ;;  %v1897_v19 = vrot.slane %v4675_v51, 3  ;;  %v1877_v37 = vsel %vm551_vm0, %v4720_v36, %v1876_v9 }
 0xb71   :  { %v4756_v49 = vadd.f32 %v1772_v21, %v1744_v62  ;;  %v1871_v21 = vsel %vm563_vm4, %v1870_v47, %v1869_v26  ;;  %v1898_v10 = vsel %vm557_vm2, %v1897_v19, %v1896_v3  ;;  %v1906_v26 = vrot.slane %v4728_v24, 6 }
 0xb72   :  { %v4774_v62 = vsel %vm566_vm5, %v1872_v50, %v1871_v21  ;;  %v1900_v16 = vsel %vm560_vm3, %v1899_v23, %v1898_v10  ;;  %v1931_v50 = vrot.slane %v4675_v51, 7  ;;  %v1907_v3 = vrot.slane %v4720_v36, 5 }
 0xb73   :  { %v1818_v17 = vrot.slane %v4756_v49, 4  ;;  %v1849_v22 = vrot.slane %v4756_v49, 3  ;;  %v1933_v19 = vrot.slane %v4682_v27, 6  ;;  %v1929_v21 = vsel %vm551_vm0, %v1928_v52, %v1927_v63 }
 0xb74   :  { %v1935_v23 = vrot.slane %v4688_v18, 5  ;;  %v1902_v10 = vsel %vm563_vm4, %v1901_v7, %v1900_v16  ;;  %v1930_v9 = vsel %vm554_vm1, %v4670_v61, %v1929_v21  ;;  %v1958_v52 = vrot.slane %v4668_v32, 4 }
 0xb75   :  { %v1819_v47 = vsel %vm560_vm3, %v1818_v17, %v1817_v55  ;;  %v1850_v35 = vsel %vm560_vm3, %v1849_v22, %v1848_v25  ;;  %v4796_v55 = vpop.eup %3373  ;;  %v1932_v25 = vsel %vm557_vm2, %v1931_v50, %v1930_v9  ;;  %v1957_v22 = vrot.slane %v4666_v45, 5 }
 0xb76   :  { %v1745_v29 = vpop.f32.mrf.mxu2  ;;  %v1774_v60 = vpop.f32.mrf.mxu3  ;;  %v1934_v63 = vsel %vm560_vm3, %v1933_v19, %v1932_v25  ;;  %v1960_v7 = vrot.slane %v4670_v61, 3  ;;  %v1962_v16 = vrot.slane %v4675_v51, 2  ;;  %v1939_v21 = vrot.slane %v4700_v53, 3 }
 0xb77   :  { %v1746_v48 = vadd.f32 %v1745_v29, %v4707_v30  ;;  %v1908_v29 = vsel %vm551_vm0, %v1907_v3, %v1906_v26  ;;  %v4813_v26 = vsel %vm566_vm5, %v4694_v12, %v1902_v10  ;;  %v1936_v3 = vsel %vm563_vm4, %v1935_v23, %v1934_v63 }
 0xb78   :  { %v1964_v50 = vrot.slane %v4682_v27, 1  ;;  %v1938_v33 = vsel %vm566_vm5, %v1937_v11, %v1936_v3  ;;  %v1959_v14 = vsel %vm551_vm0, %v1958_v52, %v1957_v22  ;;  %v1967_v23 = vrot.slane %v4694_v12, 7 }
 0xb79   :  { %v4791_v17 = vadd.f32 %v1774_v60, %v1746_v48  ;;  %v1961_v10 = vsel %vm554_vm1, %v1960_v7, %v1959_v14  ;;  %v1969_v63 = vrot.slane %v4700_v53, 6  ;;  %v1972_v14 = vrot.slane %v4720_v36, 4 }
 0xb7a   :  { %v1879_v22 = vsel %vm554_vm1, %v1878_v20, %v1877_v37  ;;  %v1910_v52 = vsel %vm554_vm1, %v1909_v13, %v1908_v29  ;;  %v1971_v3 = vrot.slane %v4728_v24, 5  ;;  %v1974_v37 = vrot.slane %v4730_v31, 3 }
 0xb7b   :  { %v1820_v60 = vrot.slane %v4791_v17, 3  ;;  %v1851_v48 = vrot.slane %v4791_v17, 2 }
 0xb7c   :  { %v1973_v13 = vsel %vm551_vm0, %v1972_v14, %v1971_v3  ;;  %v1880_v3 = vrot.slane %v4732_v34, 6 }
 0xb7d   :  { %v1821_v19 = vsel %vm563_vm4, %v1820_v60, %v1819_v47  ;;  %v1852_v25 = vsel %vm563_vm4, %v1851_v48, %v1850_v35  ;;  %v1963_v47 = vsel %vm557_vm2, %v1962_v16, %v1961_v10  ;;  %v1942_v35 = vrot.slane %v4720_v36, 1 }
 0xb7e   :  { %v1748_v9 = vpop.f32.mrf.mxu2  ;;  %v1777_v0 = vpop.f32.mrf.mxu3  ;;  %v1965_v11 = vsel %vm560_vm3, %v1964_v50, %v1963_v47  ;;  %v1941_v48 = vrot.slane %v4728_v24, 2 }
 0xb7f   :  { %v1749_v39 = vadd.f32 %v1748_v9, %v4707_v30  ;;  %v1966_v7 = vsel %vm563_vm4, %v4688_v18, %v1965_v11  ;;  %v4845_v9 = vsel %vm569_vm6, %v1939_v21, %v1938_v33  ;;  %v1975_v33 = vsel %vm554_vm1, %v1974_v37, %v1973_v13 }
 0xb80   :  { %v1943_v50 = vsel %vm551_vm0, %v1942_v35, %v1941_v48  ;;  %v1993_v21 = vrot.slane %v4668_v32, 2  ;;  %v1995_v11 = vrot.slane %v4670_v61, 1  ;;  %v1998_v48 = vrot.slane %v4682_v27, 7 }
 0xb81   :  { %v4830_v60 = vadd.f32 %v1777_v0, %v1749_v39  ;;  %v1968_v0 = vsel %vm566_vm5, %v1967_v23, %v1966_v7  ;;  %v1944_v20 = vsel %vm554_vm1, %v4730_v31, %v1943_v50  ;;  %v1992_v23 = vrot.slane %v4666_v45, 3 }
 0xb82   :  { %v4854_v47 = vsel %vm569_vm6, %v1969_v63, %v1968_v0  ;;  %v2004_v63 = vrot.slane %v4700_v53, 4  ;;  %v1976_v0 = vrot.slane %v4732_v34, 2  ;;  %v2023_v37 = vrot.slane %v4668_v32, 3 }
 0xb83   :  { %v1822_v16 = vrot.slane %v4830_v60, 2  ;;  %v1853_v39 = vrot.slane %v4830_v60, 1  ;;  %v1994_v13 = vsel %vm551_vm0, %v1993_v21, %v1992_v23  ;;  %v2116_v21 = vpop.f32.mrf.mxu1 }
 0xb84   :  { %v1977_v15 = vsel %vm557_vm2, %v1976_v0, %v1975_v33  ;;  %v1996_v23 = vsel %vm554_vm1, %v1995_v11, %v1994_v13  ;;  %v2034_v11 = vrot.slane %v4700_v53, 5  ;;  %v1947_v0 = vrot.slane %v4756_v49, 6 }
 0xb85   :  { %v1823_v29 = vsel %vm566_vm5, %v1822_v16, %v1821_v19  ;;  %v1854_v10 = vsel %vm566_vm5, %v1853_v39, %v1852_v25  ;;  %v2000_v19 = vrot.slane %v4688_v18, 6  ;;  %v2002_v25 = vrot.slane %v4694_v12, 5 }
 0xb86   :  { %v1750_v35 = vpop.f32.mrf.mxu2  ;;  %v1779_v7 = vpop.f32.mrf.mxu3  ;;  %v1911_v16 = vrot.slane %v4732_v34, 3  ;;  %v1945_v39 = vrot.slane %v4732_v34, 7  ;;  %v1997_v32 = vsel %vm557_vm2, %v4675_v51, %v1996_v23  ;;  %v1978_v13 = vrot.slane %v4756_v49, 1 }
 0xb87   :  { %v1751_v14 = vadd.f32 %v1750_v35, %v4707_v30  ;;  %v2022_v30 = vrot.slane %v4666_v45, 4  ;;  %v1881_v35 = vsel %vm557_vm2, %v1880_v3, %v1879_v22  ;;  %v2025_v22 = vrot.slane %v4670_v61, 2 }
 0xb88   :  { %v1912_v44 = vsel %vm557_vm2, %v1911_v16, %v1910_v52  ;;  %v1946_v57 = vsel %vm557_vm2, %v1945_v39, %v1944_v20  ;;  %v2027_v52 = vrot.slane %v4675_v51, 1  ;;  %v2030_v20 = vrot.slane %v4688_v18, 7 }
 0xb89   :  { %v4869_v50 = vadd.f32 %v1779_v7, %v1751_v14  ;;  %v2024_v45 = vsel %vm551_vm0, %v2023_v37, %v2022_v30  ;;  %v2032_v7 = vrot.slane %v4694_v12, 6  ;;  %v2006_v18 = vrot.slane %v4728_v24, 3 }
 0xb8a   :  { %v2026_v51 = vsel %vm554_vm1, %v2025_v22, %v2024_v45  ;;  %v2007_v12 = vrot.slane %v4720_v36, 2  ;;  %v1913_v39 = vrot.slane %v4756_v49, 2 }
 0xb8b   :  { %v1824_v58 = vrot.slane %v4869_v50, 1  ;;  %v4881_v14 = vsel %vm569_vm6, %v4869_v50, %v1854_v10  ;;  %v1999_v10 = vsel %vm560_vm3, %v1998_v48, %v1997_v32  ;;  %v1882_v48 = vrot.slane %v4756_v49, 5 }
 0xb8c   :  { %v2001_v61 = vsel %vm563_vm4, %v2000_v19, %v1999_v10  ;;  %v1914_v45 = vsel %vm560_vm3, %v1913_v39, %v1912_v44  ;;  %v1979_v32 = vsel %vm560_vm3, %v1978_v13, %v1977_v15  ;;  %v2012_v10 = vrot.slane %v4756_v49, 7 }
 0xb8d   :  { %v4891_v33 = vsel %vm569_vm6, %v1824_v58, %v1823_v29  ;;  %v2003_v58 = vsel %vm566_vm5, %v2002_v25, %v2001_v61  ;;  %v2028_v29 = vsel %vm557_vm2, %v2027_v52, %v2026_v51  ;;  %v2008_v25 = vsel %vm551_vm0, %v2007_v12, %v2006_v18 }
 0xb8e   :  { %v1859_v3 = vsel %vm4119_vm8, %v4891_v33, %v4881_v14  ;;  %v4911_v30 = vsel %vm569_vm6, %v2004_v63, %v2003_v58  ;;  %v2029_v37 = vsel %vm560_vm3, %v4682_v27, %v2028_v29  ;;  %v1883_v23 = vsel %vm560_vm3, %v1882_v48, %v1881_v35 }
 0xb8f   :  { %v2120_v16 = vadd.f32 %v2116_v21, %v1859_v3  ;;  %v1948_v21 = vsel %vm560_vm3, %v1947_v0, %v1946_v57  ;;  %v2031_v52 = vsel %vm563_vm4, %v2030_v20, %v2029_v37  ;;  %v2009_v63 = vrot.slane %v4730_v31, 1 }
 0xb90   :  { %v2033_v27 = vsel %vm566_vm5, %v2032_v7, %v2031_v52  ;;  %v2036_v35 = vrot.slane %v4728_v24, 4  ;;  %v2037_v44 = vrot.slane %v4720_v36, 3  ;;  %v2039_v3 = vrot.slane %v4730_v31, 2 }
 0xb91   :  { %v2122_v19 = vmul.f32 0.5, %v2120_v16  ;;  %v4929_v57 = vsel %vm569_vm6, %v2034_v11, %v2033_v27  ;;  %v2010_v15 = vsel %vm554_vm1, %v2009_v63, %v2008_v25  ;;  %v2041_v20 = vrot.slane %v4732_v34, 1 }
 0xb92   :  { %v5354_v61 = vrot.slane %v4700_v53, 2  ;;  %v2011_v24 = vsel %vm557_vm2, %v4732_v34, %v2010_v15  ;;  %v2038_v36 = vsel %vm551_vm0, %v2037_v44, %v2036_v35  ;;  %v2057_v7 = vsel %vm4079_vm7, %v4929_v57, %v4911_v30 }
 0xb93   :  { %v2124_v22 = vsel %vm531_vm9, %v2120_v16, %v2122_v19  ;;  %v5355_v31 = vrot.slane %v4700_v53, 7  ;;  %v2013_v18 = vsel %vm560_vm3, %v2012_v10, %v2011_v24  ;;  %v2062_v34 = vsel %vm4079_vm7, %v4854_v47, %v4845_v9 }
 0xb94   :  { %3375 = vtanh.f32 %v2124_v22  ;;  %v4938_v51 = vsel %vm569_vm6, %v5354_v61, %v4774_v62  ;;  %v2040_v62 = vsel %vm554_vm1, %v2039_v3, %v2038_v36  ;;  %v1884_v16 = vrot.slane %v4791_v17, 4 }
 0xb95   :  { %v4951_v11 = vsel %vm569_vm6, %v5355_v31, %v4813_v26  ;;  %v1915_v58 = vrot.slane %v4791_v17, 1  ;;  %v1949_v29 = vrot.slane %v4791_v17, 5  ;;  %v1980_v53 = vsel %vm563_vm4, %v4791_v17, %v1979_v32 }
 0xb96   :  { %v2127_v26 = vmul.f32 0.5, %v4796_v55  ;;  %v2014_v12 = vrot.slane %v4791_v17, 6  ;;  %v2042_v48 = vsel %vm557_vm2, %v2041_v20, %v2040_v62  ;;  %v1885_v0 = vsel %vm563_vm4, %v1884_v16, %v1883_v23 }
 0xb97   :  { %v1916_v13 = vsel %vm563_vm4, %v1915_v58, %v1914_v45  ;;  %v1950_v19 = vsel %vm563_vm4, %v1949_v29, %v1948_v21  ;;  %v2043_v37 = vsel %vm560_vm3, %v4756_v49, %v2042_v48  ;;  %v2067_v55 = vsel %vm4079_vm7, %v4951_v11, %v4938_v51 }
 0xb98   :  { %v2015_v22 = vsel %vm563_vm4, %v2014_v12, %v2013_v18  ;;  %v2044_v32 = vrot.slane %v4791_v17, 7  ;;  %v2129_v63 = vadd.f32 0.5, %v2127_v26  ;;  %v1886_v49 = vrot.slane %v4830_v60, 3 }
 0xb99   :  { %v1917_v10 = vsel %vm566_vm5, %v4830_v60, %v1916_v13  ;;  %v1951_v27 = vrot.slane %v4830_v60, 4  ;;  %v1981_v35 = vrot.slane %v4830_v60, 7  ;;  %v2016_v44 = vrot.slane %v4830_v60, 5 }
 0xb9a   :  { %v3376_v39 = vpop.eup %3375  ;;  %v2045_v23 = vsel %vm563_vm4, %v2044_v32, %v2043_v37  ;;  %v1887_v17 = vsel %vm566_vm5, %v1886_v49, %v1885_v0  ;;  %v2046_v61 = vrot.slane %v4830_v60, 6  ;;  %v1888_v36 = vrot.slane %v4869_v50, 2 }
 0xb9b   :  { %v2128_v25 = vmul.f32 0.5, %v3376_v39  ;;  %v1952_v15 = vsel %vm566_vm5, %v1951_v27, %v1950_v19  ;;  %v1982_v3 = vsel %vm566_vm5, %v1981_v35, %v1980_v53  ;;  %v2017_v20 = vsel %vm566_vm5, %v2016_v44, %v2015_v22 }
 0xb9c   :  { %v2047_v24 = vsel %vm566_vm5, %v2046_v61, %v2045_v23  ;;  %v1918_v31 = vrot.slane %v4869_v50, 7  ;;  %v1953_v18 = vrot.slane %v4869_v50, 3  ;;  %v1983_v62 = vrot.slane %v4869_v50, 6 }
 0xb9d   :  { %v2130_v52 = vadd.f32 0.5, %v2128_v25  ;;  %v2018_v16 = vrot.slane %v4869_v50, 4  ;;  %v5000_v58 = vsel %vm569_vm6, %v1888_v36, %v1887_v17  ;;  %v2073_v25 = vsel %vm4119_vm8, %v4881_v14, %v4891_v33 }
 0xb9e   :  { %v5003_v29 = vsel %vm569_vm6, %v1918_v31, %v1917_v10  ;;  %v5006_v60 = vsel %vm569_vm6, %v1953_v18, %v1952_v15  ;;  %v5009_v53 = vsel %vm569_vm6, %v1983_v62, %v1982_v3  ;;  %v2133_v22 = vmul.f32 0.0, %v2129_v63  ;;  %v5358_v10 = vld [vmem:[#allocation20_spill] sm:$0xff] }
 0xb9f   :  { %v2132_v45 = vsel %vm531_vm9, %v3376_v39, %v2130_v52  ;;  %v1923_v26 = vsel %vm4119_vm8, %v5000_v58, %v5003_v29  ;;  %v1988_v12 = vsel %vm4119_vm8, %v5006_v60, %v5009_v53  ;;  %v5020_v48 = vsel %vm569_vm6, %v2018_v16, %v2017_v20 }
 0xba0   :  { %v2134_v21 = vmul.f32 %v2132_v45, %v2129_v63  ;;  %v2048_v39 = vrot.slane %v4869_v50, 5  ;;  %v2063_v37 = vsel %vm4119_vm8, %v5009_v53, %v5006_v60  ;;  %v2068_v50 = vsel %vm4119_vm8, %v5003_v29, %v5000_v58  ;;  %v5356_v63 = vld [vmem:[#allocation19_spill] sm:$0xff]  ;;  %v5359_v60 = vld [vmem:[#allocation22_spill] sm:$0xff] }
 0xba1   :  { %v1922_v27 = vsel %vm4079_vm7, %v4938_v51, %v4951_v11  ;;  %v1382_v53 = vmul.f32 0.5, %v5359_v60 }
 0xba2   :  { %2136 = vrot.lane.b32.xlu2 %v2134_v21, %s3595_s4  ;;  %v5024_v0 = vsel %vm569_vm6, %v2048_v39, %v2047_v24 }
 0xba3   :  { %v2053_v13 = vsel %vm4119_vm8, %v5020_v48, %v5024_v0  ;;  %v2058_v19 = vsel %vm4119_vm8, %v5024_v0, %v5020_v48 }
 0xbfc   :  { %v2137_v32 = vpop.permute.xlu2 %2136 }
 0xbfd   :  { %v2139_v52 = vadd.f32 %v2137_v32, %v2133_v22 }
 0xbff   :  { %3377 = vtanh.f32 %v2139_v52 }
 0xc05   :  { %v3378_v23 = vpop.eup %3377 }
 0xc06   :  { %v5046_v21 = vmul.f32 %v3378_v23, %v2132_v45  ;;  %v5357_v45 = vld [vmem:[#allocation18_spill] sm:$0xff] }
 0xc08   :  { %2146 = vrot.lane.b32.xlu0 %v5046_v21, %s3595_s4 }
 0xc7a   :  { %v2147_v49 = vpop.permute.xlu0 %2146 }
 0xc7b   :  { %3221 = vmatmul.msk.f32.vlgmr.msra.gmra.mxu2 %vm838_vm10, %v2147_v49  ;;  %3222 = vmatmul.msk.f32.vlgmr.msra.gmra.mxu3 %vm838_vm10, %v2147_v49 }
 0xc7c   :  { %2442 = vmatpush.msra.mxu2 %v4522_v54  ;;  %2462 = vmatpush.msra.mxu3 %v4529_v38 }
 0xc7e   :  { %2443 = vmatpush.msra.mxu2 %v4527_v1  ;;  %2463 = vmatpush.msra.mxu3 %v4536_v41 }
 0xc80   :  { %2444 = vmatpush.msra.mxu2 %v4531_v40  ;;  %2464 = vmatpush.msra.mxu3 %v4556_v2 }
 0xc82   :  { %2445 = vmatpush.msra.mxu2 %v4538_v42  ;;  %2465 = vmatpush.msra.mxu3 %v4558_v6 }
 0xc84   :  { %2446 = vmatpush.msra.mxu2 %v4542_v43  ;;  %2466 = vmatpush.msra.mxu3 %v4581_v4 }
 0xc86   :  { %2447 = vmatpush.msra.mxu2 %v4545_v56  ;;  %2467 = vmatpush.msra.mxu3 %v4583_v59 }
 0xc88   :  { %2448 = vmatpush.msra.mxu2 %v4548_v46  ;;  %2468 = vmatpush.msra.mxu3 %v5356_v63 }
 0xc8a   :  { %2449 = vmatpush.msra.mxu2 %v5357_v45  ;;  %2469 = vmatpush.msra.mxu3 %v5358_v10 }
 0xcfe   :  { %v2167_v35 = vpop.f32.mrf.mxu2  ;;  %v2187_v44 = vpop.f32.mrf.mxu3 }
 0xcff   :  { %v2190_v17 = vadd.f32 %v2167_v35, %v1922_v27  ;;  %v2191_v15 = vadd.f32 %v2187_v44, %v1923_v26 }
 0xd01   :  { %v2192_v3 = vmul.f32 0.5, %v2190_v17  ;;  %v2193_v20 = vmul.f32 0.5, %v2191_v15 }
 0xd03   :  { %3379 = vtanh.f32 %v2192_v3  ;;  %v2195_v61 = vsel %vm531_vm9, %v2191_v15, %v2193_v20 }
 0xd04   :  { %3381 = vtanh.f32 %v2195_v61 }
 0xd09   :  { %v3380_v24 = vpop.eup %3379 }
 0xd0a   :  { %v3382_v36 = vpop.eup %3381  ;;  %v2198_v31 = vmul.f32 0.5, %v3380_v24 }
 0xd0b   :  { %v2199_v18 = vmul.f32 0.5, %v3382_v36 }
 0xd0c   :  { %v2200_v16 = vadd.f32 0.5, %v2198_v31 }
 0xd0d   :  { %v2201_v62 = vadd.f32 0.5, %v2199_v18 }
 0xd0e   :  { %v2204_v26 = vmul.f32 %v2200_v16, %v2139_v52 }
 0xd0f   :  { %v2203_v39 = vsel %vm531_vm9, %v3382_v36, %v2201_v62  ;;  %v3447_v62 = vld [vmem:[#allocation10 + $0x70] sm:$0xff] }
 0xd10   :  { %v2205_v22 = vmul.f32 %v2203_v39, %v2200_v16  ;;  %v3448_v16 = vld [vmem:[#allocation10 + $0x78] sm:$0xff] }
 0xd12   :  { %2207 = vrot.lane.b32.xlu1 %v2205_v22, %s3595_s4  ;;  %v3450_v22 = vld [vmem:[#allocation10 + $0x68] sm:$0xff] }
 0xd84   :  { %v2208_v32 = vpop.permute.xlu1 %2207 }
 0xd85   :  { %v2210_v23 = vadd.f32 %v2208_v32, %v2204_v26  ;;  %v3451_v26 = vld [vmem:[#allocation10 + $0x50] sm:$0xff]  ;;  %v3453_v32 = vld [vmem:[#allocation10 + $0x40] sm:$0xff] }
 0xd87   :  { %3383 = vtanh.f32 %v2210_v23 }
 0xd8d   :  { %v3384_v49 = vpop.eup %3383 }
 0xd8e   :  { %v2212_v27 = vmul.f32 %v3384_v49, %v2203_v39  ;;  %v3449_v39 = vld [vmem:[#allocation10 + $0x60] sm:$0xff]  ;;  %v3455_v49 = vld [vmem:[#allocation10 + $0x30] sm:$0xff] }
 0xd90   :  { %2217 = vrot.lane.b32.xlu2 %v2212_v27, %s3595_s4  ;;  %v2213_v24 = vadd.f32 %v2212_v27, %v5046_v21  ;;  %v3452_v21 = vld [vmem:[#allocation10 + $0x58] sm:$0xff]  ;;  %v3456_v27 = vld [vmem:[#allocation10 + $0x20] sm:$0xff] }
 0xdea   :  { %v2218_v35 = vpop.permute.xlu2 %2217 }
 0xdeb   :  { %3223 = vmatmul.msk.f32.vlgmr.msrb.gmra.mxu0 %vm838_vm10, %v2218_v35  ;;  %3224 = vmatmul.msk.f32.vlgmr.msrb.gmra.mxu1 %vm838_vm10, %v2218_v35  ;;  %v3457_v35 = vld [vmem:[#allocation10 + $0x10] sm:$0xff] }
 0xdec   :  { %2513 = vmatpush.msrb.mxu0 %v4522_v54  ;;  %2533 = vmatpush.msrb.mxu1 %v4529_v38  ;;  %v1987_v54 = vsel %vm4079_vm7, %v4845_v9, %v4854_v47 }
 0xdee   :  { %2514 = vmatpush.msrb.mxu0 %v4527_v1  ;;  %2534 = vmatpush.msrb.mxu1 %v4536_v41 }
 0xdf0   :  { %2515 = vmatpush.msrb.mxu0 %v4531_v40  ;;  %2535 = vmatpush.msrb.mxu1 %v4556_v2 }
 0xdf2   :  { %2516 = vmatpush.msrb.mxu0 %v4538_v42  ;;  %2536 = vmatpush.msrb.mxu1 %v4558_v6 }
 0xdf4   :  { %2517 = vmatpush.msrb.mxu0 %v4542_v43  ;;  %2537 = vmatpush.msrb.mxu1 %v4581_v4 }
 0xdf6   :  { %2518 = vmatpush.msrb.mxu0 %v4545_v56  ;;  %2538 = vmatpush.msrb.mxu1 %v4583_v59 }
 0xdf8   :  { %2519 = vmatpush.msrb.mxu0 %v4548_v46  ;;  %2539 = vmatpush.msrb.mxu1 %v5356_v63 }
 0xdfa   :  { %2520 = vmatpush.msrb.mxu0 %v5357_v45  ;;  %2540 = vmatpush.msrb.mxu1 %v5358_v10 }
 0xe68   :  { %v2238_v1 = vpop.f32.mrf.mxu0  ;;  %v2258_v38 = vpop.f32.mrf.mxu1 }
 0xe69   :  { %v2261_v40 = vadd.f32 %v2238_v1, %v1987_v54  ;;  %v2262_v41 = vadd.f32 %v2258_v38, %v1988_v12  ;;  %v3458_v54 = vld [vmem:[#allocation10] sm:$0xff]  ;;  %v2052_v1 = vsel %vm4079_vm7, %v4911_v30, %v4929_v57 }
 0xe6b   :  { %v2263_v42 = vmul.f32 0.5, %v2261_v40  ;;  %v2264_v43 = vmul.f32 0.5, %v2262_v41 }
 0xe6d   :  { %3385 = vtanh.f32 %v2263_v42  ;;  %v2266_v56 = vsel %vm531_vm9, %v2262_v41, %v2264_v43 }
 0xe6e   :  { %3387 = vtanh.f32 %v2266_v56 }
 0xe73   :  { %v3386_v46 = vpop.eup %3385 }
 0xe74   :  { %v3388_v2 = vpop.eup %3387  ;;  %v2269_v6 = vmul.f32 0.5, %v3386_v46 }
 0xe75   :  { %v2270_v52 = vmul.f32 0.5, %v3388_v2 }
 0xe76   :  { %v2271_v44 = vadd.f32 0.5, %v2269_v6 }
 0xe77   :  { %v2272_v45 = vadd.f32 0.5, %v2270_v52 }
 0xe78   :  { %v2275_v12 = vmul.f32 %v2271_v44, %v2210_v23  ;;  %v3454_v23 = vld [vmem:[#allocation10 + $0x48] sm:$0xff] }
 0xe79   :  { %v2274_v17 = vsel %vm531_vm9, %v3388_v2, %v2272_v45 }
 0xe7a   :  { %v2276_v15 = vmul.f32 %v2274_v17, %v2271_v44 }
 0xe7c   :  { %2278 = vrot.lane.b32.xlu0 %v2276_v15, %s3595_s4 }
 0xeee   :  { %v2279_v3 = vpop.permute.xlu0 %2278 }
 0xeef   :  { %v2281_v20 = vadd.f32 %v2279_v3, %v2275_v12 }
 0xef1   :  { %3389 = vtanh.f32 %v2281_v20 }
 0xef7   :  { %v3390_v61 = vpop.eup %3389 }
 0xef8   :  { %v2283_v36 = vmul.f32 %v3390_v61, %v2274_v17 }
 0xefa   :  { %2288 = vrot.lane.b32.xlu1 %v2283_v36, %s3595_s4  ;;  %v2284_v31 = vadd.f32 %v2283_v36, %v2213_v24 }
 0xf6c   :  { %v2289_v18 = vpop.permute.xlu1 %2288 }
 0xf6d   :  { %3225 = vmatmul.msk.f32.vlgmr.msrb.gmra.mxu2 %vm838_vm10, %v2289_v18  ;;  %3226 = vmatmul.msk.f32.vlgmr.msrb.gmra.mxu3 %vm838_vm10, %v2289_v18 }
 0xf6e   :  { %2584 = vmatpush.msrb.mxu2 %v3447_v62  ;;  %2604 = vmatpush.msrb.mxu3 %v3448_v16 }
 0xf70   :  { %2585 = vmatpush.msrb.mxu2 %v3449_v39  ;;  %2605 = vmatpush.msrb.mxu3 %v3450_v22 }
 0xf72   :  { %2586 = vmatpush.msrb.mxu2 %v3451_v26  ;;  %2606 = vmatpush.msrb.mxu3 %v3452_v21 }
 0xf74   :  { %2587 = vmatpush.msrb.mxu2 %v3453_v32  ;;  %2607 = vmatpush.msrb.mxu3 %v3454_v23 }
 0xf76   :  { %2588 = vmatpush.msrb.mxu2 %v3455_v49  ;;  %2608 = vmatpush.msrb.mxu3 %v4581_v4 }
 0xf78   :  { %2589 = vmatpush.msrb.mxu2 %v3456_v27  ;;  %2609 = vmatpush.msrb.mxu3 %v4583_v59 }
 0xf7a   :  { %2590 = vmatpush.msrb.mxu2 %v3457_v35  ;;  %2610 = vmatpush.msrb.mxu3 %v5356_v63 }
 0xf7c   :  { %2591 = vmatpush.msrb.mxu2 %v3458_v54  ;;  %2611 = vmatpush.msrb.mxu3 %v5358_v10 }
 0xff0   :  { %v2309_v38 = vpop.f32.mrf.mxu2  ;;  %v2329_v40 = vpop.f32.mrf.mxu3 }
 0xff1   :  { %v2332_v4 = vadd.f32 %v2309_v38, %v2052_v1  ;;  %v2333_v59 = vadd.f32 %v2329_v40, %v2053_v13 }
 0xff3   :  { %v2334_v41 = vmul.f32 0.5, %v2332_v4  ;;  %v2335_v63 = vmul.f32 0.5, %v2333_v59 }
 0xff5   :  { %3391 = vtanh.f32 %v2334_v41  ;;  %v2337_v10 = vsel %vm531_vm9, %v2333_v59, %v2335_v63 }
 0xff6   :  { %3393 = vtanh.f32 %v2337_v10 }
 0xffb   :  { %v3392_v42 = vpop.eup %3391 }
 0xffc   :  { %v3394_v43 = vpop.eup %3393  ;;  %v2340_v56 = vmul.f32 0.5, %v3392_v42 }
 0xffd   :  { %v2341_v46 = vmul.f32 0.5, %v3394_v43 }
 0xffe   :  { %v2342_v6 = vadd.f32 0.5, %v2340_v56 }
 0xfff   :  { %v2343_v2 = vadd.f32 0.5, %v2341_v46  ;;  %v5360_v46 = vld [vmem:[#allocation21_spill] sm:$0xff] }
0x1000   :  { %v2346_v13 = vmul.f32 %v2342_v6, %v2281_v20 }
0x1001   :  { %v2345_v52 = vsel %vm531_vm9, %v3394_v43, %v2343_v2  ;;  %v1381_v2 = vmul.f32 0.5, %v5360_v46  ;;  %v2670_v46 = vld [vmem:[#allocation12 + $0xa0] sm:$0xff] }
0x1002   :  { %v2347_v45 = vmul.f32 %v2345_v52, %v2342_v6 }
0x1004   :  { %2349 = vrot.lane.b32.xlu2 %v2347_v45, %s3595_s4 }
0x105e   :  { %v2350_v44 = vpop.permute.xlu2 %2349 }
0x105f   :  { %v2352_v17 = vadd.f32 %v2350_v44, %v2346_v13 }
0x1061   :  { %3395 = vtanh.f32 %v2352_v17 }
0x1067   :  { %v3396_v15 = vpop.eup %3395 }
0x1068   :  { %v2354_v12 = vmul.f32 %v3396_v15, %v2345_v52 }
0x106a   :  { %2359 = vrot.lane.b32.xlu0 %v2354_v12, %s3595_s4  ;;  %v2355_v3 = vadd.f32 %v2354_v12, %v2284_v31 }
0x10dc   :  { %v2360_v61 = vpop.permute.xlu0 %2359 }
0x10dd   :  { %3227 = vmatmul.msk.f32.vlgmr.msra.gmra.mxu0 %vm838_vm10, %v2360_v61  ;;  %3228 = vmatmul.msk.f32.vlgmr.msra.gmra.mxu1 %vm838_vm10, %v2360_v61 }
0x115a   :  { %v2380_v24 = vpop.f32.mrf.mxu0  ;;  %v2400_v36 = vpop.f32.mrf.mxu1 }
0x115b   :  { %v2403_v20 = vadd.f32 %v2380_v24, %v2057_v7  ;;  %v2404_v18 = vadd.f32 %v2400_v36, %v2058_v19 }
0x115d   :  { %v2405_v31 = vmul.f32 0.5, %v2403_v20  ;;  %v2406_v62 = vmul.f32 0.5, %v2404_v18 }
0x115f   :  { %3397 = vtanh.f32 %v2405_v31  ;;  %v2408_v16 = vsel %vm531_vm9, %v2404_v18, %v2406_v62 }
0x1160   :  { %3399 = vtanh.f32 %v2408_v16  ;;  %v5361_v16 = vld [vmem:[#allocation16_spill] sm:$0xff] }
0x1165   :  { %v3398_v39 = vpop.eup %3397 }
0x1166   :  { %v3400_v22 = vpop.eup %3399  ;;  %v2411_v26 = vmul.f32 0.5, %v3398_v39 }
0x1167   :  { %v2412_v21 = vmul.f32 0.5, %v3400_v22 }
0x1168   :  { %v2413_v30 = vadd.f32 0.5, %v2411_v26 }
0x1169   :  { %v2414_v32 = vadd.f32 0.5, %v2412_v21 }
0x116a   :  { %v2417_v48 = vmul.f32 %v2413_v30, %v2352_v17 }
0x116b   :  { %v2416_v57 = vsel %vm531_vm9, %v3400_v22, %v2414_v32  ;;  %v5362_v32 = vld [vmem:[#allocation17_spill] sm:$0xff] }
0x116c   :  { %v2418_v7 = vmul.f32 %v2416_v57, %v2413_v30 }
0x116e   :  { %2420 = vrot.lane.b32.xlu1 %v2418_v7, %s3595_s4 }
0x11e0   :  { %v2421_v0 = vpop.permute.xlu1 %2420 }
0x11e1   :  { %v2423_v19 = vadd.f32 %v2421_v0, %v2417_v48 }
0x11e3   :  { %3401 = vtanh.f32 %v2423_v19 }
0x11e9   :  { %v3402_v23 = vpop.eup %3401 }
0x11ea   :  { %v2425_v49 = vmul.f32 %v3402_v23, %v2416_v57 }
0x11ec   :  { %2430 = vrot.lane.b32.xlu2 %v2425_v49, %s3595_s4  ;;  %v2426_v27 = vadd.f32 %v2425_v49, %v2355_v3 }
0x1246   :  { %v2431_v35 = vpop.permute.xlu2 %2430 }
0x1247   :  { %3229 = vmatmul.msk.f32.vlgmr.msra.gmra.mxu2 %vm838_vm10, %v2431_v35  ;;  %3230 = vmatmul.msk.f32.vlgmr.msra.gmra.mxu3 %vm838_vm10, %v2431_v35 }
0x12ca   :  { %v2451_v54 = vpop.f32.mrf.mxu2  ;;  %v2471_v1 = vpop.f32.mrf.mxu3 }
0x12cb   :  { %v2474_v38 = vadd.f32 %v2451_v54, %v2062_v34  ;;  %v2475_v40 = vadd.f32 %v2471_v1, %v2063_v37  ;;  %v1384_v37 = vsel %vm531_vm9, %v5359_v60, %v1382_v53  ;;  %v2675_v60 = vld [vmem:[#allocation12 + $0xc8] sm:$0xff]  ;;  %v2672_v53 = vld [vmem:[#allocation12 + $0xb0] sm:$0xff] }
0x12cd   :  { %v2476_v4 = vmul.f32 0.5, %v2474_v38  ;;  %v2477_v59 = vmul.f32 0.5, %v2475_v40 }
0x12cf   :  { %3403 = vtanh.f32 %v2476_v4  ;;  %v2479_v41 = vsel %vm531_vm9, %v2475_v40, %v2477_v59 }
0x12d0   :  { %3405 = vtanh.f32 %v2479_v41 }
0x12d1   :  { %3407 = vtanh.f32 %v1384_v37  ;;  %v2673_v37 = vld [vmem:[#allocation12 + $0xb8] sm:$0xff] }
0x12d2   :  { %3409 = vtanh.f32 %v1381_v2  ;;  %v2671_v2 = vld [vmem:[#allocation12 + $0xa8] sm:$0xff] }
0x12d5   :  { %v3404_v63 = vpop.eup %3403 }
0x12d6   :  { %v3406_v10 = vpop.eup %3405  ;;  %v2482_v42 = vmul.f32 0.5, %v3404_v63 }
0x12d7   :  { %v2483_v43 = vmul.f32 0.5, %v3406_v10  ;;  %v3408_v13 = vpop.eup %3407 }
0x12d8   :  { %v2484_v9 = vadd.f32 0.5, %v2482_v42  ;;  %v1388_v44 = vmul.f32 0.5, %v3408_v13  ;;  %v3410_v17 = vpop.eup %3409  ;;  %v2681_v42 = vld [vmem:[#allocation12 + $0xf8] sm:$0xff] }
0x12d9   :  { %v2485_v56 = vadd.f32 0.5, %v2483_v43  ;;  %v1387_v61 = vmul.f32 0.5, %v3410_v17  ;;  %v2678_v43 = vld [vmem:[#allocation12 + $0xe0] sm:$0xff]  ;;  %2746 = vmatpush.msra.mxu2 %v2681_v42  ;;  %v2684_v42 = vld [vmem:[#allocation12 + $0x110] sm:$0xff] }
0x12da   :  { %v2488_v6 = vmul.f32 %v2484_v9, %v2423_v19  ;;  %v1390_v3 = vadd.f32 0.5, %v1388_v44 }
0x12db   :  { %v2487_v47 = vsel %vm531_vm9, %v3406_v10, %v2485_v56  ;;  %v1389_v20 = vadd.f32 0.5, %v1387_v61  ;;  %v2680_v10 = vld [vmem:[#allocation12 + $0xf0] sm:$0xff]  ;;  %v2679_v56 = vld [vmem:[#allocation12 + $0xe8] sm:$0xff] }
0x12dc   :  { %v2489_v34 = vmul.f32 %v2487_v47, %v2484_v9  ;;  %v1392_v36 = vsel %vm531_vm9, %v3408_v13, %v1390_v3  ;;  %2706 = vmatpush.msra.mxu0 %v2680_v10  ;;  %v2676_v9 = vld [vmem:[#allocation12 + $0xd0] sm:$0xff]  ;;  %2747 = vmatpush.msra.mxu2 %v2679_v56  ;;  %v5364_v13 = vld [vmem:[#allocation24_spill] sm:$0xff]  ;;  %v2667_v3 = vld [vmem:[#allocation12 + $0x88] sm:$0xff] }
0x12dd   :  { %v1394_v18 = vmul.f32 %v1392_v36, %v1389_v20  ;;  %v1393_v39 = vmul.f32 %v1389_v20, %v5361_v16  ;;  %v2687_v10 = vld [vmem:[#allocation12 + $0x128] sm:$0xff] }
0x12de   :  { %2491 = vrot.lane.b32.xlu0 %v2489_v34, %s3595_s4  ;;  %2707 = vmatpush.msra.mxu0 %v2678_v43  ;;  %v2674_v34 = vld [vmem:[#allocation12 + $0xc0] sm:$0xff]  ;;  %v2685_v43 = vld [vmem:[#allocation12 + $0x118] sm:$0xff] }
0x12e0   :  { %2708 = vmatpush.msra.mxu0 %v2676_v9  ;;  %v2682_v9 = vld [vmem:[#allocation12 + $0x100] sm:$0xff] }
0x12e2   :  { %2709 = vmatpush.msra.mxu0 %v2674_v34 }
0x12e4   :  { %2710 = vmatpush.msra.mxu0 %v2672_v53 }
0x12e6   :  { %2711 = vmatpush.msra.mxu0 %v2670_v46 }
0x1350   :  { %v2492_v52 = vpop.permute.xlu0 %2491 }
0x1351   :  { %v2494_v45 = vadd.f32 %v2492_v52, %v2488_v6  ;;  %v2668_v6 = vld [vmem:[#allocation12 + $0x90] sm:$0xff]  ;;  %v2669_v52 = vld [vmem:[#allocation12 + $0x98] sm:$0xff] }
0x1352   :  { %2712 = vmatpush.msra.mxu0 %v2668_v6 }
0x1353   :  { %3411 = vtanh.f32 %v2494_v45 }
0x1359   :  { %v3412_v15 = vpop.eup %3411 }
0x135a   :  { %v2496_v12 = vmul.f32 %v3412_v15, %v2487_v47  ;;  %v2677_v47 = vld [vmem:[#allocation12 + $0xd8] sm:$0xff] }
0x135b   :  { %2748 = vmatpush.msra.mxu2 %v2677_v47  ;;  %v2683_v47 = vld [vmem:[#allocation12 + $0x108] sm:$0xff] }
0x135c   :  { %2501 = vrot.lane.b32.xlu1 %v2496_v12, %s3595_s4  ;;  %v2497_v24 = vadd.f32 %v2496_v12, %v2426_v27  ;;  %v2666_v12 = vld [vmem:[#allocation12 + $0x80] sm:$0xff] }
0x135d   :  { %2749 = vmatpush.msra.mxu2 %v2675_v60  ;;  %2713 = vmatpush.msra.mxu0 %v2666_v12  ;;  %v2798_v12 = vld [vmem:[%s5322_s10 + $0x50] sm:$0xff] }
0x135f   :  { %2750 = vmatpush.msra.mxu2 %v2673_v37 }
0x1361   :  { %2751 = vmatpush.msra.mxu2 %v2671_v2 }
0x1363   :  { %2752 = vmatpush.msra.mxu2 %v2669_v52 }
0x1364   :  { %1396 = vrot.lane.b32.xlu1 %v1394_v18, %s3595_s4 }
0x1365   :  { %2753 = vmatpush.msra.mxu2 %v2667_v3  ;;  %v2797_v3 = vld [vmem:[%s5322_s10 + $0x48] sm:$0xff] }
0x13ce   :  { %v2502_v31 = vpop.permute.xlu1 %2501 }
0x13cf   :  { %3231 = vmatmul.msk.f32.vlgmr.msrb.gmra.mxu0 %vm838_vm10, %v2502_v31  ;;  %3232 = vmatmul.msk.f32.vlgmr.msrb.gmra.mxu1 %vm838_vm10, %v2502_v31 }
0x13d6   :  { %v1397_v62 = vpop.permute.xlu1 %1396 }
0x13d7   :  { %v1399_v22 = vadd.f32 %v1397_v62, %v1393_v39 }
0x13d9   :  { %3413 = vtanh.f32 %v1399_v22  ;;  %v2665_v22 = vld [vmem:[#allocation12 + $0x78] sm:$0xff] }
0x13da   :  { %2754 = vmatpush.msra.mxu2 %v2665_v22  ;;  %v2805_v22 = vld [vmem:[%s5322_s10 + $0x88] sm:$0xff] }
0x13df   :  { %v3414_v26 = vpop.eup %3413 }
0x13e0   :  { %v1401_v21 = vmul.f32 %v3414_v26, %v1392_v36  ;;  %v2662_v26 = vld [vmem:[#allocation12 + $0x60] sm:$0xff] }
0x13e2   :  { %v1402_v30 = vadd.f32 %v1401_v21, %v5362_v32  ;;  %v2663_v21 = vld [vmem:[#allocation12 + $0x68] sm:$0xff]  ;;  %v2660_v32 = vld [vmem:[#allocation12 + $0x50] sm:$0xff] }
0x13e3   :  { %2755 = vmatpush.msra.mxu2 %v2663_v21  ;;  %v2698_v21 = vld [vmem:[%s5321_s9] sm:$0x3] }
0x13e4   :  { %v5202_v41 = vmul.f32 0.125, %v1402_v30  ;;  %v2661_v30 = vld [vmem:[#allocation12 + $0x58] sm:$0xff] }
0x13e5   :  { %2756 = vmatpush.msra.mxu2 %v2661_v30 }
0x144c   :  { %v2522_v57 = vpop.f32.mrf.mxu0  ;;  %v2542_v7 = vpop.f32.mrf.mxu1 }
0x144d   :  { %v2545_v48 = vadd.f32 %v2522_v57, %v2067_v55  ;;  %v2546_v0 = vadd.f32 %v2542_v7, %v2068_v50  ;;  %v2658_v57 = vld [vmem:[#allocation12 + $0x40] sm:$0xff]  ;;  %v2659_v7 = vld [vmem:[#allocation12 + $0x48] sm:$0xff] }
0x144e   :  { %2757 = vmatpush.msra.mxu2 %v2659_v7 }
0x144f   :  { %v2547_v19 = vmul.f32 0.5, %v2545_v48  ;;  %v2548_v23 = vmul.f32 0.5, %v2546_v0  ;;  %v2657_v48 = vld [vmem:[#allocation12 + $0x38] sm:$0xff] }
0x1450   :  { %2758 = vmatpush.msra.mxu2 %v2657_v48 }
0x1451   :  { %3415 = vtanh.f32 %v2547_v19  ;;  %v2550_v49 = vsel %vm531_vm9, %v2546_v0, %v2548_v23  ;;  %v2696_v0 = vld [vmem:[#allocation12 + $0x170] sm:$0xff]  ;;  %v2697_v19 = vld [vmem:[#allocation12 + $0x178] sm:$0xff]  ;;  %v2694_v23 = vld [vmem:[#allocation12 + $0x160] sm:$0xff] }
0x1452   :  { %3417 = vtanh.f32 %v2550_v49  ;;  %v2695_v49 = vld [vmem:[#allocation12 + $0x168] sm:$0xff]  ;;  %2734 = vmatpush.msra.mxu1 %v2696_v0  ;;  %2774 = vmatpush.msra.mxu3 %v2697_v19 }
0x1454   :  { %2735 = vmatpush.msra.mxu1 %v2694_v23  ;;  %2775 = vmatpush.msra.mxu3 %v2695_v49 }
0x1457   :  { %v3416_v27 = vpop.eup %3415 }
0x1458   :  { %v3418_v35 = vpop.eup %3417  ;;  %v2553_v54 = vmul.f32 0.5, %v3416_v27  ;;  %v2654_v27 = vld [vmem:[#allocation12 + $0x20] sm:$0xff] }
0x1459   :  { %v2554_v1 = vmul.f32 0.5, %v3418_v35 }
0x145a   :  { %v2555_v51 = vadd.f32 0.5, %v2553_v54  ;;  %v2692_v54 = vld [vmem:[#allocation12 + $0x150] sm:$0xff] }
0x145b   :  { %v2556_v38 = vadd.f32 0.5, %v2554_v1  ;;  %v2693_v1 = vld [vmem:[#allocation12 + $0x158] sm:$0xff]  ;;  %2736 = vmatpush.msra.mxu1 %v2692_v54 }
0x145c   :  { %v2559_v58 = vmul.f32 %v2555_v51, %v2494_v45  ;;  %v5363_v45 = vld [vmem:[#allocation23_spill] sm:$0xff]  ;;  %2776 = vmatpush.msra.mxu3 %v2693_v1 }
0x145d   :  { %v2558_v11 = vsel %vm531_vm9, %v3418_v35, %v2556_v38  ;;  %v2072_v44 = vsel %vm4079_vm7, %v5364_v13, %v5363_v45  ;;  %v2655_v35 = vld [vmem:[#allocation12 + $0x28] sm:$0xff]  ;;  %v2652_v38 = vld [vmem:[#allocation12 + $0x10] sm:$0xff]  ;;  %v3330_v54 = vld [vmem:[#allocation4] ss:$0 sm:$0xff] }
0x145e   :  { %v2560_v55 = vmul.f32 %v2558_v11, %v2555_v51  ;;  %v2653_v51 = vld [vmem:[#allocation12 + $0x18] sm:$0xff]  ;;  %2759 = vmatpush.msra.mxu2 %v2655_v35  ;;  %v2802_v13 = vld [vmem:[%s5322_s10 + $0x70] sm:$0xff] }
0x145f   :  { %v2803_v45 = vld [vmem:[%s5322_s10 + $0x78] sm:$0xff] }
0x1460   :  { %2562 = vrot.lane.b32.xlu2 %v2560_v55, %s3595_s4  ;;  %v2691_v55 = vld [vmem:[#allocation12 + $0x148] sm:$0xff]  ;;  %2760 = vmatpush.msra.mxu2 %v2653_v51 }
0x1461   :  { %2777 = vmatpush.msra.mxu3 %v2691_v55 }
0x14ba   :  { %v2563_v29 = vpop.permute.xlu2 %2562 }
0x14bb   :  { %v5196_v50 = vadd.f32 %v2563_v29, %v2559_v58  ;;  %v2650_v58 = vld [vmem:[#allocation12] sm:$0xff]  ;;  %v2651_v29 = vld [vmem:[#allocation12 + $0x8] sm:$0xff] }
0x14bc   :  { %2761 = vmatpush.msra.mxu2 %v2651_v29 }
0x14bd   :  { %3419 = vtanh.f32 %v5196_v50 }
0x14c3   :  { %v3420_v40 = vpop.eup %3419 }
0x14c4   :  { %v2567_v4 = vmul.f32 %v3420_v40, %v2558_v11  ;;  %v2690_v11 = vld [vmem:[#allocation12 + $0x140] sm:$0xff]  ;;  %v2688_v40 = vld [vmem:[#allocation12 + $0x130] sm:$0xff] }
0x14c5   :  { %2737 = vmatpush.msra.mxu1 %v2690_v11 }
0x14c6   :  { %2572 = vrot.lane.b32.xlu0 %v2567_v4, %s3595_s4  ;;  %v5200_v59 = vadd.f32 %v2567_v4, %v2497_v24  ;;  %v2689_v4 = vld [vmem:[#allocation12 + $0x138] sm:$0xff] }
0x14c7   :  { %2738 = vmatpush.msra.mxu1 %v2688_v40  ;;  %2778 = vmatpush.msra.mxu3 %v2689_v4 }
0x14c9   :  { %2779 = vmatpush.msra.mxu3 %v2687_v10 }
0x14cb   :  { %2780 = vmatpush.msra.mxu3 %v2685_v43 }
0x14cd   :  { %2781 = vmatpush.msra.mxu3 %v2683_v47 }
0x14ce   :  { %2643 = vrot.lane.b32.xlu0 %v5202_v41, %s3595_s4 }
0x1538   :  { %v2573_v63 = vpop.permute.xlu0 %2572 }
0x1539   :  { %3233 = vmatmul.msk.f32.vlgmr.msrb.gmra.mxu2 %vm838_vm10, %v2573_v63  ;;  %3234 = vmatmul.msk.f32.vlgmr.msrb.gmra.mxu3 %vm838_vm10, %v2573_v63  ;;  %v2686_v63 = vld [vmem:[#allocation12 + $0x120] sm:$0xff] }
0x153a   :  { %2739 = vmatpush.msra.mxu1 %v2686_v63 }
0x153c   :  { %2740 = vmatpush.msra.mxu1 %v2684_v42 }
0x153e   :  { %2741 = vmatpush.msra.mxu1 %v2682_v9 }
0x1540   :  { %v2644_v6 = vpop.permute.xlu0 %2643  ;;  %2819 = vmatpush.msrb.mxu1 %v2803_v45 }
0x1542   :  { %2820 = vmatpush.msrb.mxu1 %v2802_v13 }
0x15bc   :  { %v2593_v17 = vpop.f32.mrf.mxu2  ;;  %v2613_v15 = vpop.f32.mrf.mxu3 }
0x15bd   :  { %v2616_v61 = vadd.f32 %v2593_v17, %v2072_v44  ;;  %v2617_v24 = vadd.f32 %v2613_v15, %v2073_v25  ;;  %v2664_v25 = vld [vmem:[#allocation12 + $0x70] sm:$0xff] }
0x15be   :  { %2714 = vmatpush.msra.mxu0 %v2664_v25  ;;  %v2811_v44 = vld [vmem:[%s5322_s10 + $0xb8] sm:$0xff]  ;;  %v2810_v17 = vld [vmem:[%s5322_s10 + $0xb0] sm:$0xff] }
0x15bf   :  { %v2618_v36 = vmul.f32 0.5, %v2616_v61  ;;  %v2619_v20 = vmul.f32 0.5, %v2617_v24  ;;  %2847 = vmatpush.msrb.mxu3 %v2811_v44  ;;  %v2799_v15 = vld [vmem:[%s5322_s10 + $0x58] sm:$0xff]  ;;  %v2796_v61 = vld [vmem:[%s5322_s10 + $0x40] sm:$0xff]  ;;  %v2806_v25 = vld [vmem:[%s5322_s10 + $0x90] sm:$0xff] }
0x15c0   :  { %2715 = vmatpush.msra.mxu0 %v2662_v26  ;;  %v2804_v26 = vld [vmem:[%s5322_s10 + $0x80] sm:$0xff] }
0x15c1   :  { %3421 = vtanh.f32 %v2618_v36  ;;  %v2621_v8 = vsel %vm531_vm9, %v2617_v24, %v2619_v20  ;;  %2848 = vmatpush.msrb.mxu3 %v2810_v17  ;;  %v2795_v24 = vld [vmem:[%s5322_s10 + $0x38] sm:$0xff]  ;;  %v2794_v20 = vld [vmem:[%s5322_s10 + $0x30] sm:$0xff] }
0x15c2   :  { %3423 = vtanh.f32 %v2621_v8  ;;  %2716 = vmatpush.msra.mxu0 %v2660_v32  ;;  %v2793_v8 = vld [vmem:[%s5322_s10 + $0x28] sm:$0xff]  ;;  %v2700_v32 = vperm.slane %v2698_v21, 0 }
0x15c4   :  { %2717 = vmatpush.msra.mxu0 %v2658_v57 }
0x15c6   :  { %2718 = vmatpush.msra.mxu0 %v2656_v5  ;;  %v2701_v5 = vperm.slane %v2698_v21, 1 }
0x15c7   :  { %v3422_v18 = vpop.eup %3421 }
0x15c8   :  { %v3424_v31 = vpop.eup %3423  ;;  %v2624_v62 = vmul.f32 0.5, %v3422_v18  ;;  %2719 = vmatpush.msra.mxu0 %v2654_v27  ;;  %v2792_v18 = vld [vmem:[%s5322_s10 + $0x20] sm:$0xff] }
0x15c9   :  { %v2625_v16 = vmul.f32 0.5, %v3424_v31 }
0x15ca   :  { %v2626_v39 = vadd.f32 0.5, %v2624_v62  ;;  %2720 = vmatpush.msra.mxu0 %v2652_v38  ;;  %v2790_v62 = vld [vmem:[%s5322_s10 + $0x10] sm:$0xff] }
0x15cb   :  { %v2627_v28 = vadd.f32 0.5, %v2625_v16  ;;  %v2809_v16 = vld [vmem:[%s5322_s10 + $0xa8] sm:$0xff] }
0x15cc   :  { %2721 = vmatpush.msra.mxu0 %v2650_v58  ;;  %v2630_v56 = vmul.f32 %v2626_v39, %v5196_v50  ;;  %2849 = vmatpush.msrb.mxu3 %v2809_v16 }
0x15cd   :  { %v5221_v14 = vsel %vm531_vm9, %v3424_v31, %v2627_v28  ;;  %v2791_v31 = vld [vmem:[%s5322_s10 + $0x18] sm:$0xff]  ;;  %v2789_v28 = vld [vmem:[%s5322_s10 + $0x8] sm:$0xff] }
0x15ce   :  { %v2631_v33 = vmul.f32 %v5221_v14, %v2626_v39  ;;  %v2808_v39 = vld [vmem:[%s5322_s10 + $0xa0] sm:$0xff] }
0x15cf   :  { %2850 = vmatpush.msrb.mxu3 %v2808_v39 }
0x15d0   :  { %2633 = vrot.lane.b32.xlu2 %v2631_v33, %s3595_s4  ;;  %v2807_v33 = vld [vmem:[%s5322_s10 + $0x98] sm:$0xff] }
0x15d1   :  { %2851 = vmatpush.msrb.mxu3 %v2807_v33 }
0x15d3   :  { %2852 = vmatpush.msrb.mxu3 %v2806_v25 }
0x15d5   :  { %2853 = vmatpush.msrb.mxu3 %v2805_v22 }
0x15d7   :  { %2854 = vmatpush.msrb.mxu3 %v2804_v26 }
0x162a   :  { %v2634_v34 = vpop.permute.xlu2 %2633 }
0x162b   :  { %v2636_v60 = vadd.f32 %v2634_v34, %v2630_v56 }
0x162d   :  { %3425 = vtanh.f32 %v2636_v60 }
0x1633   :  { %v3426_v53 = vpop.eup %3425 }
0x1634   :  { %v2638_v37 = vmul.f32 %v3426_v53, %v5221_v14  ;;  %v2788_v14 = vld [vmem:[%s5322_s10] sm:$0xff] }
0x1636   :  { %v2639_v46 = vadd.f32 %v2638_v37, %v5200_v59  ;;  %v2801_v59 = vld [vmem:[%s5322_s10 + $0x68] sm:$0xff] }
0x1637   :  { %2821 = vmatpush.msrb.mxu1 %v2801_v59 }
0x1638   :  { %v2640_v2 = vmul.f32 0.125, %v2639_v46 }
0x163a   :  { %v2649_v52 = vsel %vm838_vm10, %v2644_v6, %v2640_v2  ;;  %v2641_v50 = vsub.f32 %v5202_v41, %v2640_v2  ;;  %v2800_v41 = vld [vmem:[%s5322_s10 + $0x60] sm:$0xff] }
0x163b   :  { %2722 = vmatmul.f32.vlgmr.msra.gmra.mxu0 %v2649_v52  ;;  %2762 = vmatmul.f32.vlgmr.msra.gmra.mxu2 %v2649_v52 }
0x163c   :  { %2647 = vrot.lane.b32.xlu1 %v2641_v50, %s3595_s4  ;;  %2822 = vmatpush.msrb.mxu1 %v2800_v41 }
0x163e   :  { %2823 = vmatpush.msrb.mxu1 %v2799_v15 }
0x1640   :  { %2824 = vmatpush.msrb.mxu1 %v2798_v12 }
0x1642   :  { %2825 = vmatpush.msrb.mxu1 %v2797_v3 }
0x1644   :  { %2826 = vmatpush.msrb.mxu1 %v2796_v61 }
0x1646   :  { %2827 = vmatpush.msrb.mxu1 %v2795_v24 }
0x1648   :  { %2828 = vmatpush.msrb.mxu1 %v2794_v20 }
0x164a   :  { %2829 = vmatpush.msrb.mxu1 %v2793_v8 }
0x164c   :  { %2830 = vmatpush.msrb.mxu1 %v2792_v18 }
0x164e   :  { %2831 = vmatpush.msrb.mxu1 %v2791_v31 }
0x1650   :  { %2832 = vmatpush.msrb.mxu1 %v2790_v62 }
0x1652   :  { %2833 = vmatpush.msrb.mxu1 %v2789_v28 }
0x1654   :  { %2834 = vmatpush.msrb.mxu1 %v2788_v14 }
0x16ae   :  { %v2648_v36 = vpop.permute.xlu1 %2647 }
0x16af   :  { %3235 = vmatmul.msk.f32.vlgmr.msra.gmra.mxu1 %vm838_vm10, %v2648_v36  ;;  %3236 = vmatmul.msk.f32.vlgmr.msra.gmra.mxu3 %vm838_vm10, %v2648_v36 }
0x16b8   :  { %v2723_v30 = vpop.f32.mrf.mxu0 }
0x16b9   :  { %v2724_v57 = vadd.f32 %v2723_v30, %v2700_v32 }
0x16be   :  { %v2763_v0 = vpop.f32.mrf.mxu2 }
0x16bf   :  { %v2764_v23 = vadd.f32 %v2763_v0, %v2701_v5 }
0x172c   :  { %v2743_v7 = vpop.f32.mrf.mxu1 }
0x172d   :  { %v2744_v48 = vadd.f32 %v2743_v7, %v2724_v57 }
0x172f   :  { %v2786_v19 = vmax.f32 %v2744_v48, 0.0 }
0x1731   :  { %2835 = vmatmul.f32.vlgmr.msrb.gmra.mxu1 %v2786_v19 }
0x1732   :  { %v2783_v49 = vpop.f32.mrf.mxu3 }
0x1733   :  { %v2784_v27 = vadd.f32 %v2783_v49, %v2764_v23 }
0x1735   :  { %v2787_v35 = vmax.f32 %v2784_v27, 0.0 }
0x1737   :  { %3237 = vmatmul.msk.f32.vlgmr.msrb.gmra.mxu3 %vm838_vm10, %v2787_v35 }
0x17ae   :  { %v2836_v1 = vpop.f32.mrf.mxu1 }
0x17af   :  { %v2837_v38 = vadd.f32 %v3330_v54, %v2836_v1 }
0x17ba   :  { %v2856_v51 = vpop.f32.mrf.mxu3 }
0x17bb   :  { %v2857_v11 = vadd.f32 %v2856_v51, %v2837_v38 }
0x17bd   :  { %v3238_v55 = vmul.f32 -1.442695, %v2857_v11 }
0x17bf   :  { %3427 = vpow2.f32 %v3238_v55 }
0x17c5   :  { %v3428_v58 = vpop.eup %3427 }
0x17c6   :  { %v2862_v29 = vadd.f32 1.0, %v3428_v58 }
0x17c8   :  { %3429 = vrcp.f32 %v2862_v29  ;;  %v2874_v10 = vand.u32 2147483648, %v2862_v29  ;;  %v2872_v43 = vand.u32 2147483647, %v2862_v29  ;;  %vm2868_vm12 = vweird.f32 %v2862_v29 }
0x17ca   :  { %v2875_v9 = vor.u32 1.1754944e-38, %v2874_v10  ;;  %vm2873_vm15 = vcmp.eq.f32.partialorder %v2872_v43, 8.507059e+37 }
0x17ce   :  { %v3430_v40 = vpop.eup %3429 }
0x17cf   :  { %v2864_v4 = vmul.f32 %v3430_v40, %v2862_v29  ;;  %vm2869_vm11 = vweird.f32 %v3430_v40 }
0x17d0   :  { %vm2870_vm13 = vmor %vm2868_vm12, %vm2869_vm11 }
0x17d1   :  { %v2865_v63 = vsub.f32 1.0, %v2864_v4 }
0x17d3   :  { %v2866_v42 = vmul.f32 %v3430_v40, %v2865_v63 }
0x17d5   :  { %v2867_v56 = vadd.f32 %v3430_v40, %v2866_v42 }
0x17d7   :  { %v2871_v47 = vsel %vm2870_vm13, %v3430_v40, %v2867_v56 }
0x17d8   :  { %v2876_v34 = vsel %vm2873_vm15, %v2875_v9, %v2871_v47 }
0x17d9   :  { %2879 = vst.msk [vmem:[%s5324_s12] sm:$0xff] %vm2878_vm14, %v2876_v34 }
0x17da   :  { %2884 = vsyncpa [#allocation6], 1 }
0x17db   :  { %2885 = vsyncpa [#allocation8], 1 }
0x17dc   :  { %2886 = vsyncpa [#allocation11], 1 }

</bundles_post_ra>
